<compile_context>
chip_gen: v7x
topology: tpu7x:2x2x1
jax: 0.10.0
libtpu: 0.0.40
codegen_flags: <defaults>
</compile_context>

<pallas_src>
import functools

import jax
import jax.numpy as jnp
from jax.experimental import pallas as pl
from jax.experimental.pallas import tpu as pltpu


def _round_up(x, m):
    return (x + m - 1) // m * m


# ---------------------------------------------------------------------------
# Pallas kernel: bf16 (TM,K) @ (K,Npad) on the MXU, f32 bias + activation.
# ---------------------------------------------------------------------------
def _mm_bias_act_kernel(x_ref, w_ref, b_ref, o_ref, *, act):
    acc = jnp.dot(x_ref[...], w_ref[...], preferred_element_type=jnp.float32)
    acc = acc + b_ref[...]                      # f32 bias, broadcast over M
    if act == "relu":
        acc = jnp.maximum(acc, 0.0)
    elif act == "sigmoid":
        acc = jax.nn.sigmoid(acc)               # exp on EUP, f32 epilogue
    o_ref[...] = acc.astype(o_ref.dtype)


def matmul_bias_act(x, w, b, act, out_dtype=jnp.float32, tm_max=1024):
    """x: (M, K), w: (K, N), b: (N,).  Returns (M, N) in out_dtype."""
    M, K = x.shape
    Kw, N = w.shape
    assert Kw == K

    n_pad = _round_up(N, 128)                   # lane-dense output stores
    m16 = _round_up(M, 16)                      # sublane / bf16-pack clean
    if m16 <= tm_max:
        tm, m_pad = m16, m16
    else:
        tm, m_pad = tm_max, _round_up(M, tm_max)

    xb = jnp.pad(x.astype(jnp.bfloat16), ((0, m_pad - M), (0, 0)))
    wb = jnp.pad(w.astype(jnp.bfloat16), ((0, 0), (0, n_pad - N)))
    bb = jnp.pad(b.astype(jnp.float32), (0, n_pad - N)).reshape(1, n_pad)

    out_bytes = jnp.dtype(out_dtype).itemsize
    cost = pl.CostEstimate(
        flops=2 * m_pad * K * n_pad,
        transcendentals=m_pad * n_pad if act == "sigmoid" else 0,
        bytes_accessed=(m_pad * K + K * n_pad) * 2
        + 4 * n_pad
        + m_pad * n_pad * out_bytes,
    )

    out = pl.pallas_call(
        functools.partial(_mm_bias_act_kernel, act=act),
        out_shape=jax.ShapeDtypeStruct((m_pad, n_pad), out_dtype),
        grid=(m_pad // tm,),
        in_specs=[
            pl.BlockSpec((tm, K), lambda i: (i, 0)),      # M-tiled activations
            pl.BlockSpec((K, n_pad), lambda i: (0, 0)),   # resident weight
            pl.BlockSpec((1, n_pad), lambda i: (0, 0)),   # resident bias
        ],
        out_specs=pl.BlockSpec((tm, n_pad), lambda i: (i, 0)),
        compiler_params=pltpu.CompilerParams(
            dimension_semantics=("parallel",),
            vmem_limit_bytes=64 * 1024 * 1024,
        ),
        cost_estimate=cost,
    )(xb, wb, bb)
    return out[:M, :N]


# ---------------------------------------------------------------------------
# Glue: im2col patch extraction (plain JAX) + layer wrappers.
# ---------------------------------------------------------------------------
def _im2col(x_nhwc, kh, kw, stride, padding):
    n, h, w, c = x_nhwc.shape
    xp = jnp.pad(x_nhwc, ((0, 0), (padding, padding), (padding, padding), (0, 0)))
    ho = (h + 2 * padding - kh) // stride + 1
    wo = (w + 2 * padding - kw) // stride + 1
    patches = []
    for i in range(kh):
        for j in range(kw):
            patches.append(xp[:, i:i + ho * stride:stride, j:j + wo * stride:stride, :])
    cols = jnp.stack(patches, axis=3)                    # (N,Ho,Wo,kh*kw,C)
    return cols.reshape(n * ho * wo, kh * kw * c), ho, wo


def conv2d(x_nhwc, w_pt, b, stride, padding, act, out_dtype):
    """w_pt: PyTorch Conv2d weight (Cout, Cin, kh, kw)."""
    cout, cin, kh, kw = w_pt.shape
    n = x_nhwc.shape[0]
    cols, ho, wo = _im2col(x_nhwc, kh, kw, stride, padding)
    w_mat = jnp.transpose(w_pt, (2, 3, 1, 0)).reshape(kh * kw * cin, cout)
    out = matmul_bias_act(cols, w_mat, b, act, out_dtype)
    return out.reshape(n, ho, wo, cout)


def conv_transpose2d_1x1(x_nhwc, w_pt, b, act, out_dtype):
    """ConvTranspose2d(k, stride=1, padding=0) on a 1x1 spatial input.

    out[n, ky, kx, co] = b[co] + sum_ci x[n, ci] * w[ci, co, ky, kx]
    -> a single dense matmul, no im2col, no zero padding of K.
    """
    cin, cout, kh, kw = w_pt.shape
    n = x_nhwc.shape[0]
    x2 = x_nhwc.reshape(n, cin)
    w_mat = jnp.transpose(w_pt, (0, 2, 3, 1)).reshape(cin, kh * kw * cout)
    b_mat = jnp.tile(b, kh * kw)
    out = matmul_bias_act(x2, w_mat, b_mat, act, out_dtype)
    return out.reshape(n, kh, kw, cout)


def conv_transpose2d_s2_subpixel(x_nhwc, w_pt, b, act, out_dtype):
    """ConvTranspose2d(k=3, stride=2, padding=1, output_padding=1) via the
    sub-pixel (pixel shuffle) decomposition: one stride-1 conv with a 2x2
    window over the bottom/right zero-padded input producing 4*Cout channels
    (one group per output parity), then interleave.  No zero-dilated rows, so
    no wasted MXU FLOPs / im2col DMA.

    Derivation (1D): out[2m]   = x[m]*w[1]
                     out[2m+1] = x[m]*w[2] + x[m+1]*w[0]   (x[H] := 0)
    """
    cin, cout, kh, kw = w_pt.shape               # (Cin, Cout, 3, 3)
    n, h, w, _ = x_nhwc.shape
    xp = jnp.pad(x_nhwc, ((0, 0), (0, 1), (0, 1), (0, 0)))
    cols, ho, wo = _im2col(xp, 2, 2, 1, 0)       # ho=h, wo=w, K = 4*Cin

    # kernel-tap index for (parity, window offset); None = no contribution
    kidx = {(0, 0): 1, (0, 1): None, (1, 0): 2, (1, 1): 0}
    w4 = jnp.zeros((2, 2, cin, 2, 2, cout), w_pt.dtype)
    for dy in range(2):
        for dx in range(2):
            for py in range(2):
                for px in range(2):
                    ky = kidx[(py, dy)]
                    kx = kidx[(px, dx)]
                    if ky is None or kx is None:
                        continue
                    w4 = w4.at[dy, dx, :, py, px, :].set(w_pt[:, :, ky, kx])
    w_mat = w4.reshape(4 * cin, 4 * cout)        # rows: (dy,dx,ci), cols: (py,px,co)
    b_mat = jnp.tile(b, 4)

    out = matmul_bias_act(cols, w_mat, b_mat, act, out_dtype)   # (N*h*w, 4*Cout)
    out = out.reshape(n, h, w, 2, 2, cout)
    out = jnp.transpose(out, (0, 1, 3, 2, 4, 5)).reshape(n, 2 * h, 2 * w, cout)
    return out


# ---------------------------------------------------------------------------
# Parameters (deterministic, PyTorch-default-style uniform init).
# ---------------------------------------------------------------------------
def _uniform(key, shape, bound):
    return jax.random.uniform(key, shape, jnp.float32, -bound, bound)


def init_params(key):
    ks = jax.random.split(key, 12)
    p = {}
    p["c1_w"] = _uniform(ks[0], (16, 1, 3, 3), 1.0 / (1 * 3 * 3) ** 0.5)
    p["c1_b"] = _uniform(ks[1], (16,), 1.0 / (1 * 3 * 3) ** 0.5)
    p["c2_w"] = _uniform(ks[2], (32, 16, 3, 3), 1.0 / (16 * 3 * 3) ** 0.5)
    p["c2_b"] = _uniform(ks[3], (32,), 1.0 / (16 * 3 * 3) ** 0.5)
    p["c3_w"] = _uniform(ks[4], (64, 32, 7, 7), 1.0 / (32 * 7 * 7) ** 0.5)
    p["c3_b"] = _uniform(ks[5], (64,), 1.0 / (32 * 7 * 7) ** 0.5)
    p["d1_w"] = _uniform(ks[6], (64, 32, 7, 7), 1.0 / (32 * 7 * 7) ** 0.5)
    p["d1_b"] = _uniform(ks[7], (32,), 1.0 / (32 * 7 * 7) ** 0.5)
    p["d2_w"] = _uniform(ks[8], (32, 16, 3, 3), 1.0 / (16 * 3 * 3) ** 0.5)
    p["d2_b"] = _uniform(ks[9], (16,), 1.0 / (16 * 3 * 3) ** 0.5)
    p["d3_w"] = _uniform(ks[10], (16, 1, 3, 3), 1.0 / (1 * 3 * 3) ** 0.5)
    p["d3_b"] = _uniform(ks[11], (1,), 1.0 / (1 * 3 * 3) ** 0.5)
    return p


# ---------------------------------------------------------------------------
# Full forward pass (matches Autoencoder.forward).
# ---------------------------------------------------------------------------
def autoencoder_forward(x_nchw, p):
    bf16 = jnp.bfloat16
    x = jnp.transpose(x_nchw, (0, 2, 3, 1))                                   # NCHW -> NHWC
    # encoder
    x = conv2d(x, p["c1_w"], p["c1_b"], 2, 1, "relu", bf16)                   # (N,14,14,16)
    x = conv2d(x, p["c2_w"], p["c2_b"], 2, 1, "relu", bf16)                   # (N, 7, 7,32)
    x = conv2d(x, p["c3_w"], p["c3_b"], 1, 0, "none", bf16)                   # (N, 1, 1,64)
    # decoder
    x = conv_transpose2d_1x1(x, p["d1_w"], p["d1_b"], "relu", bf16)           # (N, 7, 7,32)
    x = conv_transpose2d_s2_subpixel(x, p["d2_w"], p["d2_b"], "relu", bf16)   # (N,14,14,16)
    x = conv_transpose2d_s2_subpixel(x, p["d3_w"], p["d3_b"], "sigmoid",
                                     jnp.float32)                             # (N,28,28, 1)
    return jnp.transpose(x, (0, 3, 1, 2))                                     # NHWC -> NCHW


# ---------------------------------------------------------------------------
# Pure-JAX f32 reference (for correctness checking only).
# ---------------------------------------------------------------------------
def _conv_ref(x, w_pt, b, stride, padding):
    w = jnp.transpose(w_pt, (2, 3, 1, 0))                         # HWIO
    out = jax.lax.conv_general_dilated(
        x, w, window_strides=(stride, stride),
        padding=[(padding, padding), (padding, padding)],
        dimension_numbers=("NHWC", "HWIO", "NHWC"))
    return out + b


def _conv_transpose_ref(x, w_pt, b, stride, padding, output_padding):
    kh = w_pt.shape[2]
    w = jnp.transpose(jnp.flip(w_pt, axis=(2, 3)), (2, 3, 0, 1))  # HWIO, flipped
    lo = kh - 1 - padding
    hi = kh - 1 - padding + output_padding
    out = jax.lax.conv_general_dilated(
        x, w, window_strides=(1, 1), padding=[(lo, hi), (lo, hi)],
        lhs_dilation=(stride, stride),
        dimension_numbers=("NHWC", "HWIO", "NHWC"))
    return out + b


def autoencoder_ref(x_nchw, p):
    x = jnp.transpose(x_nchw, (0, 2, 3, 1))
    x = jax.nn.relu(_conv_ref(x, p["c1_w"], p["c1_b"], 2, 1))
    x = jax.nn.relu(_conv_ref(x, p["c2_w"], p["c2_b"], 2, 1))
    x = _conv_ref(x, p["c3_w"], p["c3_b"], 1, 0)
    x = jax.nn.relu(_conv_transpose_ref(x, p["d1_w"], p["d1_b"], 1, 0, 0))
    x = jax.nn.relu(_conv_transpose_ref(x, p["d2_w"], p["d2_b"], 2, 1, 1))
    x = jax.nn.sigmoid(_conv_transpose_ref(x, p["d3_w"], p["d3_b"], 2, 1, 1))
    return jnp.transpose(x, (0, 3, 1, 2))


if __name__ == "__main__":
    key = jax.random.PRNGKey(0)
    k_x, k_p = jax.random.split(key)
    # MNIST-shaped input: batch=2, 1 channel, 28x28 (architecture requires 28).
    x = jax.random.uniform(k_x, (2, 1, 28, 28), jnp.float32)
    params = init_params(k_p)

    fwd = jax.jit(autoencoder_forward)
    out = fwd(x, params)
    jax.block_until_ready(out)

    assert out.shape == (2, 1, 28, 28), out.shape
    assert bool(jnp.all((out >= 0.0) & (out <= 1.0))), "sigmoid range violated"

    ref = jax.jit(autoencoder_ref)(x, params)
    max_err = float(jnp.max(jnp.abs(out - ref)))
    assert max_err < 6e-2, f"mismatch vs f32 reference: {max_err}"

    print("KERNEL_OK")
</pallas_src>

<mosaic_0001>
module attributes {stable_mosaic.version = 11 : i64} {
  func.func @_mm_bias_act_kernel(%arg0: i32, %arg1: memref<400x9xbf16, #tpu.memory_space<vmem>>, %arg2: memref<9x128xbf16, #tpu.memory_space<vmem>>, %arg3: memref<1x128xf32, #tpu.memory_space<vmem>>, %arg4: memref<400x128xbf16, #tpu.memory_space<vmem>>) attributes {dimension_semantics = [#tpu.dimension_semantics<parallel>], iteration_bounds = array<i64: 1>, scalar_prefetch = 0 : i64, scratch_operands = 0 : i64, tpu.core_type = #tpu.core_type<tc>, window_params = [{transform_indices = @transform_0, window_bounds = array<i64: 400, 9>}, {pipeline_mode = #tpu.pipeline_mode<synchronous>, transform_indices = @transform_1, window_bounds = array<i64: 9, 128>}, {pipeline_mode = #tpu.pipeline_mode<synchronous>, transform_indices = @transform_2, window_bounds = array<i64: 1, 128>}, {transform_indices = @transform_3, window_bounds = array<i64: 400, 128>}]} {
    %c0 = arith.constant 0 : index
    %c0_0 = arith.constant 0 : index
    %0 = vector.load %arg1[%c0, %c0_0] : memref<400x9xbf16, #tpu.memory_space<vmem>>, vector<400x9xbf16>
    %c0_1 = arith.constant 0 : index
    %c0_2 = arith.constant 0 : index
    %1 = vector.load %arg2[%c0_1, %c0_2] : memref<9x128xbf16, #tpu.memory_space<vmem>>, vector<9x128xbf16>
    %cst = arith.constant dense<0.000000e+00> : vector<400x128xf32>
    %2 = tpu.matmul %0, %1, %cst {dimension_numbers = #tpu.dot_dimension_numbers<[1], [0], [0], [1], [0, 0, 1, 1], [], []>} : vector<400x9xbf16>, vector<9x128xbf16>, vector<400x128xf32> -> vector<400x128xf32>
    %c0_3 = arith.constant 0 : index
    %c0_4 = arith.constant 0 : index
    %3 = vector.load %arg3[%c0_3, %c0_4] : memref<1x128xf32, #tpu.memory_space<vmem>>, vector<1x128xf32>
    %4 = vector.broadcast %3 : vector<1x128xf32> to vector<400x128xf32>
    %5 = arith.addf %2, %4 : vector<400x128xf32>
    %cst_5 = arith.constant 0.000000e+00 : f32
    %6 = vector.broadcast %cst_5 : f32 to vector<400x128xf32>
    %7 = arith.maximumf %5, %6 : vector<400x128xf32>
    %8 = arith.truncf %7 : vector<400x128xf32> to vector<400x128xbf16>
    %c0_6 = arith.constant 0 : index
    %c0_7 = arith.constant 0 : index
    %9 = vector.load %arg4[%c0_6, %c0_7] : memref<400x128xbf16, #tpu.memory_space<vmem>>, vector<400x128xbf16>
    tpu.vector_store %arg4[%c0_6, %c0_7], %8 {strides = array<i32>} : memref<400x128xbf16, #tpu.memory_space<vmem>>, vector<400x128xbf16>,
    return
  }
  func.func @transform_0(%arg0: i32) -> (i32, i32) {
    %c0_i32 = arith.constant 0 : i32
    %c0_i32_0 = arith.constant 0 : i32
    return %arg0, %c0_i32 : i32, i32
  }
  func.func @transform_1(%arg0: i32) -> (i32, i32) {
    %c0_i32 = arith.constant 0 : i32
    %c0_i32_0 = arith.constant 0 : i32
    %c0_i32_1 = arith.constant 0 : i32
    return %c0_i32, %c0_i32_0 : i32, i32
  }
  func.func @transform_2(%arg0: i32) -> (i32, i32) {
    %c0_i32 = arith.constant 0 : i32
    %c0_i32_0 = arith.constant 0 : i32
    %c0_i32_1 = arith.constant 0 : i32
    return %c0_i32, %c0_i32_0 : i32, i32
  }
  func.func @transform_3(%arg0: i32) -> (i32, i32) {
    %c0_i32 = arith.constant 0 : i32
    %c0_i32_0 = arith.constant 0 : i32
    return %arg0, %c0_i32 : i32, i32
  }
}

module attributes {stable_mosaic.version = 11 : i64} {
  func.func @_mm_bias_act_kernel(%arg0: i32, %arg1: memref<112x144xbf16, #tpu.memory_space<vmem>>, %arg2: memref<144x128xbf16, #tpu.memory_space<vmem>>, %arg3: memref<1x128xf32, #tpu.memory_space<vmem>>, %arg4: memref<112x128xbf16, #tpu.memory_space<vmem>>) attributes {dimension_semantics = [#tpu.dimension_semantics<parallel>], iteration_bounds = array<i64: 1>, scalar_prefetch = 0 : i64, scratch_operands = 0 : i64, tpu.core_type = #tpu.core_type<tc>, window_params = [{transform_indices = @transform_0, window_bounds = array<i64: 112, 144>}, {pipeline_mode = #tpu.pipeline_mode<synchronous>, transform_indices = @transform_1, window_bounds = array<i64: 144, 128>}, {pipeline_mode = #tpu.pipeline_mode<synchronous>, transform_indices = @transform_2, window_bounds = array<i64: 1, 128>}, {transform_indices = @transform_3, window_bounds = array<i64: 112, 128>}]} {
    %c0 = arith.constant 0 : index
    %c0_0 = arith.constant 0 : index
    %0 = vector.load %arg1[%c0, %c0_0] : memref<112x144xbf16, #tpu.memory_space<vmem>>, vector<112x144xbf16>
    %c0_1 = arith.constant 0 : index
    %c0_2 = arith.constant 0 : index
    %1 = vector.load %arg2[%c0_1, %c0_2] : memref<144x128xbf16, #tpu.memory_space<vmem>>, vector<144x128xbf16>
    %cst = arith.constant dense<0.000000e+00> : vector<112x128xf32>
    %2 = tpu.matmul %0, %1, %cst {dimension_numbers = #tpu.dot_dimension_numbers<[1], [0], [0], [1], [0, 0, 1, 1], [], []>} : vector<112x144xbf16>, vector<144x128xbf16>, vector<112x128xf32> -> vector<112x128xf32>
    %c0_3 = arith.constant 0 : index
    %c0_4 = arith.constant 0 : index
    %3 = vector.load %arg3[%c0_3, %c0_4] : memref<1x128xf32, #tpu.memory_space<vmem>>, vector<1x128xf32>
    %4 = vector.broadcast %3 : vector<1x128xf32> to vector<112x128xf32>
    %5 = arith.addf %2, %4 : vector<112x128xf32>
    %cst_5 = arith.constant 0.000000e+00 : f32
    %6 = vector.broadcast %cst_5 : f32 to vector<112x128xf32>
    %7 = arith.maximumf %5, %6 : vector<112x128xf32>
    %8 = arith.truncf %7 : vector<112x128xf32> to vector<112x128xbf16>
    %c0_6 = arith.constant 0 : index
    %c0_7 = arith.constant 0 : index
    %9 = vector.load %arg4[%c0_6, %c0_7] : memref<112x128xbf16, #tpu.memory_space<vmem>>, vector<112x128xbf16>
    tpu.vector_store %arg4[%c0_6, %c0_7], %8 {strides = array<i32>} : memref<112x128xbf16, #tpu.memory_space<vmem>>, vector<112x128xbf16>,
    return
  }
  func.func @transform_0(%arg0: i32) -> (i32, i32) {
    %c0_i32 = arith.constant 0 : i32
    %c0_i32_0 = arith.constant 0 : i32
    return %arg0, %c0_i32 : i32, i32
  }
  func.func @transform_1(%arg0: i32) -> (i32, i32) {
    %c0_i32 = arith.constant 0 : i32
    %c0_i32_0 = arith.constant 0 : i32
    %c0_i32_1 = arith.constant 0 : i32
    return %c0_i32, %c0_i32_0 : i32, i32
  }
  func.func @transform_2(%arg0: i32) -> (i32, i32) {
    %c0_i32 = arith.constant 0 : i32
    %c0_i32_0 = arith.constant 0 : i32
    %c0_i32_1 = arith.constant 0 : i32
    return %c0_i32, %c0_i32_0 : i32, i32
  }
  func.func @transform_3(%arg0: i32) -> (i32, i32) {
    %c0_i32 = arith.constant 0 : i32
    %c0_i32_0 = arith.constant 0 : i32
    return %arg0, %c0_i32 : i32, i32
  }
}

module attributes {stable_mosaic.version = 11 : i64} {
  func.func @_mm_bias_act_kernel(%arg0: i32, %arg1: memref<16x1568xbf16, #tpu.memory_space<vmem>>, %arg2: memref<1568x128xbf16, #tpu.memory_space<vmem>>, %arg3: memref<1x128xf32, #tpu.memory_space<vmem>>, %arg4: memref<16x128xbf16, #tpu.memory_space<vmem>>) attributes {dimension_semantics = [#tpu.dimension_semantics<parallel>], iteration_bounds = array<i64: 1>, scalar_prefetch = 0 : i64, scratch_operands = 0 : i64, tpu.core_type = #tpu.core_type<tc>, window_params = [{transform_indices = @transform_0, window_bounds = array<i64: 16, 1568>}, {pipeline_mode = #tpu.pipeline_mode<synchronous>, transform_indices = @transform_1, window_bounds = array<i64: 1568, 128>}, {pipeline_mode = #tpu.pipeline_mode<synchronous>, transform_indices = @transform_2, window_bounds = array<i64: 1, 128>}, {transform_indices = @transform_3, window_bounds = array<i64: 16, 128>}]} {
    %c0 = arith.constant 0 : index
    %c0_0 = arith.constant 0 : index
    %0 = vector.load %arg1[%c0, %c0_0] : memref<16x1568xbf16, #tpu.memory_space<vmem>>, vector<16x1568xbf16>
    %c0_1 = arith.constant 0 : index
    %c0_2 = arith.constant 0 : index
    %1 = vector.load %arg2[%c0_1, %c0_2] : memref<1568x128xbf16, #tpu.memory_space<vmem>>, vector<1568x128xbf16>
    %cst = arith.constant dense<0.000000e+00> : vector<16x128xf32>
    %2 = tpu.matmul %0, %1, %cst {dimension_numbers = #tpu.dot_dimension_numbers<[1], [0], [0], [1], [0, 0, 1, 1], [], []>} : vector<16x1568xbf16>, vector<1568x128xbf16>, vector<16x128xf32> -> vector<16x128xf32>
    %c0_3 = arith.constant 0 : index
    %c0_4 = arith.constant 0 : index
    %3 = vector.load %arg3[%c0_3, %c0_4] : memref<1x128xf32, #tpu.memory_space<vmem>>, vector<1x128xf32>
    %4 = vector.broadcast %3 : vector<1x128xf32> to vector<16x128xf32>
    %5 = arith.addf %2, %4 : vector<16x128xf32>
    %6 = arith.truncf %5 : vector<16x128xf32> to vector<16x128xbf16>
    %c0_5 = arith.constant 0 : index
    %c0_6 = arith.constant 0 : index
    %7 = vector.load %arg4[%c0_5, %c0_6] : memref<16x128xbf16, #tpu.memory_space<vmem>>, vector<16x128xbf16>
    tpu.vector_store %arg4[%c0_5, %c0_6], %6 {strides = array<i32>} : memref<16x128xbf16, #tpu.memory_space<vmem>>, vector<16x128xbf16>,
    return
  }
  func.func @transform_0(%arg0: i32) -> (i32, i32) {
    %c0_i32 = arith.constant 0 : i32
    %c0_i32_0 = arith.constant 0 : i32
    return %arg0, %c0_i32 : i32, i32
  }
  func.func @transform_1(%arg0: i32) -> (i32, i32) {
    %c0_i32 = arith.constant 0 : i32
    %c0_i32_0 = arith.constant 0 : i32
    %c0_i32_1 = arith.constant 0 : i32
    return %c0_i32, %c0_i32_0 : i32, i32
  }
  func.func @transform_2(%arg0: i32) -> (i32, i32) {
    %c0_i32 = arith.constant 0 : i32
    %c0_i32_0 = arith.constant 0 : i32
    %c0_i32_1 = arith.constant 0 : i32
    return %c0_i32, %c0_i32_0 : i32, i32
  }
  func.func @transform_3(%arg0: i32) -> (i32, i32) {
    %c0_i32 = arith.constant 0 : i32
    %c0_i32_0 = arith.constant 0 : i32
    return %arg0, %c0_i32 : i32, i32
  }
}

module attributes {stable_mosaic.version = 11 : i64} {
  func.func @_mm_bias_act_kernel(%arg0: i32, %arg1: memref<16x64xbf16, #tpu.memory_space<vmem>>, %arg2: memref<64x1664xbf16, #tpu.memory_space<vmem>>, %arg3: memref<1x1664xf32, #tpu.memory_space<vmem>>, %arg4: memref<16x1664xbf16, #tpu.memory_space<vmem>>) attributes {dimension_semantics = [#tpu.dimension_semantics<parallel>], iteration_bounds = array<i64: 1>, scalar_prefetch = 0 : i64, scratch_operands = 0 : i64, tpu.core_type = #tpu.core_type<tc>, window_params = [{transform_indices = @transform_0, window_bounds = array<i64: 16, 64>}, {pipeline_mode = #tpu.pipeline_mode<synchronous>, transform_indices = @transform_1, window_bounds = array<i64: 64, 1664>}, {pipeline_mode = #tpu.pipeline_mode<synchronous>, transform_indices = @transform_2, window_bounds = array<i64: 1, 1664>}, {transform_indices = @transform_3, window_bounds = array<i64: 16, 1664>}]} {
    %c0 = arith.constant 0 : index
    %c0_0 = arith.constant 0 : index
    %0 = vector.load %arg1[%c0, %c0_0] : memref<16x64xbf16, #tpu.memory_space<vmem>>, vector<16x64xbf16>
    %c0_1 = arith.constant 0 : index
    %c0_2 = arith.constant 0 : index
    %1 = vector.load %arg2[%c0_1, %c0_2] : memref<64x1664xbf16, #tpu.memory_space<vmem>>, vector<64x1664xbf16>
    %cst = arith.constant dense<0.000000e+00> : vector<16x1664xf32>
    %2 = tpu.matmul %0, %1, %cst {dimension_numbers = #tpu.dot_dimension_numbers<[1], [0], [0], [1], [0, 0, 1, 1], [], []>} : vector<16x64xbf16>, vector<64x1664xbf16>, vector<16x1664xf32> -> vector<16x1664xf32>
    %c0_3 = arith.constant 0 : index
    %c0_4 = arith.constant 0 : index
    %3 = vector.load %arg3[%c0_3, %c0_4] : memref<1x1664xf32, #tpu.memory_space<vmem>>, vector<1x1664xf32>
    %4 = vector.broadcast %3 : vector<1x1664xf32> to vector<16x1664xf32>
    %5 = arith.addf %2, %4 : vector<16x1664xf32>
    %cst_5 = arith.constant 0.000000e+00 : f32
    %6 = vector.broadcast %cst_5 : f32 to vector<16x1664xf32>
    %7 = arith.maximumf %5, %6 : vector<16x1664xf32>
    %8 = arith.truncf %7 : vector<16x1664xf32> to vector<16x1664xbf16>
    %c0_6 = arith.constant 0 : index
    %c0_7 = arith.constant 0 : index
    %9 = vector.load %arg4[%c0_6, %c0_7] : memref<16x1664xbf16, #tpu.memory_space<vmem>>, vector<16x1664xbf16>
    tpu.vector_store %arg4[%c0_6, %c0_7], %8 {strides = array<i32>} : memref<16x1664xbf16, #tpu.memory_space<vmem>>, vector<16x1664xbf16>,
    return
  }
  func.func @transform_0(%arg0: i32) -> (i32, i32) {
    %c0_i32 = arith.constant 0 : i32
    %c0_i32_0 = arith.constant 0 : i32
    return %arg0, %c0_i32 : i32, i32
  }
  func.func @transform_1(%arg0: i32) -> (i32, i32) {
    %c0_i32 = arith.constant 0 : i32
    %c0_i32_0 = arith.constant 0 : i32
    %c0_i32_1 = arith.constant 0 : i32
    return %c0_i32, %c0_i32_0 : i32, i32
  }
  func.func @transform_2(%arg0: i32) -> (i32, i32) {
    %c0_i32 = arith.constant 0 : i32
    %c0_i32_0 = arith.constant 0 : i32
    %c0_i32_1 = arith.constant 0 : i32
    return %c0_i32, %c0_i32_0 : i32, i32
  }
  func.func @transform_3(%arg0: i32) -> (i32, i32) {
    %c0_i32 = arith.constant 0 : i32
    %c0_i32_0 = arith.constant 0 : i32
    return %arg0, %c0_i32 : i32, i32
  }
}

module attributes {stable_mosaic.version = 11 : i64} {
  func.func @_mm_bias_act_kernel(%arg0: i32, %arg1: memref<112x128xbf16, #tpu.memory_space<vmem>>, %arg2: memref<128x128xbf16, #tpu.memory_space<vmem>>, %arg3: memref<1x128xf32, #tpu.memory_space<vmem>>, %arg4: memref<112x128xbf16, #tpu.memory_space<vmem>>) attributes {dimension_semantics = [#tpu.dimension_semantics<parallel>], iteration_bounds = array<i64: 1>, scalar_prefetch = 0 : i64, scratch_operands = 0 : i64, tpu.core_type = #tpu.core_type<tc>, window_params = [{transform_indices = @transform_0, window_bounds = array<i64: 112, 128>}, {pipeline_mode = #tpu.pipeline_mode<synchronous>, transform_indices = @transform_1, window_bounds = array<i64: 128, 128>}, {pipeline_mode = #tpu.pipeline_mode<synchronous>, transform_indices = @transform_2, window_bounds = array<i64: 1, 128>}, {transform_indices = @transform_3, window_bounds = array<i64: 112, 128>}]} {
    %c0 = arith.constant 0 : index
    %c0_0 = arith.constant 0 : index
    %0 = vector.load %arg1[%c0, %c0_0] : memref<112x128xbf16, #tpu.memory_space<vmem>>, vector<112x128xbf16>
    %c0_1 = arith.constant 0 : index
    %c0_2 = arith.constant 0 : index
    %1 = vector.load %arg2[%c0_1, %c0_2] : memref<128x128xbf16, #tpu.memory_space<vmem>>, vector<128x128xbf16>
    %cst = arith.constant dense<0.000000e+00> : vector<112x128xf32>
    %2 = tpu.matmul %0, %1, %cst {dimension_numbers = #tpu.dot_dimension_numbers<[1], [0], [0], [1], [0, 0, 1, 1], [], []>} : vector<112x128xbf16>, vector<128x128xbf16>, vector<112x128xf32> -> vector<112x128xf32>
    %c0_3 = arith.constant 0 : index
    %c0_4 = arith.constant 0 : index
    %3 = vector.load %arg3[%c0_3, %c0_4] : memref<1x128xf32, #tpu.memory_space<vmem>>, vector<1x128xf32>
    %4 = vector.broadcast %3 : vector<1x128xf32> to vector<112x128xf32>
    %5 = arith.addf %2, %4 : vector<112x128xf32>
    %cst_5 = arith.constant 0.000000e+00 : f32
    %6 = vector.broadcast %cst_5 : f32 to vector<112x128xf32>
    %7 = arith.maximumf %5, %6 : vector<112x128xf32>
    %8 = arith.truncf %7 : vector<112x128xf32> to vector<112x128xbf16>
    %c0_6 = arith.constant 0 : index
    %c0_7 = arith.constant 0 : index
    %9 = vector.load %arg4[%c0_6, %c0_7] : memref<112x128xbf16, #tpu.memory_space<vmem>>, vector<112x128xbf16>
    tpu.vector_store %arg4[%c0_6, %c0_7], %8 {strides = array<i32>} : memref<112x128xbf16, #tpu.memory_space<vmem>>, vector<112x128xbf16>,
    return
  }
  func.func @transform_0(%arg0: i32) -> (i32, i32) {
    %c0_i32 = arith.constant 0 : i32
    %c0_i32_0 = arith.constant 0 : i32
    return %arg0, %c0_i32 : i32, i32
  }
  func.func @transform_1(%arg0: i32) -> (i32, i32) {
    %c0_i32 = arith.constant 0 : i32
    %c0_i32_0 = arith.constant 0 : i32
    %c0_i32_1 = arith.constant 0 : i32
    return %c0_i32, %c0_i32_0 : i32, i32
  }
  func.func @transform_2(%arg0: i32) -> (i32, i32) {
    %c0_i32 = arith.constant 0 : i32
    %c0_i32_0 = arith.constant 0 : i32
    %c0_i32_1 = arith.constant 0 : i32
    return %c0_i32, %c0_i32_0 : i32, i32
  }
  func.func @transform_3(%arg0: i32) -> (i32, i32) {
    %c0_i32 = arith.constant 0 : i32
    %c0_i32_0 = arith.constant 0 : i32
    return %arg0, %c0_i32 : i32, i32
  }
}

module attributes {stable_mosaic.version = 11 : i64} {
  func.func @_mm_bias_act_kernel(%arg0: i32, %arg1: memref<400x64xbf16, #tpu.memory_space<vmem>>, %arg2: memref<64x128xbf16, #tpu.memory_space<vmem>>, %arg3: memref<1x128xf32, #tpu.memory_space<vmem>>, %arg4: memref<400x128xf32, #tpu.memory_space<vmem>>) attributes {dimension_semantics = [#tpu.dimension_semantics<parallel>], iteration_bounds = array<i64: 1>, scalar_prefetch = 0 : i64, scratch_operands = 0 : i64, tpu.core_type = #tpu.core_type<tc>, window_params = [{transform_indices = @transform_0, window_bounds = array<i64: 400, 64>}, {pipeline_mode = #tpu.pipeline_mode<synchronous>, transform_indices = @transform_1, window_bounds = array<i64: 64, 128>}, {pipeline_mode = #tpu.pipeline_mode<synchronous>, transform_indices = @transform_2, window_bounds = array<i64: 1, 128>}, {transform_indices = @transform_3, window_bounds = array<i64: 400, 128>}]} {
    %c0 = arith.constant 0 : index
    %c0_0 = arith.constant 0 : index
    %0 = vector.load %arg1[%c0, %c0_0] : memref<400x64xbf16, #tpu.memory_space<vmem>>, vector<400x64xbf16>
    %c0_1 = arith.constant 0 : index
    %c0_2 = arith.constant 0 : index
    %1 = vector.load %arg2[%c0_1, %c0_2] : memref<64x128xbf16, #tpu.memory_space<vmem>>, vector<64x128xbf16>
    %cst = arith.constant dense<0.000000e+00> : vector<400x128xf32>
    %2 = tpu.matmul %0, %1, %cst {dimension_numbers = #tpu.dot_dimension_numbers<[1], [0], [0], [1], [0, 0, 1, 1], [], []>} : vector<400x64xbf16>, vector<64x128xbf16>, vector<400x128xf32> -> vector<400x128xf32>
    %c0_3 = arith.constant 0 : index
    %c0_4 = arith.constant 0 : index
    %3 = vector.load %arg3[%c0_3, %c0_4] : memref<1x128xf32, #tpu.memory_space<vmem>>, vector<1x128xf32>
    %4 = vector.broadcast %3 : vector<1x128xf32> to vector<400x128xf32>
    %5 = arith.addf %2, %4 : vector<400x128xf32>
    %6 = arith.negf %5 : vector<400x128xf32>
    %7 = math.exp %6 : vector<400x128xf32>
    %cst_5 = arith.constant 1.000000e+00 : f32
    %8 = vector.broadcast %cst_5 : f32 to vector<400x128xf32>
    %9 = arith.addf %8, %7 : vector<400x128xf32>
    %10 = arith.divf %8, %9 : vector<400x128xf32>
    %c0_6 = arith.constant 0 : index
    %c0_7 = arith.constant 0 : index
    %11 = vector.load %arg4[%c0_6, %c0_7] : memref<400x128xf32, #tpu.memory_space<vmem>>, vector<400x128xf32>
    tpu.vector_store %arg4[%c0_6, %c0_7], %10 {strides = array<i32>} : memref<400x128xf32, #tpu.memory_space<vmem>>, vector<400x128xf32>,
    return
  }
  func.func @transform_0(%arg0: i32) -> (i32, i32) {
    %c0_i32 = arith.constant 0 : i32
    %c0_i32_0 = arith.constant 0 : i32
    return %arg0, %c0_i32 : i32, i32
  }
  func.func @transform_1(%arg0: i32) -> (i32, i32) {
    %c0_i32 = arith.constant 0 : i32
    %c0_i32_0 = arith.constant 0 : i32
    %c0_i32_1 = arith.constant 0 : i32
    return %c0_i32, %c0_i32_0 : i32, i32
  }
  func.func @transform_2(%arg0: i32) -> (i32, i32) {
    %c0_i32 = arith.constant 0 : i32
    %c0_i32_0 = arith.constant 0 : i32
    %c0_i32_1 = arith.constant 0 : i32
    return %c0_i32, %c0_i32_0 : i32, i32
  }
  func.func @transform_3(%arg0: i32) -> (i32, i32) {
    %c0_i32 = arith.constant 0 : i32
    %c0_i32_0 = arith.constant 0 : i32
    return %arg0, %c0_i32 : i32, i32
  }
}

</mosaic_0001>

<bundles_post_ra>
// kernel: autoencoder_forward.6
= control target key start
LH: loop header
LB: loop body
LE: loop exit
PB: predicated region body
PF: predicated region fallthrough
CT: control target
= control target key end

     0   :  { %8 = vsyncpa [#allocation3], 0  ;;  %s1660_s0 = inlined_call_operand.hbm [shape: bf16[400,9], index: 0, kind: input, shape index: {}]   ;;  %s1661_s1 = inlined_call_operand.hbm [shape: bf16[9,128], index: 1, kind: input, shape index: {}]   ;;  %s1662_s2 = inlined_call_operand.hbm [shape: f32[1,128], index: 2, kind: input, shape index: {}]   ;;  %s1663_s3 = inlined_call_operand.hbm [shape: bf16[400,128], index: 3, kind: output, shape index: {}]  }
   0x1   :  { %9 = vsyncpa [#allocation6], 0 }
   0x2   :  { %10 = vsyncpa [#allocation4], 0  ;;  %s1438_s12 = smov [#allocation5]   ;;  %s1439_s14 = smov [#allocation2]  }
   0x3   :  { %s28_s13 = sshll.u32 %s1438_s12, 4  ;;  %s16_s15 = sshll.u32 %s1439_s14, 4  ;;  %s29_s13 = int_to_ptr.vmem [resolvable:$true] %s28_s13  ;;  %s1467_s15 = int_to_ptr.vmem [resolvable:$true] %s16_s15 }
   0x4   :  { %s1344_s18 = scalar_lea.hbm %s1661_s1, 128 }
   0x5   :  { %p1345_p0 = scmp.ne.s32.totalorder %s1661_s1, %s1344_s18  ;;  %p1348_p1 = scmp.lt.u32.totalorder %s1344_s18, %s1661_s1 }
   0x7   :  { %p1350_p2 = pnand %p1348_p1, %p1345_p0 }
   0x9   :  { %1353 = shalt.err (!%p1350_p2)
}
   0xa   :  { %s1354_s23 = scalar_lea.vmem %s29_s13, 128  ;;  %p1359_p4 = scmp.lt.s32.totalorder %s29_s13, %s29_s13 }
   0xb   :  { %p1355_p3 = scmp.ne.s32.totalorder %s29_s13, %s1354_s23  ;;  %p1360_p5 = scmp.lt.s32.totalorder %s1354_s23, %s1354_s23 }
   0xd   :  { %p1361_p6 = por %p1360_p5, %p1359_p4 }
   0xf   :  { %p1362_p7 = pnand %p1361_p6, %p1355_p3 }
  0x11   :  { %1365 = shalt.err (!%p1362_p7)
}
  0x12   :  { %s1440_s24 = smov 64   ;;  %s1441_s25 = smov 4  }
  0x13   :  { %34 = dma.hbm_to_vmem [thread:$0]  %s1661_s1, 128, %s29_s13, [#allocation6], %s1440_s24, %s1440_s24, %s1441_s25  }
  0x14   :  { %s1366_s30 = scalar_lea.hbm %s1660_s0, 3200 }
  0x15   :  { %p1367_p8 = scmp.ne.s32.totalorder %s1660_s0, %s1366_s30  ;;  %p1370_p9 = scmp.lt.u32.totalorder %s1366_s30, %s1660_s0 }
  0x17   :  { %p1372_p10 = pnand %p1370_p9, %p1367_p8 }
  0x19   :  { %1375 = shalt.err (!%p1372_p10)
}
  0x1a   :  { %s1376_s8 = scalar_lea.vmem %s1467_s15, 3200  ;;  %p1381_p12 = scmp.lt.s32.totalorder %s1467_s15, %s1467_s15 }
  0x1b   :  { %p1377_p11 = scmp.ne.s32.totalorder %s1467_s15, %s1376_s8  ;;  %p1382_p13 = scmp.lt.s32.totalorder %s1376_s8, %s1376_s8 }
  0x1d   :  { %p1383_p0 = por %p1382_p13, %p1381_p12 }
  0x1f   :  { %p1384_p1 = pnand %p1383_p0, %p1377_p11 }
  0x21   :  { %1387 = shalt.err (!%p1384_p1)
}
  0x22   :  { %22 = dma.hbm_to_vmem [thread:$0]  %s1660_s0, 3200, %s1467_s15, [#allocation3], %s1440_s24, %s1440_s24, %s1441_s25  }
  0x23   :  { %s1442_s10 = smov [#allocation7]   ;;  %s1388_s14 = scalar_lea.hbm %s1662_s2, 16 }
  0x24   :  { %s41_s11 = sshll.u32 %s1442_s10, 4  ;;  %p1389_p2 = scmp.ne.s32.totalorder %s1662_s2, %s1388_s14  ;;  %s42_s11 = int_to_ptr.vmem [resolvable:$true] %s41_s11 }
  0x25   :  { %p1392_p3 = scmp.lt.u32.totalorder %s1388_s14, %s1662_s2 }
  0x27   :  { %p1394_p4 = pnand %p1392_p3, %p1389_p2 }
  0x29   :  { %1397 = shalt.err (!%p1394_p4)
}
  0x2a   :  { %s1398_s20 = scalar_lea.vmem %s42_s11, 16  ;;  %s1402_s0 = scalar_lea.vmem %s42_s11, 32 }
  0x2b   :  { %p1399_p5 = scmp.ne.s32.totalorder %s42_s11, %s1398_s20  ;;  %p1403_p6 = scmp.lt.s32.totalorder %s42_s11, %s42_s11 }
  0x2c   :  { %p1404_p7 = scmp.lt.s32.totalorder %s1402_s0, %s1398_s20 }
  0x2e   :  { %p1405_p8 = por %p1404_p7, %p1403_p6 }
  0x30   :  { %p1406_p9 = pnand %p1405_p8, %p1399_p5 }
  0x32   :  { %1409 = shalt.err (!%p1406_p9)
}
  0x33   :  { %44 = dma.hbm_to_vmem [thread:$0]  %s1662_s2, 16, %s42_s11, [#allocation6]  }
  0x34   :  { %1432 = dma.done.wait [#allocation3], 3200  }
  0x35   :  { %1433 = vsyncadd [#allocation3], 4294964096 }
  0x36   :  { %1434 = dma.done.wait [#allocation6], 144  }
  0x37   :  { %1435 = vsyncadd [#allocation6], 4294967152  ;;  %vm320_vm0 = vcmask 1043456   ;;  %v1443_v0 = vmov 0.0   ;;  %vm1444_vm1 = vmmov 0   ;;  %vm321_vm2 = vcmask 1044480  }
  0x38   :  { %1205 = vmatprep.subr.bf16.mxu0 %v1443_v0  ;;  %1307 = vmatprep.subr.bf16.mxu1 %v1443_v0  ;;  %v1445_v1 = vmov 65535   ;;  %v1318_v4 = vld [vmem:[#allocation5] sm:$0x1f]   ;;  %v1319_v6 = vld [vmem:[#allocation2] sm:$0xff]   ;;  %vm244_vm3 = vcmask 72704   ;;  %v1322_v9 = vld [vmem:[#allocation2 + $0x70] sm:$0xff]  }
  0x39   :  { %1207 = vmatprep.mubr.msk.bf16.mxu0 %vm1444_vm1, %v1443_v0  ;;  %1259 = vmatprep.mubr.msk.bf16.mxu1 %vm1444_vm1, %v1443_v0  ;;  %v322_v2 = vsel %vm320_vm0, 4294967295, %v1445_v1  ;;  %v1320_v7 = vld [vmem:[#allocation2 + $0x68] sm:$0xff]   ;;  %v1323_v10 = vld [vmem:[#allocation2 + $0x10] sm:$0xff]   ;;  %v1324_v11 = vld [vmem:[#allocation2 + $0x78] sm:$0xff]   ;;  %s1446_s2 = smov [#allocation8]  }
  0x3a   :  { %v323_v3 = vsel %vm321_vm2, %v322_v2, 0  ;;  %v1321_v8 = vld [vmem:[#allocation2 + $0x8] sm:$0xff]   ;;  %v1325_v12 = vld [vmem:[#allocation2 + $0x18] sm:$0xff]   ;;  %v1326_v13 = vld [vmem:[#allocation2 + $0x80] sm:$0xff]   ;;  %s865_s22 = sshll.u32 %s1446_s2, 4  ;;  %s866_s22 = int_to_ptr.vmem [resolvable:$true] %s865_s22 }
  0x3b   :  { %v325_v5 = vand.u32 %v1318_v4, %v323_v3  ;;  %v1327_v14 = vld [vmem:[#allocation2 + $0x20] sm:$0xff]   ;;  %v1328_v15 = vld [vmem:[#allocation2 + $0x88] sm:$0xff]   ;;  %v1330_v17 = vld [vmem:[#allocation2 + $0x90] sm:$0xff]   ;;  %s1410_s23 = scalar_lea.vmem %s866_s22, 3200  ;;  %p1415_p11 = scmp.lt.s32.totalorder %s866_s22, %s866_s22 }
  0x3c   :  { %v1329_v16 = vld [vmem:[#allocation2 + $0x28] sm:$0xff]   ;;  %v1331_v18 = vld [vmem:[#allocation2 + $0x30] sm:$0xff]   ;;  %v1332_v19 = vld [vmem:[#allocation2 + $0x98] sm:$0xff]   ;;  %p1411_p10 = scmp.ne.s32.totalorder %s866_s22, %s1410_s23  ;;  %p1416_p12 = scmp.lt.s32.totalorder %s1410_s23, %s1410_s23 }
  0x3d   :  { %1206 = vmatpush3.bf16.msra.mxu0 %v325_v5  ;;  %1308 = vmatpush3.bf16.msra.mxu1 %v325_v5  ;;  %v1333_v20 = vld [vmem:[#allocation2 + $0x38] sm:$0xff]   ;;  %v1334_v21 = vld [vmem:[#allocation2 + $0xa0] sm:$0xff]   ;;  %v1336_v23 = vld [vmem:[#allocation2 + $0xa8] sm:$0xff]  }
  0x3e   :  { %v1335_v22 = vld [vmem:[#allocation2 + $0x40] sm:$0xff]   ;;  %v1337_v24 = vld [vmem:[#allocation2 + $0x48] sm:$0xff]   ;;  %v1338_v25 = vld [vmem:[#allocation2 + $0xb0] sm:$0xff]   ;;  %p1417_p13 = por %p1416_p12, %p1415_p11 }
  0x3f   :  { %v1339_v26 = vld [vmem:[#allocation2 + $0x50] sm:$0xff]   ;;  %v1340_v27 = vld [vmem:[#allocation2 + $0xb8] sm:$0xff]   ;;  %v1342_v29 = vld [vmem:[#allocation2 + $0xc0] sm:$0xff]  }
  0x40   :  { %1208 = vmatmul.mubr.msk.bf16.vlgmr.msra.gmra.mrb[0].mxu0 %vm244_vm3, %v1319_v6  ;;  %1260 = vmatmul.mubr.msk.bf16.vlgmr.msra.gmra.mrb[0].mxu1 %vm244_vm3, %v1320_v7  ;;  %v1341_v28 = vld [vmem:[#allocation2 + $0x58] sm:$0xff]   ;;  %v1343_v30 = vld [vmem:[#allocation2 + $0x60] sm:$0xff]   ;;  %v1593_v31 = vld [vmem:[#allocation7] ss:$0 sm:$0xff]  ;;  %p1418_p0 = pnand %p1417_p13, %p1411_p10 }
  0x41   :  { %1211 = vmatprep.mubr.msk.bf16.mxu0 %vm1444_vm1, %v1443_v0  ;;  %1263 = vmatprep.mubr.msk.bf16.mxu1 %vm1444_vm1, %v1443_v0 }
  0x48   :  { %1212 = vmatmul.mubr.msk.bf16.gmra.mrb[4].mxu0 %vm244_vm3, %v1321_v8  ;;  %1264 = vmatmul.mubr.msk.bf16.gmra.mrb[4].mxu1 %vm244_vm3, %v1322_v9 }
  0x49   :  { %1215 = vmatprep.mubr.msk.bf16.mxu0 %vm1444_vm1, %v1443_v0  ;;  %1267 = vmatprep.mubr.msk.bf16.mxu1 %vm1444_vm1, %v1443_v0 }
  0x50   :  { %1216 = vmatmul.mubr.msk.bf16.gmra.mrb[8].mxu0 %vm244_vm3, %v1323_v10  ;;  %1268 = vmatmul.mubr.msk.bf16.gmra.mrb[8].mxu1 %vm244_vm3, %v1324_v11 }
  0x51   :  { %1219 = vmatprep.mubr.msk.bf16.mxu0 %vm1444_vm1, %v1443_v0  ;;  %1271 = vmatprep.mubr.msk.bf16.mxu1 %vm1444_vm1, %v1443_v0 }
  0x58   :  { %1220 = vmatmul.mubr.msk.bf16.gmra.mrb[12].mxu0 %vm244_vm3, %v1325_v12  ;;  %1272 = vmatmul.mubr.msk.bf16.gmra.mrb[12].mxu1 %vm244_vm3, %v1326_v13 }
  0x59   :  { %1223 = vmatprep.mubr.msk.bf16.mxu0 %vm1444_vm1, %v1443_v0  ;;  %1275 = vmatprep.mubr.msk.bf16.mxu1 %vm1444_vm1, %v1443_v0 }
  0x60   :  { %1224 = vmatmul.mubr.msk.bf16.gmra.mrb[16].mxu0 %vm244_vm3, %v1327_v14  ;;  %1276 = vmatmul.mubr.msk.bf16.gmra.mrb[16].mxu1 %vm244_vm3, %v1328_v15 }
  0x61   :  { %1227 = vmatprep.mubr.msk.bf16.mxu0 %vm1444_vm1, %v1443_v0  ;;  %1279 = vmatprep.mubr.msk.bf16.mxu1 %vm1444_vm1, %v1443_v0 }
  0x68   :  { %1228 = vmatmul.mubr.msk.bf16.gmra.mrb[20].mxu0 %vm244_vm3, %v1329_v16  ;;  %1280 = vmatmul.mubr.msk.bf16.gmra.mrb[20].mxu1 %vm244_vm3, %v1330_v17 }
  0x69   :  { %1231 = vmatprep.mubr.msk.bf16.mxu0 %vm1444_vm1, %v1443_v0  ;;  %1283 = vmatprep.mubr.msk.bf16.mxu1 %vm1444_vm1, %v1443_v0 }
  0x70   :  { %1232 = vmatmul.mubr.msk.bf16.gmra.mrb[24].mxu0 %vm244_vm3, %v1331_v18  ;;  %1284 = vmatmul.mubr.msk.bf16.gmra.mrb[24].mxu1 %vm244_vm3, %v1332_v19 }
  0x71   :  { %1235 = vmatprep.mubr.msk.bf16.mxu0 %vm1444_vm1, %v1443_v0  ;;  %1287 = vmatprep.mubr.msk.bf16.mxu1 %vm1444_vm1, %v1443_v0 }
  0x78   :  { %1236 = vmatmul.mubr.msk.bf16.gmra.mrb[28].mxu0 %vm244_vm3, %v1333_v20  ;;  %1288 = vmatmul.mubr.msk.bf16.gmra.mrb[28].mxu1 %vm244_vm3, %v1334_v21 }
  0x79   :  { %1239 = vmatprep.mubr.msk.bf16.mxu0 %vm1444_vm1, %v1443_v0  ;;  %1291 = vmatprep.mubr.msk.bf16.mxu1 %vm1444_vm1, %v1443_v0 }
  0x80   :  { %1240 = vmatmul.mubr.msk.bf16.gmra.mrb[32].mxu0 %vm244_vm3, %v1335_v22  ;;  %1292 = vmatmul.mubr.msk.bf16.gmra.mrb[32].mxu1 %vm244_vm3, %v1336_v23 }
  0x81   :  { %1243 = vmatprep.mubr.msk.bf16.mxu0 %vm1444_vm1, %v1443_v0  ;;  %1295 = vmatprep.mubr.msk.bf16.mxu1 %vm1444_vm1, %v1443_v0 }
  0x88   :  { %1244 = vmatmul.mubr.msk.bf16.gmra.mrb[36].mxu0 %vm244_vm3, %v1337_v24  ;;  %1296 = vmatmul.mubr.msk.bf16.gmra.mrb[36].mxu1 %vm244_vm3, %v1338_v25 }
  0x89   :  { %1247 = vmatprep.mubr.msk.bf16.mxu0 %vm1444_vm1, %v1443_v0  ;;  %1299 = vmatprep.mubr.msk.bf16.mxu1 %vm1444_vm1, %v1443_v0 }
  0x90   :  { %1248 = vmatmul.mubr.msk.bf16.gmra.mrb[40].mxu0 %vm244_vm3, %v1339_v26  ;;  %1300 = vmatmul.mubr.msk.bf16.gmra.mrb[40].mxu1 %vm244_vm3, %v1340_v27 }
  0x91   :  { %1251 = vmatprep.mubr.msk.bf16.mxu0 %vm1444_vm1, %v1443_v0  ;;  %1303 = vmatprep.mubr.msk.bf16.mxu1 %vm1444_vm1, %v1443_v0 }
  0x98   :  { %1252 = vmatmul.mubr.msk.bf16.gmra.mrb[44].mxu0 %vm244_vm3, %v1341_v28  ;;  %1304 = vmatmul.mubr.msk.bf16.gmra.mrb[44].mxu1 %vm244_vm3, %v1342_v29 }
  0x99   :  { %1255 = vmatprep.mubr.msk.bf16.mxu0 %vm1444_vm1, %v1443_v0 }
  0xa0   :  { %1256 = vmatmul.mubr.msk.bf16.gmra.mrb[48].mxu0 %vm244_vm3, %v1343_v30 }
 0x113   :  { %v361_v32 = vpop.f32.mrb[0].mxu0  ;;  %v465_v33 = vpop.f32.mrb[0].mxu1 }
 0x114   :  { %v362_v34 = vadd.f32 %v1593_v31, %v361_v32  ;;  %v1209_v35 = vpop.f32.mrb[1].mxu0  ;;  %v466_v36 = vadd.f32 %v1593_v31, %v465_v33  ;;  %v1261_v37 = vpop.f32.mrb[1].mxu1 }
 0x115   :  { %v364_v38 = vpop.f32.mrb[2].mxu0  ;;  %v468_v39 = vpop.f32.mrb[2].mxu1 }
 0x116   :  { %v365_v40 = vadd.f32 %v1593_v31, %v364_v38  ;;  %v1210_v41 = vpop.f32.mrb[3].mxu0  ;;  %v586_v42 = vmax.f32 %v466_v36, 0.0  ;;  %v469_v43 = vadd.f32 %v1593_v31, %v468_v39  ;;  %v1262_v44 = vpop.f32.mrb[3].mxu1  ;;  %v560_v45 = vmax.f32 %v362_v34, 0.0 }
 0x118   :  { %v561_v46 = vmax.f32 %v365_v40, 0.0  ;;  %v587_v47 = vmax.f32 %v469_v43, 0.0 }
 0x11a   :  { %v1033_v48 = vpack.c.bf16 %v561_v46, %v560_v45  ;;  %v1098_v49 = vpack.c.bf16 %v587_v47, %v586_v42 }
 0x11b   :  { %v369_v50 = vpop.f32.mrb[4].mxu0  ;;  %v473_v51 = vpop.f32.mrb[4].mxu1 }
 0x11c   :  { %1034 = vst [vmem:[#allocation8] sm:$0xff] %v1033_v48   ;;  %1167 = vst [vmem:[#allocation8 + $0x68] sm:$0xff] %v1098_v49   ;;  %v370_v52 = vadd.f32 %v1593_v31, %v369_v50  ;;  %v1213_v53 = vpop.f32.mrb[5].mxu0  ;;  %v474_v54 = vadd.f32 %v1593_v31, %v473_v51  ;;  %v1265_v55 = vpop.f32.mrb[5].mxu1 }
 0x11d   :  { %v372_v56 = vpop.f32.mrb[6].mxu0  ;;  %v476_v57 = vpop.f32.mrb[6].mxu1 }
 0x11e   :  { %v373_v58 = vadd.f32 %v1593_v31, %v372_v56  ;;  %v1214_v59 = vpop.f32.mrb[7].mxu0  ;;  %v588_v60 = vmax.f32 %v474_v54, 0.0  ;;  %v477_v61 = vadd.f32 %v1593_v31, %v476_v57  ;;  %v1266_v62 = vpop.f32.mrb[7].mxu1  ;;  %v562_v63 = vmax.f32 %v370_v52, 0.0 }
 0x120   :  { %v563_v0 = vmax.f32 %v373_v58, 0.0  ;;  %v589_v1 = vmax.f32 %v477_v61, 0.0 }
 0x122   :  { %v1038_v2 = vpack.c.bf16 %v563_v0, %v562_v63  ;;  %v1103_v3 = vpack.c.bf16 %v589_v1, %v588_v60 }
 0x123   :  { %v377_v4 = vpop.f32.mrb[8].mxu0  ;;  %v481_v5 = vpop.f32.mrb[8].mxu1 }
 0x124   :  { %1155 = vst [vmem:[#allocation8 + $0x8] sm:$0xff] %v1038_v2   ;;  %1168 = vst [vmem:[#allocation8 + $0x70] sm:$0xff] %v1103_v3   ;;  %v378_v6 = vadd.f32 %v1593_v31, %v377_v4  ;;  %v1217_v7 = vpop.f32.mrb[9].mxu0  ;;  %v482_v8 = vadd.f32 %v1593_v31, %v481_v5  ;;  %v1269_v9 = vpop.f32.mrb[9].mxu1 }
 0x125   :  { %v380_v10 = vpop.f32.mrb[10].mxu0  ;;  %v484_v11 = vpop.f32.mrb[10].mxu1 }
 0x126   :  { %v381_v12 = vadd.f32 %v1593_v31, %v380_v10  ;;  %v1218_v13 = vpop.f32.mrb[11].mxu0  ;;  %v590_v14 = vmax.f32 %v482_v8, 0.0  ;;  %v485_v15 = vadd.f32 %v1593_v31, %v484_v11  ;;  %v1270_v16 = vpop.f32.mrb[11].mxu1  ;;  %v564_v17 = vmax.f32 %v378_v6, 0.0 }
 0x128   :  { %v565_v18 = vmax.f32 %v381_v12, 0.0  ;;  %v591_v19 = vmax.f32 %v485_v15, 0.0 }
 0x12a   :  { %v1043_v20 = vpack.c.bf16 %v565_v18, %v564_v17  ;;  %v1108_v21 = vpack.c.bf16 %v591_v19, %v590_v14 }
 0x12b   :  { %v385_v22 = vpop.f32.mrb[12].mxu0  ;;  %v489_v23 = vpop.f32.mrb[12].mxu1 }
 0x12c   :  { %1156 = vst [vmem:[#allocation8 + $0x10] sm:$0xff] %v1043_v20   ;;  %1169 = vst [vmem:[#allocation8 + $0x78] sm:$0xff] %v1108_v21   ;;  %v386_v24 = vadd.f32 %v1593_v31, %v385_v22  ;;  %v1221_v25 = vpop.f32.mrb[13].mxu0  ;;  %v490_v26 = vadd.f32 %v1593_v31, %v489_v23  ;;  %v1273_v27 = vpop.f32.mrb[13].mxu1 }
 0x12d   :  { %v388_v28 = vpop.f32.mrb[14].mxu0  ;;  %v492_v29 = vpop.f32.mrb[14].mxu1 }
 0x12e   :  { %v389_v30 = vadd.f32 %v1593_v31, %v388_v28  ;;  %v1222_v32 = vpop.f32.mrb[15].mxu0  ;;  %v592_v33 = vmax.f32 %v490_v26, 0.0  ;;  %v493_v34 = vadd.f32 %v1593_v31, %v492_v29  ;;  %v1274_v35 = vpop.f32.mrb[15].mxu1  ;;  %v566_v36 = vmax.f32 %v386_v24, 0.0 }
 0x130   :  { %v567_v37 = vmax.f32 %v389_v30, 0.0  ;;  %v593_v38 = vmax.f32 %v493_v34, 0.0 }
 0x132   :  { %v1048_v39 = vpack.c.bf16 %v567_v37, %v566_v36  ;;  %v1113_v40 = vpack.c.bf16 %v593_v38, %v592_v33 }
 0x133   :  { %v393_v41 = vpop.f32.mrb[16].mxu0  ;;  %v497_v42 = vpop.f32.mrb[16].mxu1 }
 0x134   :  { %1157 = vst [vmem:[#allocation8 + $0x18] sm:$0xff] %v1048_v39   ;;  %1170 = vst [vmem:[#allocation8 + $0x80] sm:$0xff] %v1113_v40   ;;  %v394_v43 = vadd.f32 %v1593_v31, %v393_v41  ;;  %v1225_v44 = vpop.f32.mrb[17].mxu0  ;;  %v498_v45 = vadd.f32 %v1593_v31, %v497_v42  ;;  %v1277_v46 = vpop.f32.mrb[17].mxu1 }
 0x135   :  { %v396_v47 = vpop.f32.mrb[18].mxu0  ;;  %v500_v48 = vpop.f32.mrb[18].mxu1 }
 0x136   :  { %v397_v49 = vadd.f32 %v1593_v31, %v396_v47  ;;  %v1226_v50 = vpop.f32.mrb[19].mxu0  ;;  %v594_v51 = vmax.f32 %v498_v45, 0.0  ;;  %v501_v52 = vadd.f32 %v1593_v31, %v500_v48  ;;  %v1278_v53 = vpop.f32.mrb[19].mxu1  ;;  %v568_v54 = vmax.f32 %v394_v43, 0.0 }
 0x138   :  { %v569_v55 = vmax.f32 %v397_v49, 0.0  ;;  %v595_v56 = vmax.f32 %v501_v52, 0.0 }
 0x13a   :  { %v1053_v57 = vpack.c.bf16 %v569_v55, %v568_v54  ;;  %v1118_v58 = vpack.c.bf16 %v595_v56, %v594_v51 }
 0x13b   :  { %v401_v59 = vpop.f32.mrb[20].mxu0  ;;  %v505_v60 = vpop.f32.mrb[20].mxu1 }
 0x13c   :  { %1158 = vst [vmem:[#allocation8 + $0x20] sm:$0xff] %v1053_v57   ;;  %1171 = vst [vmem:[#allocation8 + $0x88] sm:$0xff] %v1118_v58   ;;  %v402_v61 = vadd.f32 %v1593_v31, %v401_v59  ;;  %v1229_v62 = vpop.f32.mrb[21].mxu0  ;;  %v506_v63 = vadd.f32 %v1593_v31, %v505_v60  ;;  %v1281_v0 = vpop.f32.mrb[21].mxu1 }
 0x13d   :  { %v404_v1 = vpop.f32.mrb[22].mxu0  ;;  %v508_v2 = vpop.f32.mrb[22].mxu1 }
 0x13e   :  { %v405_v3 = vadd.f32 %v1593_v31, %v404_v1  ;;  %v1230_v4 = vpop.f32.mrb[23].mxu0  ;;  %v596_v5 = vmax.f32 %v506_v63, 0.0  ;;  %v509_v6 = vadd.f32 %v1593_v31, %v508_v2  ;;  %v1282_v7 = vpop.f32.mrb[23].mxu1  ;;  %v570_v8 = vmax.f32 %v402_v61, 0.0 }
 0x140   :  { %v571_v9 = vmax.f32 %v405_v3, 0.0  ;;  %v597_v10 = vmax.f32 %v509_v6, 0.0 }
 0x142   :  { %v1058_v11 = vpack.c.bf16 %v571_v9, %v570_v8  ;;  %v1123_v12 = vpack.c.bf16 %v597_v10, %v596_v5 }
 0x143   :  { %v409_v13 = vpop.f32.mrb[24].mxu0  ;;  %v513_v14 = vpop.f32.mrb[24].mxu1 }
 0x144   :  { %1159 = vst [vmem:[#allocation8 + $0x28] sm:$0xff] %v1058_v11   ;;  %1172 = vst [vmem:[#allocation8 + $0x90] sm:$0xff] %v1123_v12   ;;  %v410_v15 = vadd.f32 %v1593_v31, %v409_v13  ;;  %v1233_v16 = vpop.f32.mrb[25].mxu0  ;;  %v514_v17 = vadd.f32 %v1593_v31, %v513_v14  ;;  %v1285_v18 = vpop.f32.mrb[25].mxu1 }
 0x145   :  { %v412_v19 = vpop.f32.mrb[26].mxu0  ;;  %v516_v20 = vpop.f32.mrb[26].mxu1 }
 0x146   :  { %v413_v21 = vadd.f32 %v1593_v31, %v412_v19  ;;  %v1234_v22 = vpop.f32.mrb[27].mxu0  ;;  %v598_v23 = vmax.f32 %v514_v17, 0.0  ;;  %v517_v24 = vadd.f32 %v1593_v31, %v516_v20  ;;  %v1286_v25 = vpop.f32.mrb[27].mxu1  ;;  %v572_v26 = vmax.f32 %v410_v15, 0.0 }
 0x148   :  { %v573_v27 = vmax.f32 %v413_v21, 0.0  ;;  %v599_v28 = vmax.f32 %v517_v24, 0.0 }
 0x14a   :  { %v1063_v29 = vpack.c.bf16 %v573_v27, %v572_v26  ;;  %v1128_v30 = vpack.c.bf16 %v599_v28, %v598_v23 }
 0x14b   :  { %v417_v32 = vpop.f32.mrb[28].mxu0  ;;  %v521_v33 = vpop.f32.mrb[28].mxu1 }
 0x14c   :  { %1160 = vst [vmem:[#allocation8 + $0x30] sm:$0xff] %v1063_v29   ;;  %1173 = vst [vmem:[#allocation8 + $0x98] sm:$0xff] %v1128_v30   ;;  %v418_v34 = vadd.f32 %v1593_v31, %v417_v32  ;;  %v1237_v35 = vpop.f32.mrb[29].mxu0  ;;  %v522_v36 = vadd.f32 %v1593_v31, %v521_v33  ;;  %v1289_v37 = vpop.f32.mrb[29].mxu1 }
 0x14d   :  { %v420_v38 = vpop.f32.mrb[30].mxu0  ;;  %v524_v39 = vpop.f32.mrb[30].mxu1 }
 0x14e   :  { %v421_v40 = vadd.f32 %v1593_v31, %v420_v38  ;;  %v1238_v41 = vpop.f32.mrb[31].mxu0  ;;  %v600_v42 = vmax.f32 %v522_v36, 0.0  ;;  %v525_v43 = vadd.f32 %v1593_v31, %v524_v39  ;;  %v1290_v44 = vpop.f32.mrb[31].mxu1  ;;  %v574_v45 = vmax.f32 %v418_v34, 0.0 }
 0x150   :  { %v575_v46 = vmax.f32 %v421_v40, 0.0  ;;  %v601_v47 = vmax.f32 %v525_v43, 0.0 }
 0x152   :  { %v1068_v48 = vpack.c.bf16 %v575_v46, %v574_v45  ;;  %v1133_v49 = vpack.c.bf16 %v601_v47, %v600_v42 }
 0x153   :  { %v425_v50 = vpop.f32.mrb[32].mxu0  ;;  %v529_v51 = vpop.f32.mrb[32].mxu1 }
 0x154   :  { %1161 = vst [vmem:[#allocation8 + $0x38] sm:$0xff] %v1068_v48   ;;  %1174 = vst [vmem:[#allocation8 + $0xa0] sm:$0xff] %v1133_v49   ;;  %v426_v52 = vadd.f32 %v1593_v31, %v425_v50  ;;  %v1241_v53 = vpop.f32.mrb[33].mxu0  ;;  %v530_v54 = vadd.f32 %v1593_v31, %v529_v51  ;;  %v1293_v55 = vpop.f32.mrb[33].mxu1 }
 0x155   :  { %v428_v56 = vpop.f32.mrb[34].mxu0  ;;  %v532_v57 = vpop.f32.mrb[34].mxu1 }
 0x156   :  { %v429_v58 = vadd.f32 %v1593_v31, %v428_v56  ;;  %v1242_v59 = vpop.f32.mrb[35].mxu0  ;;  %v602_v60 = vmax.f32 %v530_v54, 0.0  ;;  %v533_v61 = vadd.f32 %v1593_v31, %v532_v57  ;;  %v1294_v62 = vpop.f32.mrb[35].mxu1  ;;  %v576_v63 = vmax.f32 %v426_v52, 0.0 }
 0x158   :  { %v577_v0 = vmax.f32 %v429_v58, 0.0  ;;  %v603_v1 = vmax.f32 %v533_v61, 0.0 }
 0x15a   :  { %v1073_v2 = vpack.c.bf16 %v577_v0, %v576_v63  ;;  %v1138_v3 = vpack.c.bf16 %v603_v1, %v602_v60 }
 0x15b   :  { %v433_v4 = vpop.f32.mrb[36].mxu0  ;;  %v537_v5 = vpop.f32.mrb[36].mxu1 }
 0x15c   :  { %1162 = vst [vmem:[#allocation8 + $0x40] sm:$0xff] %v1073_v2   ;;  %1175 = vst [vmem:[#allocation8 + $0xa8] sm:$0xff] %v1138_v3   ;;  %v434_v6 = vadd.f32 %v1593_v31, %v433_v4  ;;  %v1245_v7 = vpop.f32.mrb[37].mxu0  ;;  %v538_v8 = vadd.f32 %v1593_v31, %v537_v5  ;;  %v1297_v9 = vpop.f32.mrb[37].mxu1 }
 0x15d   :  { %v436_v10 = vpop.f32.mrb[38].mxu0  ;;  %v540_v11 = vpop.f32.mrb[38].mxu1 }
 0x15e   :  { %v437_v12 = vadd.f32 %v1593_v31, %v436_v10  ;;  %v1246_v13 = vpop.f32.mrb[39].mxu0  ;;  %v604_v14 = vmax.f32 %v538_v8, 0.0  ;;  %v541_v15 = vadd.f32 %v1593_v31, %v540_v11  ;;  %v1298_v16 = vpop.f32.mrb[39].mxu1  ;;  %v578_v17 = vmax.f32 %v434_v6, 0.0 }
 0x160   :  { %v579_v18 = vmax.f32 %v437_v12, 0.0  ;;  %v605_v19 = vmax.f32 %v541_v15, 0.0 }
 0x162   :  { %v1078_v20 = vpack.c.bf16 %v579_v18, %v578_v17  ;;  %v1143_v21 = vpack.c.bf16 %v605_v19, %v604_v14 }
 0x163   :  { %v441_v22 = vpop.f32.mrb[40].mxu0  ;;  %v545_v23 = vpop.f32.mrb[40].mxu1 }
 0x164   :  { %1163 = vst [vmem:[#allocation8 + $0x48] sm:$0xff] %v1078_v20   ;;  %1176 = vst [vmem:[#allocation8 + $0xb0] sm:$0xff] %v1143_v21   ;;  %v442_v24 = vadd.f32 %v1593_v31, %v441_v22  ;;  %v1249_v25 = vpop.f32.mrb[41].mxu0  ;;  %v546_v26 = vadd.f32 %v1593_v31, %v545_v23  ;;  %v1301_v27 = vpop.f32.mrb[41].mxu1 }
 0x165   :  { %v444_v28 = vpop.f32.mrb[42].mxu0  ;;  %v548_v29 = vpop.f32.mrb[42].mxu1 }
 0x166   :  { %v445_v30 = vadd.f32 %v1593_v31, %v444_v28  ;;  %v1250_v32 = vpop.f32.mrb[43].mxu0  ;;  %v606_v33 = vmax.f32 %v546_v26, 0.0  ;;  %v549_v34 = vadd.f32 %v1593_v31, %v548_v29  ;;  %v1302_v35 = vpop.f32.mrb[43].mxu1  ;;  %v580_v36 = vmax.f32 %v442_v24, 0.0 }
 0x168   :  { %v581_v37 = vmax.f32 %v445_v30, 0.0  ;;  %v607_v38 = vmax.f32 %v549_v34, 0.0 }
 0x16a   :  { %v1083_v39 = vpack.c.bf16 %v581_v37, %v580_v36  ;;  %v1148_v40 = vpack.c.bf16 %v607_v38, %v606_v33 }
 0x16b   :  { %v449_v41 = vpop.f32.mrb[44].mxu0  ;;  %v553_v42 = vpop.f32.mrb[44].mxu1 }
 0x16c   :  { %1164 = vst [vmem:[#allocation8 + $0x50] sm:$0xff] %v1083_v39   ;;  %1177 = vst [vmem:[#allocation8 + $0xb8] sm:$0xff] %v1148_v40   ;;  %v450_v43 = vadd.f32 %v1593_v31, %v449_v41  ;;  %v1253_v44 = vpop.f32.mrb[45].mxu0  ;;  %v554_v45 = vadd.f32 %v1593_v31, %v553_v42  ;;  %v1305_v46 = vpop.f32.mrb[45].mxu1 }
 0x16d   :  { %v452_v47 = vpop.f32.mrb[46].mxu0  ;;  %v556_v48 = vpop.f32.mrb[46].mxu1 }
 0x16e   :  { %v453_v49 = vadd.f32 %v1593_v31, %v452_v47  ;;  %v1254_v50 = vpop.f32.mrb[47].mxu0  ;;  %v608_v51 = vmax.f32 %v554_v45, 0.0  ;;  %v557_v52 = vadd.f32 %v1593_v31, %v556_v48  ;;  %v1306_v53 = vpop.f32.mrb[47].mxu1  ;;  %v582_v54 = vmax.f32 %v450_v43, 0.0 }
 0x170   :  { %v583_v55 = vmax.f32 %v453_v49, 0.0  ;;  %v609_v56 = vmax.f32 %v557_v52, 0.0 }
 0x172   :  { %v1088_v57 = vpack.c.bf16 %v583_v55, %v582_v54  ;;  %v1153_v58 = vpack.c.bf16 %v609_v56, %v608_v51 }
 0x173   :  { %v457_v59 = vpop.f32.mrb[48].mxu0 }
 0x174   :  { %1165 = vst [vmem:[#allocation8 + $0x58] sm:$0xff] %v1088_v57   ;;  %1178 = vst [vmem:[#allocation8 + $0xc0] sm:$0xff] %v1153_v58   ;;  %v458_v60 = vadd.f32 %v1593_v31, %v457_v59  ;;  %v1257_v61 = vpop.f32.mrb[49].mxu0 }
 0x175   :  { %v460_v62 = vpop.f32.mrb[50].mxu0 }
 0x176   :  { %v461_v63 = vadd.f32 %v1593_v31, %v460_v62  ;;  %v1258_v0 = vpop.f32.mrb[51].mxu0  ;;  %v584_v1 = vmax.f32 %v458_v60, 0.0 }
 0x178   :  { %v585_v2 = vmax.f32 %v461_v63, 0.0 }
 0x17a   :  { %v1093_v3 = vpack.c.bf16 %v585_v2, %v584_v1 }
 0x17c   :  { %1166 = vst [vmem:[#allocation8 + $0x60] sm:$0xff] %v1093_v3  }
 0x17d   :  { %1421 = shalt.err (!%p1418_p0)
}
 0x17e   :  { %s1422_s28 = scalar_lea.hbm %s1663_s3, 3200 }
 0x17f   :  { %p1423_p1 = scmp.ne.s32.totalorder %s1663_s3, %s1422_s28  ;;  %p1426_p2 = scmp.lt.u32.totalorder %s1422_s28, %s1663_s3 }
 0x181   :  { %p1428_p3 = pnand %p1426_p2, %p1423_p1 }
 0x183   :  { %1431 = shalt.err (!%p1428_p3)
}
 0x184   :  { %871 = dma.vmem_to_hbm [thread:$0]  %s866_s22, 3200, %s1663_s3, [#allocation4], %s1440_s24, %s1440_s24, %s1441_s25  }
 0x185   :  { %1436 = dma.done.wait [#allocation4], 3200  }
 0x186   :  { %1437 = vsyncadd [#allocation4], 4294964096 }
 0x187   :  { %875 = vsyncpa [#allocation3], 1 }
 0x188   :  { %876 = vsyncpa [#allocation6], 1 }
 0x189   :  { %877 = vsyncpa [#allocation4], 1 }

// kernel: autoencoder_forward.7
= control target key start
LH: loop header
LB: loop body
LE: loop exit
PB: predicated region body
PF: predicated region fallthrough
CT: control target
= control target key end

     0   :  { %8 = vsyncpa [#allocation3], 0  ;;  %s781_s0 = inlined_call_operand.hbm [shape: bf16[112,144], index: 0, kind: input, shape index: {}]   ;;  %s782_s1 = inlined_call_operand.hbm [shape: bf16[144,128], index: 1, kind: input, shape index: {}]   ;;  %s783_s2 = inlined_call_operand.hbm [shape: f32[1,128], index: 2, kind: input, shape index: {}]   ;;  %s784_s3 = inlined_call_operand.hbm [shape: bf16[112,128], index: 3, kind: output, shape index: {}]  }
   0x1   :  { %9 = vsyncpa [#allocation6], 0 }
   0x2   :  { %10 = vsyncpa [#allocation4], 0  ;;  %s675_s12 = smov [#allocation5]   ;;  %s581_s16 = scalar_lea.hbm %s782_s1, 1152 }
   0x3   :  { %s28_s13 = sshll.u32 %s675_s12, 4  ;;  %p582_p0 = scmp.ne.s32.totalorder %s782_s1, %s581_s16  ;;  %s29_s13 = int_to_ptr.vmem [resolvable:$true] %s28_s13 }
   0x4   :  { %p585_p1 = scmp.lt.u32.totalorder %s581_s16, %s782_s1 }
   0x6   :  { %p587_p2 = pnand %p585_p1, %p582_p0 }
   0x8   :  { %590 = shalt.err (!%p587_p2)
}
   0x9   :  { %s591_s21 = scalar_lea.vmem %s29_s13, 1152  ;;  %p596_p4 = scmp.lt.s32.totalorder %s29_s13, %s29_s13 }
   0xa   :  { %p592_p3 = scmp.ne.s32.totalorder %s29_s13, %s591_s21  ;;  %p597_p5 = scmp.lt.s32.totalorder %s591_s21, %s591_s21 }
   0xc   :  { %p598_p6 = por %p597_p5, %p596_p4 }
   0xe   :  { %p599_p7 = pnand %p598_p6, %p592_p3 }
  0x10   :  { %602 = shalt.err (!%p599_p7)
}
  0x11   :  { %s676_s22 = smov 64   ;;  %s677_s23 = smov 4  }
  0x12   :  { %34 = dma.hbm_to_vmem [thread:$0]  %s782_s1, 1152, %s29_s13, [#allocation6], %s676_s22, %s676_s22, %s677_s23  }
  0x13   :  { %s678_s26 = smov [#allocation2]   ;;  %s603_s30 = scalar_lea.hbm %s781_s0, 1792 }
  0x14   :  { %s16_s27 = sshll.u32 %s678_s26, 4  ;;  %p604_p8 = scmp.ne.s32.totalorder %s781_s0, %s603_s30  ;;  %s17_s27 = int_to_ptr.vmem [resolvable:$true] %s16_s27 }
  0x15   :  { %p607_p9 = scmp.lt.u32.totalorder %s603_s30, %s781_s0 }
  0x17   :  { %p609_p10 = pnand %p607_p9, %p604_p8 }
  0x19   :  { %612 = shalt.err (!%p609_p10)
}
  0x1a   :  { %s613_s8 = scalar_lea.vmem %s17_s27, 1792  ;;  %p618_p12 = scmp.lt.s32.totalorder %s17_s27, %s17_s27 }
  0x1b   :  { %p614_p11 = scmp.ne.s32.totalorder %s17_s27, %s613_s8  ;;  %p619_p13 = scmp.lt.s32.totalorder %s613_s8, %s613_s8 }
  0x1d   :  { %p620_p0 = por %p619_p13, %p618_p12 }
  0x1f   :  { %p621_p1 = pnand %p620_p0, %p614_p11 }
  0x21   :  { %624 = shalt.err (!%p621_p1)
}
  0x22   :  { %s679_s1 = smov 128   ;;  %s680_s9 = smov 8  }
  0x23   :  { %22 = dma.hbm_to_vmem [thread:$0]  %s781_s0, 1792, %s17_s27, [#allocation3], %s679_s1, %s679_s1, %s680_s9  }
  0x24   :  { %s681_s12 = smov [#allocation7]   ;;  %s625_s16 = scalar_lea.hbm %s783_s2, 16 }
  0x25   :  { %s41_s13 = sshll.u32 %s681_s12, 4  ;;  %p626_p2 = scmp.ne.s32.totalorder %s783_s2, %s625_s16  ;;  %s42_s13 = int_to_ptr.vmem [resolvable:$true] %s41_s13 }
  0x26   :  { %p629_p3 = scmp.lt.u32.totalorder %s625_s16, %s783_s2 }
  0x28   :  { %p631_p4 = pnand %p629_p3, %p626_p2 }
  0x2a   :  { %634 = shalt.err (!%p631_p4)
}
  0x2b   :  { %s635_s21 = scalar_lea.vmem %s42_s13, 16  ;;  %s639_s0 = scalar_lea.vmem %s42_s13, 32 }
  0x2c   :  { %p636_p5 = scmp.ne.s32.totalorder %s42_s13, %s635_s21  ;;  %p640_p6 = scmp.lt.s32.totalorder %s42_s13, %s42_s13 }
  0x2d   :  { %p641_p7 = scmp.lt.s32.totalorder %s639_s0, %s635_s21 }
  0x2f   :  { %p642_p8 = por %p641_p7, %p640_p6 }
  0x31   :  { %p643_p9 = pnand %p642_p8, %p636_p5 }
  0x33   :  { %646 = shalt.err (!%p643_p9)
}
  0x34   :  { %44 = dma.hbm_to_vmem [thread:$0]  %s783_s2, 16, %s42_s13, [#allocation6]  }
  0x35   :  { %669 = dma.done.wait [#allocation3], 1792  }
  0x36   :  { %670 = vsyncadd [#allocation3], 4294965504 }
  0x37   :  { %671 = dma.done.wait [#allocation6], 1168  }
  0x38   :  { %672 = vsyncadd [#allocation6], 4294966128  ;;  %v682_v0 = vmov 0   ;;  %v551_v1 = vld [vmem:[#allocation5] sm:$0xff]   ;;  %v552_v2 = vld [vmem:[#allocation5 + $0x8] sm:$0xff]   ;;  %vm211_vm0 = vcmask 130048  }
  0x39   :  { %233 = vmatprep.subr.bf16.mxu0 %v682_v0  ;;  %524 = vmatprep.subr.bf16.mxu1 %v682_v0  ;;  %v553_v3 = vld [vmem:[#allocation5 + $0x10] sm:$0xff]   ;;  %v554_v4 = vld [vmem:[#allocation5 + $0x18] sm:$0xff]   ;;  %v555_v7 = vld [vmem:[#allocation5 + $0x20] sm:$0xff]   ;;  %s683_s2 = smov [#allocation8]  }
  0x3a   :  { %234 = vmatpush1.bf16.msra.mxu0 %v551_v1  ;;  %533 = vmatpush1.bf16.msra.mxu1 %v551_v1  ;;  %v562_v5 = vld [vmem:[#allocation2 + $0x4] ss:$8 sps:$4 sm:$0xff]   ;;  %v556_v8 = vld [vmem:[#allocation5 + $0x28] sm:$0xff]   ;;  %v559_v11 = vld [vmem:[#allocation5 + $0x40] sm:$0xff]   ;;  %s411_s26 = sshll.u32 %s683_s2, 4  ;;  %s412_s26 = int_to_ptr.vmem [resolvable:$true] %s411_s26 }
  0x3b   :  { %235 = vmatprep.subr.bf16.mxu0 %v682_v0  ;;  %525 = vmatprep.subr.bf16.mxu1 %v682_v0  ;;  %v565_v6 = vld [vmem:[#allocation2 + $0x44] ss:$8 sps:$4 sm:$0xff]   ;;  %v560_v12 = vld [vmem:[#allocation2] ss:$8 sps:$4 sm:$0xff]   ;;  %v566_v14 = vld [vmem:[#allocation2 + $0x14] ss:$8 sps:$4 sm:$0xff]   ;;  %p652_p11 = scmp.lt.s32.totalorder %s412_s26, %s412_s26 }
  0x3c   :  { %448 = vmatprep.mubr.msk.bf16.mxu0 %vm211_vm0, %v562_v5  ;;  %452 = vmatprep.mubr.msk.bf16.mxu1 %vm211_vm0, %v565_v6  ;;  %v557_v9 = vld [vmem:[#allocation5 + $0x30] sm:$0xff]   ;;  %v558_v10 = vld [vmem:[#allocation5 + $0x38] sm:$0xff]   ;;  %v569_v15 = vld [vmem:[#allocation2 + $0x54] ss:$8 sps:$4 sm:$0xff]   ;;  %s647_s27 = scalar_lea.vmem %s412_s26, 896 }
  0x3d   :  { %v563_v13 = vld [vmem:[#allocation2 + $0x40] ss:$8 sps:$4 sm:$0xff]   ;;  %v568_v16 = vld [vmem:[#allocation2 + $0x10] ss:$8 sps:$4 sm:$0xff]   ;;  %v572_v18 = vld [vmem:[#allocation2 + $0x24] ss:$8 sps:$4 sm:$0xff]   ;;  %p648_p10 = scmp.ne.s32.totalorder %s412_s26, %s647_s27  ;;  %p653_p12 = scmp.lt.s32.totalorder %s647_s27, %s647_s27 }
  0x3e   :  { %236 = vmatpush1.bf16.msra.mxu0 %v552_v2  ;;  %534 = vmatpush1.bf16.msra.mxu1 %v552_v2  ;;  %v571_v17 = vld [vmem:[#allocation2 + $0x50] ss:$8 sps:$4 sm:$0xff]   ;;  %v575_v19 = vld [vmem:[#allocation2 + $0x64] ss:$8 sps:$4 sm:$0xff]   ;;  %v574_v20 = vld [vmem:[#allocation2 + $0x20] ss:$8 sps:$4 sm:$0xff]  }
  0x3f   :  { %237 = vmatprep.subr.bf16.mxu0 %v682_v0  ;;  %526 = vmatprep.subr.bf16.mxu1 %v682_v0  ;;  %v577_v21 = vld [vmem:[#allocation2 + $0x60] ss:$8 sps:$4 sm:$0xff]   ;;  %v578_v22 = vld [vmem:[#allocation2 + $0x34] ss:$8 sps:$4 sm:$0xff]   ;;  %v580_v23 = vld [vmem:[#allocation2 + $0x30] ss:$8 sps:$4 sm:$0xff]   ;;  %p654_p13 = por %p653_p12, %p652_p11 }
  0x40   :  { %v750_v24 = vld [vmem:[#allocation7] ss:$0 sm:$0xff] }
  0x41   :  { %p655_p0 = pnand %p654_p13, %p648_p10 }
  0x42   :  { %238 = vmatpush1.bf16.msra.mxu0 %v553_v3  ;;  %535 = vmatpush1.bf16.msra.mxu1 %v553_v3 }
  0x43   :  { %239 = vmatprep.subr.bf16.mxu0 %v682_v0  ;;  %527 = vmatprep.subr.bf16.mxu1 %v682_v0 }
  0x46   :  { %240 = vmatpush1.bf16.msra.mxu0 %v554_v4  ;;  %536 = vmatpush1.bf16.msra.mxu1 %v554_v4 }
  0x47   :  { %241 = vmatprep.subr.bf16.mxu0 %v682_v0  ;;  %528 = vmatprep.subr.bf16.mxu1 %v682_v0 }
  0x4a   :  { %242 = vmatpush1.bf16.msra.mxu0 %v555_v7  ;;  %537 = vmatpush1.bf16.msra.mxu1 %v555_v7 }
  0x4b   :  { %243 = vmatprep.subr.bf16.mxu0 %v682_v0  ;;  %529 = vmatprep.subr.bf16.mxu1 %v682_v0 }
  0x4e   :  { %244 = vmatpush1.bf16.msra.mxu0 %v556_v8  ;;  %538 = vmatpush1.bf16.msra.mxu1 %v556_v8 }
  0x4f   :  { %245 = vmatprep.subr.bf16.mxu0 %v682_v0  ;;  %530 = vmatprep.subr.bf16.mxu1 %v682_v0 }
  0x52   :  { %246 = vmatpush1.bf16.msra.mxu0 %v557_v9  ;;  %539 = vmatpush1.bf16.msra.mxu1 %v557_v9 }
  0x53   :  { %247 = vmatprep.subr.bf16.mxu0 %v682_v0  ;;  %531 = vmatprep.subr.bf16.mxu1 %v682_v0 }
  0x56   :  { %248 = vmatpush1.bf16.msra.mxu0 %v558_v10  ;;  %540 = vmatpush1.bf16.msra.mxu1 %v558_v10 }
  0x57   :  { %249 = vmatprep.subr.bf16.mxu0 %v682_v0  ;;  %532 = vmatprep.subr.bf16.mxu1 %v682_v0 }
  0x5a   :  { %250 = vmatpush1.bf16.msra.mxu0 %v559_v11  ;;  %541 = vmatpush1.bf16.msra.mxu1 %v559_v11 }
  0x5d   :  { %266 = vmatmul.mubr.bf16.vlgmr.msra.gmra.mrb[0].mxu0 %v560_v12  ;;  %298 = vmatmul.mubr.bf16.vlgmr.msra.gmra.mrb[0].mxu1 %v563_v13 }
  0x5e   :  { %449 = vmatprep.mubr.msk.bf16.mxu0 %vm211_vm0, %v566_v14  ;;  %453 = vmatprep.mubr.msk.bf16.mxu1 %vm211_vm0, %v569_v15 }
  0x65   :  { %274 = vmatmul.mubr.bf16.gmra.mrb[4].mxu0 %v568_v16  ;;  %306 = vmatmul.mubr.bf16.gmra.mrb[4].mxu1 %v571_v17 }
  0x66   :  { %450 = vmatprep.mubr.msk.bf16.mxu0 %vm211_vm0, %v572_v18  ;;  %454 = vmatprep.mubr.msk.bf16.mxu1 %vm211_vm0, %v575_v19 }
  0x6d   :  { %282 = vmatmul.mubr.bf16.gmra.mrb[8].mxu0 %v574_v20  ;;  %314 = vmatmul.mubr.bf16.gmra.mrb[8].mxu1 %v577_v21 }
  0x6e   :  { %451 = vmatprep.mubr.msk.bf16.mxu0 %vm211_vm0, %v578_v22 }
  0x75   :  { %290 = vmatmul.mubr.bf16.gmra.mrb[12].mxu0 %v580_v23 }
 0x130   :  { %v267_v25 = vpop.f32.mrb[0].mxu0  ;;  %v299_v26 = vpop.f32.mrb[0].mxu1 }
 0x131   :  { %v268_v27 = vadd.f32 %v750_v24, %v267_v25  ;;  %v269_v28 = vpop.f32.mrb[1].mxu0  ;;  %v300_v29 = vadd.f32 %v750_v24, %v299_v26  ;;  %v301_v30 = vpop.f32.mrb[1].mxu1 }
 0x132   :  { %v270_v31 = vpop.f32.mrb[2].mxu0  ;;  %v302_v32 = vpop.f32.mrb[2].mxu1 }
 0x133   :  { %v271_v33 = vadd.f32 %v750_v24, %v270_v31  ;;  %v272_v34 = vpop.f32.mrb[3].mxu0  ;;  %v330_v35 = vmax.f32 %v300_v29, 0.0  ;;  %v303_v36 = vadd.f32 %v750_v24, %v302_v32  ;;  %v304_v37 = vpop.f32.mrb[3].mxu1  ;;  %v322_v38 = vmax.f32 %v268_v27, 0.0 }
 0x135   :  { %v323_v39 = vmax.f32 %v271_v33, 0.0  ;;  %v331_v40 = vmax.f32 %v303_v36, 0.0 }
 0x137   :  { %v486_v41 = vpack.c.bf16 %v323_v39, %v322_v38  ;;  %v506_v42 = vpack.c.bf16 %v331_v40, %v330_v35 }
 0x138   :  { %v275_v43 = vpop.f32.mrb[4].mxu0  ;;  %v307_v44 = vpop.f32.mrb[4].mxu1 }
 0x139   :  { %487 = vst [vmem:[#allocation8] sm:$0xff] %v486_v41   ;;  %521 = vst [vmem:[#allocation8 + $0x20] sm:$0xff] %v506_v42   ;;  %v276_v45 = vadd.f32 %v750_v24, %v275_v43  ;;  %v277_v46 = vpop.f32.mrb[5].mxu0  ;;  %v308_v47 = vadd.f32 %v750_v24, %v307_v44  ;;  %v309_v48 = vpop.f32.mrb[5].mxu1 }
 0x13a   :  { %v278_v49 = vpop.f32.mrb[6].mxu0  ;;  %v310_v50 = vpop.f32.mrb[6].mxu1 }
 0x13b   :  { %v279_v51 = vadd.f32 %v750_v24, %v278_v49  ;;  %v280_v52 = vpop.f32.mrb[7].mxu0  ;;  %v332_v53 = vmax.f32 %v308_v47, 0.0  ;;  %v311_v54 = vadd.f32 %v750_v24, %v310_v50  ;;  %v312_v55 = vpop.f32.mrb[7].mxu1  ;;  %v324_v56 = vmax.f32 %v276_v45, 0.0 }
 0x13d   :  { %v325_v57 = vmax.f32 %v279_v51, 0.0  ;;  %v333_v58 = vmax.f32 %v311_v54, 0.0 }
 0x13f   :  { %v491_v59 = vpack.c.bf16 %v325_v57, %v324_v56  ;;  %v511_v60 = vpack.c.bf16 %v333_v58, %v332_v53 }
 0x140   :  { %v283_v61 = vpop.f32.mrb[8].mxu0  ;;  %v315_v62 = vpop.f32.mrb[8].mxu1 }
 0x141   :  { %518 = vst [vmem:[#allocation8 + $0x8] sm:$0xff] %v491_v59   ;;  %522 = vst [vmem:[#allocation8 + $0x28] sm:$0xff] %v511_v60   ;;  %v284_v63 = vadd.f32 %v750_v24, %v283_v61  ;;  %v285_v0 = vpop.f32.mrb[9].mxu0  ;;  %v316_v1 = vadd.f32 %v750_v24, %v315_v62  ;;  %v317_v2 = vpop.f32.mrb[9].mxu1 }
 0x142   :  { %v286_v3 = vpop.f32.mrb[10].mxu0  ;;  %v318_v4 = vpop.f32.mrb[10].mxu1 }
 0x143   :  { %v287_v5 = vadd.f32 %v750_v24, %v286_v3  ;;  %v288_v6 = vpop.f32.mrb[11].mxu0  ;;  %v334_v7 = vmax.f32 %v316_v1, 0.0  ;;  %v319_v8 = vadd.f32 %v750_v24, %v318_v4  ;;  %v320_v9 = vpop.f32.mrb[11].mxu1  ;;  %v326_v10 = vmax.f32 %v284_v63, 0.0 }
 0x145   :  { %v327_v11 = vmax.f32 %v287_v5, 0.0  ;;  %v335_v12 = vmax.f32 %v319_v8, 0.0 }
 0x147   :  { %v496_v13 = vpack.c.bf16 %v327_v11, %v326_v10  ;;  %v516_v14 = vpack.c.bf16 %v335_v12, %v334_v7 }
 0x148   :  { %v291_v15 = vpop.f32.mrb[12].mxu0 }
 0x149   :  { %519 = vst [vmem:[#allocation8 + $0x10] sm:$0xff] %v496_v13   ;;  %523 = vst [vmem:[#allocation8 + $0x30] sm:$0xff] %v516_v14   ;;  %v292_v16 = vadd.f32 %v750_v24, %v291_v15  ;;  %v293_v17 = vpop.f32.mrb[13].mxu0 }
 0x14a   :  { %v294_v18 = vpop.f32.mrb[14].mxu0 }
 0x14b   :  { %v295_v19 = vadd.f32 %v750_v24, %v294_v18  ;;  %v296_v20 = vpop.f32.mrb[15].mxu0  ;;  %v328_v21 = vmax.f32 %v292_v16, 0.0 }
 0x14d   :  { %v329_v22 = vmax.f32 %v295_v19, 0.0 }
 0x14f   :  { %v501_v23 = vpack.c.bf16 %v329_v22, %v328_v21 }
 0x151   :  { %520 = vst [vmem:[#allocation8 + $0x18] sm:$0xff] %v501_v23  }
 0x152   :  { %658 = shalt.err (!%p655_p0)
}
 0x153   :  { %s659_s30 = scalar_lea.hbm %s784_s3, 896 }
 0x154   :  { %p660_p1 = scmp.ne.s32.totalorder %s784_s3, %s659_s30  ;;  %p663_p2 = scmp.lt.u32.totalorder %s659_s30, %s784_s3 }
 0x156   :  { %p665_p3 = pnand %p663_p2, %p660_p1 }
 0x158   :  { %668 = shalt.err (!%p665_p3)
}
 0x159   :  { %417 = dma.vmem_to_hbm [thread:$0]  %s412_s26, 896, %s784_s3, [#allocation4], %s676_s22, %s676_s22, %s677_s23  }
 0x15a   :  { %673 = dma.done.wait [#allocation4], 896  }
 0x15b   :  { %674 = vsyncadd [#allocation4], 4294966400 }
 0x15c   :  { %421 = vsyncpa [#allocation3], 1 }
 0x15d   :  { %422 = vsyncpa [#allocation6], 1 }
 0x15e   :  { %423 = vsyncpa [#allocation4], 1 }

// kernel: tile.18
= control target key start
LH: loop header
LB: loop body
LE: loop exit
PB: predicated region body
PF: predicated region fallthrough
CT: control target
= control target key end

     0   :  { %s58_s0 = inlined_call_operand.vmem [shape: f32[32], index: 0, kind: input, shape index: {}]   ;;  %s59_s1 = inlined_call_operand.vmem [shape: f32[49,32], index: 1, kind: output, shape index: {}]  }
   0x1   :  { %v4_v0 = vld [vmem:[%s58_s0] ss:$0 sm:$0xff] }
   0x2   :  { %5 = vst [vmem:[%s59_s1] sm:$0xff] %v4_v0  ;;  %18 = vst [vmem:[%s59_s1 + $0x8] sm:$0xff] %v4_v0 }
   0x3   :  { %19 = vst [vmem:[%s59_s1 + $0x10] sm:$0xff] %v4_v0  ;;  %20 = vst [vmem:[%s59_s1 + $0x18] sm:$0xff] %v4_v0 }
   0x4   :  { %21 = vst [vmem:[%s59_s1 + $0x20] sm:$0xff] %v4_v0  ;;  %22 = vst [vmem:[%s59_s1 + $0x28] sm:$0xff] %v4_v0 }
   0x5   :  { %23 = vst [vmem:[%s59_s1 + $0x30] sm:$0xff] %v4_v0 }

// kernel: tile.19
= control target key start
LH: loop header
LB: loop body
LE: loop exit
PB: predicated region body
PF: predicated region fallthrough
CT: control target
= control target key end

     0   :  { %s63_s10 = smov 64   ;;  %s64_s11 = smov 96   ;;  %vm3_vm0 = vcmask 261120   ;;  %vm14_vm1 = vcmask 1048320   ;;  %vm27_vm2 = vcmask 785920   ;;  %vm40_vm3 = vcmask 523520   ;;  %s124_s0 = inlined_call_operand.vmem [shape: f32[49,32], index: 0, kind: input, shape index: {}]   ;;  %s125_s1 = inlined_call_operand.vmem [shape: f32[1568], index: 1, kind: output, shape index: {}]  }
   0x1   :  { %v54_v0 = vld [vmem:[%s124_s0 + $0x2] ss:$4 sm:$0xff]   ;;  %v51_v1 = vld [vmem:[%s124_s0 + $0x3] ss:$4 sm:$0xff]   ;;  %v2_v4 = vld [vmem:[%s124_s0] ss:$4 sm:$0xff]  }
   0x2   :  { %25 = vrot.lane.b32.xlu1 %v54_v0, %s63_s10  ;;  %12 = vrot.lane.b32.xlu0 %v51_v1, %s64_s11  ;;  %v55_v2 = vld [vmem:[%s124_s0 + $0x22] ss:$4 sm:$0xf]   ;;  %v52_v3 = vld [vmem:[%s124_s0 + $0x23] ss:$4 sm:$0xf]  }
   0x3   :  { %v49_v5 = vld [vmem:[%s124_s0 + $0x20] ss:$4 sm:$0x1f]   ;;  %4 = vst.msk [vmem:[%s125_s1] sm:$0xff] %vm3_vm0, %v2_v4   ;;  %v57_v7 = vld [vmem:[%s124_s0 + $0x1] ss:$4 sm:$0xff]  }
   0x4   :  { %50 = vst.msk [vmem:[%s125_s1 + $0x8] sm:$0x1f] %vm3_vm0, %v49_v5   ;;  %v58_v6 = vld [vmem:[%s124_s0 + $0x21] ss:$4 sm:$0xf]   ;;  %s65_s0 = smov 32  }
   0x6   :  { %31 = vrot.lane.b32.xlu1 %v55_v2, %s63_s10  ;;  %18 = vrot.lane.b32.xlu0 %v52_v3, %s64_s11 }
   0xa   :  { %44 = vrot.lane.b32.xlu1 %v58_v6, %s65_s0  ;;  %38 = vrot.lane.b32.xlu0 %v57_v7, %s65_s0 }
  0x74   :  { %v26_v8 = vpop.permute.xlu1 %25   ;;  %v13_v9 = vpop.permute.xlu0 %12  }
  0x75   :  { %15 = vst.msk [vmem:[%s125_s1] sm:$0xff] %vm14_vm1, %v13_v9  }
  0x76   :  { %28 = vst.msk [vmem:[%s125_s1] sm:$0xff] %vm27_vm2, %v26_v8  }
  0x78   :  { %v32_v10 = vpop.permute.xlu1 %31   ;;  %v19_v11 = vpop.permute.xlu0 %18  }
  0x79   :  { %53 = vst.msk [vmem:[%s125_s1 + $0x8] sm:$0xf] %vm14_vm1, %v19_v11  }
  0x7a   :  { %56 = vst.msk [vmem:[%s125_s1 + $0x8] sm:$0xf] %vm27_vm2, %v32_v10  }
  0x7c   :  { %v45_v12 = vpop.permute.xlu1 %44   ;;  %v39_v13 = vpop.permute.xlu0 %38  }
  0x7d   :  { %59 = vst.msk [vmem:[%s125_s1 + $0x8] sm:$0xf] %vm40_vm3, %v45_v12   ;;  %41 = vst.msk [vmem:[%s125_s1] sm:$0xff] %vm40_vm3, %v39_v13  }

// kernel: autoencoder_forward.9
= control target key start
LH: loop header
LB: loop body
LE: loop exit
PB: predicated region body
PF: predicated region fallthrough
CT: control target
= control target key end

     0   :  { %8 = vsyncpa [#allocation3], 0  ;;  %s1316_s0 = inlined_call_operand.hbm [shape: bf16[16,64], index: 0, kind: input, shape index: {}]   ;;  %s1317_s1 = inlined_call_operand.hbm [shape: bf16[64,1664], index: 1, kind: input, shape index: {}]   ;;  %s1318_s2 = inlined_call_operand.hbm [shape: f32[1,1664], index: 2, kind: input, shape index: {}]   ;;  %s1319_s3 = inlined_call_operand.hbm [shape: bf16[16,1664], index: 3, kind: output, shape index: {}]  }
   0x1   :  { %9 = vsyncpa [#allocation6], 0 }
   0x2   :  { %10 = vsyncpa [#allocation4], 0  ;;  %s1179_s12 = smov [#allocation5]   ;;  %s1085_s16 = scalar_lea.hbm %s1317_s1, 6656 }
   0x3   :  { %s28_s13 = sshll.u32 %s1179_s12, 4  ;;  %p1086_p0 = scmp.ne.s32.totalorder %s1317_s1, %s1085_s16  ;;  %s29_s13 = int_to_ptr.vmem [resolvable:$true] %s28_s13 }
   0x4   :  { %p1089_p1 = scmp.lt.u32.totalorder %s1085_s16, %s1317_s1 }
   0x6   :  { %p1091_p2 = pnand %p1089_p1, %p1086_p0 }
   0x8   :  { %1094 = shalt.err (!%p1091_p2)
}
   0x9   :  { %s1095_s21 = scalar_lea.vmem %s29_s13, 6656  ;;  %p1100_p4 = scmp.lt.s32.totalorder %s29_s13, %s29_s13 }
   0xa   :  { %p1096_p3 = scmp.ne.s32.totalorder %s29_s13, %s1095_s21  ;;  %p1101_p5 = scmp.lt.s32.totalorder %s1095_s21, %s1095_s21 }
   0xc   :  { %p1102_p6 = por %p1101_p5, %p1100_p4 }
   0xe   :  { %p1103_p7 = pnand %p1102_p6, %p1096_p3 }
  0x10   :  { %1106 = shalt.err (!%p1103_p7)
}
  0x11   :  { %s1180_s22 = smov 832   ;;  %s1181_s23 = smov 52  }
  0x12   :  { %34 = dma.hbm_to_vmem [thread:$0]  %s1317_s1, 6656, %s29_s13, [#allocation6], %s1180_s22, %s1180_s22, %s1181_s23  }
  0x13   :  { %s1182_s26 = smov [#allocation2]   ;;  %s1107_s30 = scalar_lea.hbm %s1316_s0, 128 }
  0x14   :  { %s16_s27 = sshll.u32 %s1182_s26, 4  ;;  %p1108_p8 = scmp.ne.s32.totalorder %s1316_s0, %s1107_s30  ;;  %s17_s27 = int_to_ptr.vmem [resolvable:$true] %s16_s27 }
  0x15   :  { %p1111_p9 = scmp.lt.u32.totalorder %s1107_s30, %s1316_s0 }
  0x17   :  { %p1113_p10 = pnand %p1111_p9, %p1108_p8 }
  0x19   :  { %1116 = shalt.err (!%p1113_p10)
}
  0x1a   :  { %s1117_s8 = scalar_lea.vmem %s17_s27, 128  ;;  %p1122_p12 = scmp.lt.s32.totalorder %s17_s27, %s17_s27 }
  0x1b   :  { %p1118_p11 = scmp.ne.s32.totalorder %s17_s27, %s1117_s8  ;;  %p1123_p13 = scmp.lt.s32.totalorder %s1117_s8, %s1117_s8 }
  0x1d   :  { %p1124_p0 = por %p1123_p13, %p1122_p12 }
  0x1f   :  { %p1125_p1 = pnand %p1124_p0, %p1118_p11 }
  0x21   :  { %1128 = shalt.err (!%p1125_p1)
}
  0x22   :  { %s1183_s1 = smov 64   ;;  %s1184_s9 = smov 4  }
  0x23   :  { %22 = dma.hbm_to_vmem [thread:$0]  %s1316_s0, 128, %s17_s27, [#allocation3], %s1183_s1, %s1183_s1, %s1184_s9  }
  0x24   :  { %s1185_s12 = smov [#allocation7]   ;;  %s1129_s16 = scalar_lea.hbm %s1318_s2, 208 }
  0x25   :  { %s41_s13 = sshll.u32 %s1185_s12, 4  ;;  %p1130_p2 = scmp.ne.s32.totalorder %s1318_s2, %s1129_s16  ;;  %s42_s13 = int_to_ptr.vmem [resolvable:$true] %s41_s13 }
  0x26   :  { %p1133_p3 = scmp.lt.u32.totalorder %s1129_s16, %s1318_s2 }
  0x28   :  { %p1135_p4 = pnand %p1133_p3, %p1130_p2 }
  0x2a   :  { %1138 = shalt.err (!%p1135_p4)
}
  0x2b   :  { %s1139_s21 = scalar_lea.vmem %s42_s13, 208  ;;  %s1143_s0 = scalar_lea.vmem %s42_s13, 224 }
  0x2c   :  { %p1140_p5 = scmp.ne.s32.totalorder %s42_s13, %s1139_s21  ;;  %p1144_p6 = scmp.lt.s32.totalorder %s42_s13, %s42_s13 }
  0x2d   :  { %p1145_p7 = scmp.lt.s32.totalorder %s1143_s0, %s1139_s21 }
  0x2f   :  { %p1146_p8 = por %p1145_p7, %p1144_p6 }
  0x31   :  { %p1147_p9 = pnand %p1146_p8, %p1140_p5 }
  0x33   :  { %1150 = shalt.err (!%p1147_p9)
}
  0x34   :  { %44 = dma.hbm_to_vmem [thread:$0]  %s1318_s2, 208, %s42_s13, [#allocation6]  }
  0x35   :  { %1173 = dma.done.wait [#allocation3], 128  }
  0x36   :  { %1174 = vsyncadd [#allocation3], 4294967168 }
  0x37   :  { %1175 = dma.done.wait [#allocation6], 6864  }
  0x38   :  { %1176 = vsyncadd [#allocation6], 4294960432  ;;  %v1186_v0 = vmov 0   ;;  %v1008_v1 = vld [vmem:[#allocation5 + $0x4] ss:$52 sps:$4 sm:$0xff]   ;;  %vm451_vm0 = vcmask 523264   ;;  %v117_v55 = vlaneseq }
  0x39   :  { %487 = vmatprep.mubr.bf16.mxu0 %v1186_v0  ;;  %530 = vmatprep.mubr.bf16.mxu1 %v1186_v0  ;;  %v1010_v2 = vld [vmem:[#allocation5] ss:$52 sps:$4 sm:$0xff]   ;;  %v1013_v4 = vld [vmem:[#allocation5 + $0x68] ss:$52 sps:$4 sm:$0xff]   ;;  %v1016_v7 = vld [vmem:[#allocation5 + $0xd0] ss:$52 sps:$4 sm:$0xff]  }
  0x3a   :  { %455 = vmatprep.subr.bf16.mxu0 %v1008_v1  ;;  %v1011_v3 = vld [vmem:[#allocation5 + $0x6c] ss:$52 sps:$4 sm:$0xff]   ;;  %v1014_v5 = vld [vmem:[#allocation5 + $0xd4] ss:$52 sps:$4 sm:$0xff]   ;;  %v1017_v9 = vld [vmem:[#allocation5 + $0x13c] ss:$52 sps:$4 sm:$0xff]  }
  0x3b   :  { %456 = vmatpush1.bf16.msra.mxu0 %v1010_v2  ;;  %v1019_v6 = vld [vmem:[#allocation5 + $0xc] ss:$52 sps:$4 sm:$0xff]   ;;  %v1022_v8 = vld [vmem:[#allocation5 + $0x8] ss:$52 sps:$4 sm:$0xff]   ;;  %v1029_v12 = vld [vmem:[#allocation5 + $0x70] ss:$52 sps:$4 sm:$0xff]  }
  0x3c   :  { %457 = vmatprep.subr.bf16.mxu0 %v1011_v3  ;;  %498 = vmatprep.subr.bf16.mxu1 %v1019_v6  ;;  %v1024_v10 = vld [vmem:[#allocation5 + $0x74] ss:$52 sps:$4 sm:$0xff]   ;;  %v1021_v11 = vld [vmem:[#allocation5 + $0x138] ss:$52 sps:$4 sm:$0xff]   ;;  %v1030_v13 = vld [vmem:[#allocation5 + $0xdc] ss:$52 sps:$4 sm:$0xff]  }
  0x3d   :  { %499 = vmatpush1.bf16.msra.mxu1 %v1022_v8  ;;  %v1028_v14 = vld [vmem:[#allocation5 + $0x14] ss:$52 sps:$4 sm:$0xff]   ;;  %v1035_v15 = vld [vmem:[#allocation5 + $0xd8] ss:$52 sps:$4 sm:$0xff]   ;;  %v1026_v18 = vld [vmem:[#allocation5 + $0x10] ss:$52 sps:$4 sm:$0xff]  }
  0x3e   :  { %500 = vmatprep.subr.bf16.mxu1 %v1024_v10  ;;  %v1036_v16 = vld [vmem:[#allocation5 + $0x144] ss:$52 sps:$4 sm:$0xff]   ;;  %v1034_v19 = vld [vmem:[#allocation5 + $0x7c] ss:$52 sps:$4 sm:$0xff]   ;;  %v1041_v20 = vld [vmem:[#allocation5 + $0x140] ss:$52 sps:$4 sm:$0xff]  }
  0x3f   :  { %458 = vmatpush1.bf16.msra.mxu0 %v1013_v4  ;;  %v1251_v17 = vld [vmem:[#allocation2] sm:$0xff]   ;;  %v1038_v26 = vld [vmem:[#allocation5 + $0xe0] ss:$52 sps:$4 sm:$0xff]   ;;  %v1060_v36 = vld [vmem:[#allocation5 + $0x150] ss:$52 sps:$4 sm:$0xff]   ;;  %v1187_v50 = vmov 0.0  }
  0x40   :  { %459 = vmatprep.subr.bf16.mxu0 %v1014_v5  ;;  %v1047_v21 = vld [vmem:[#allocation5 + $0x1c] ss:$52 sps:$4 sm:$0xff]   ;;  %v1032_v22 = vld [vmem:[#allocation5 + $0x78] ss:$52 sps:$4 sm:$0xff]   ;;  %v1048_v28 = vld [vmem:[#allocation5 + $0x80] ss:$52 sps:$4 sm:$0xff]  }
  0x41   :  { %501 = vmatpush1.bf16.msra.mxu1 %v1029_v12  ;;  %v1040_v23 = vld [vmem:[#allocation5 + $0xe4] ss:$52 sps:$4 sm:$0xff]   ;;  %v1044_v27 = vld [vmem:[#allocation5 + $0x14c] ss:$52 sps:$4 sm:$0xff]   ;;  %v1042_v30 = vld [vmem:[#allocation5 + $0x148] ss:$52 sps:$4 sm:$0xff]  }
  0x42   :  { %502 = vmatprep.subr.bf16.mxu1 %v1030_v13  ;;  %v1045_v24 = vld [vmem:[#allocation5 + $0x18] ss:$52 sps:$4 sm:$0xff]   ;;  %v1054_v32 = vld [vmem:[#allocation5 + $0xe8] ss:$52 sps:$4 sm:$0xff]   ;;  %v1051_v34 = vld [vmem:[#allocation5 + $0x20] ss:$52 sps:$4 sm:$0xff]  }
  0x43   :  { %460 = vmatpush1.bf16.msra.mxu0 %v1016_v7  ;;  %v1050_v25 = vld [vmem:[#allocation5 + $0x84] ss:$52 sps:$4 sm:$0xff]   ;;  %v1056_v29 = vld [vmem:[#allocation5 + $0xec] ss:$52 sps:$4 sm:$0xff]   ;;  %v1062_v33 = vld [vmem:[#allocation5 + $0x154] ss:$52 sps:$4 sm:$0xff]  }
  0x44   :  { %461 = vmatprep.subr.bf16.mxu0 %v1017_v9  ;;  %v1053_v31 = vld [vmem:[#allocation5 + $0x24] ss:$52 sps:$4 sm:$0xff]   ;;  %v1059_v35 = vld [vmem:[#allocation5 + $0x8c] ss:$52 sps:$4 sm:$0xff]   ;;  %v1057_v38 = vld [vmem:[#allocation5 + $0x88] ss:$52 sps:$4 sm:$0xff]  }
  0x45   :  { %503 = vmatpush1.bf16.msra.mxu1 %v1035_v15  ;;  %v1071_v37 = vld [vmem:[#allocation5 + $0x2c] ss:$52 sps:$4 sm:$0xff]   ;;  %v1065_v39 = vld [vmem:[#allocation5 + $0xf4] ss:$52 sps:$4 sm:$0xff]   ;;  %v1063_v42 = vld [vmem:[#allocation5 + $0xf0] ss:$52 sps:$4 sm:$0xff]  }
  0x46   :  { %504 = vmatprep.subr.bf16.mxu1 %v1036_v16  ;;  %v1069_v40 = vld [vmem:[#allocation5 + $0x28] ss:$52 sps:$4 sm:$0xff]   ;;  %v1072_v44 = vld [vmem:[#allocation5 + $0x90] ss:$52 sps:$4 sm:$0xff]   ;;  %v1066_v46 = vld [vmem:[#allocation5 + $0x158] ss:$52 sps:$4 sm:$0xff]  }
  0x47   :  { %462 = vmatpush1.bf16.msra.mxu0 %v1021_v11  ;;  %v1074_v41 = vld [vmem:[#allocation5 + $0x94] ss:$52 sps:$4 sm:$0xff]   ;;  %v1068_v43 = vld [vmem:[#allocation5 + $0x15c] ss:$52 sps:$4 sm:$0xff]   ;;  %v1076_v47 = vld [vmem:[#allocation5 + $0xf8] ss:$52 sps:$4 sm:$0xff]  }
  0x48   :  { %541 = vmatprep.subr.bf16.mxu0 %v1028_v14  ;;  %v1078_v45 = vld [vmem:[#allocation5 + $0xfc] ss:$52 sps:$4 sm:$0xff]   ;;  %v1082_v48 = vld [vmem:[#allocation5 + $0x164] ss:$52 sps:$4 sm:$0xff]   ;;  %v1080_v51 = vld [vmem:[#allocation5 + $0x160] ss:$52 sps:$4 sm:$0xff]  }
  0x49   :  { %505 = vmatpush1.bf16.msra.mxu1 %v1041_v20  ;;  %v1075_v49 = vld [vmem:[#allocation5 + $0x30] ss:$52 sps:$4 sm:$0xff]   ;;  %v1079_v52 = vld [vmem:[#allocation5 + $0x98] ss:$52 sps:$4 sm:$0xff]   ;;  %vm1188_vm1 = vmmov 0   ;;  %v1271_v56 = vshrl.u32 %v117_v55, 7 }
  0x4a   :  { %945 = vmatmul.mubr.msk.bf16.vlgmr.msra.gmra.mrb[0].mxu0 %vm451_vm0, %v1251_v17  ;;  %584 = vmatprep.subr.bf16.mxu1 %v1047_v21  ;;  %v1083_v53 = vld [vmem:[#allocation5 + $0x100] ss:$52 sps:$4 sm:$0xff]   ;;  %v1084_v54 = vld [vmem:[#allocation5 + $0x168] ss:$52 sps:$4 sm:$0xff]   ;;  %s1189_s2 = smov [#allocation8]  }
  0x4b   :  { %542 = vmatpush1.bf16.msra.mxu0 %v1026_v18  ;;  %573 = vmatprep.mubr.bf16.mxu0 %v1186_v0  ;;  %v119_v57 = vsub.s32 0, %v1271_v56  ;;  %v113_v58 = vld [vmem:[#allocation7] sm:$0xff]  ;;  %v123_v59 = vsub.s32 1, %v1271_v56  ;;  %v127_v62 = vsub.s32 2, %v1271_v56  ;;  %v131_v63 = vsub.s32 3, %v1271_v56  ;;  %s879_s26 = sshll.u32 %s1189_s2, 4  ;;  %s880_s26 = int_to_ptr.vmem [resolvable:$true] %s879_s26 }
  0x4c   :  { %543 = vmatprep.subr.bf16.mxu0 %v1034_v19  ;;  %946 = vmatmul.mubr.msk.bf16.vlgmr.msra.gmra.mrb[0].mxu1 %vm451_vm0, %v1251_v17  ;;  %s1151_s27 = scalar_lea.vmem %s880_s26, 1664  ;;  %p1156_p11 = scmp.lt.s32.totalorder %s880_s26, %s880_s26 }
  0x4d   :  { %585 = vmatpush1.bf16.msra.mxu1 %v1045_v24  ;;  %616 = vmatprep.mubr.bf16.mxu1 %v1186_v0  ;;  %v120_v60 = vrot.slane %v113_v58, %v119_v57  ;;  %v124_v61 = vrot.slane %v113_v58, %v123_v59  ;;  %v128_v5 = vrot.slane %v113_v58, %v127_v62  ;;  %p1152_p10 = scmp.ne.s32.totalorder %s880_s26, %s1151_s27  ;;  %p1157_p12 = scmp.lt.s32.totalorder %s1151_s27, %s1151_s27 }
  0x4e   :  { %586 = vmatprep.subr.bf16.mxu1 %v1050_v25  ;;  %v132_v9 = vrot.slane %v113_v58, %v131_v63 }
  0x4f   :  { %544 = vmatpush1.bf16.msra.mxu0 %v1032_v22  ;;  %p1158_p13 = por %p1157_p12, %p1156_p11 }
  0x50   :  { %545 = vmatprep.subr.bf16.mxu0 %v1040_v23 }
  0x51   :  { %587 = vmatpush1.bf16.msra.mxu1 %v1048_v28  ;;  %v139_v28 = vsub.s32 5, %v1271_v56  ;;  %p1159_p0 = pnand %p1158_p13, %p1152_p10 }
  0x52   :  { %588 = vmatprep.subr.bf16.mxu1 %v1056_v29 }
  0x53   :  { %546 = vmatpush1.bf16.msra.mxu0 %v1038_v26  ;;  %v135_v26 = vsub.s32 4, %v1271_v56 }
  0x54   :  { %547 = vmatprep.subr.bf16.mxu0 %v1044_v27 }
  0x55   :  { %589 = vmatpush1.bf16.msra.mxu1 %v1054_v32  ;;  %v136_v32 = vrot.slane %v113_v58, %v135_v26 }
  0x56   :  { %590 = vmatprep.subr.bf16.mxu1 %v1062_v33  ;;  %v140_v33 = vrot.slane %v113_v58, %v139_v28 }
  0x57   :  { %548 = vmatpush1.bf16.msra.mxu0 %v1042_v30 }
  0x58   :  { %627 = vmatprep.subr.bf16.mxu0 %v1053_v31 }
  0x59   :  { %591 = vmatpush1.bf16.msra.mxu1 %v1060_v36 }
  0x5a   :  { %947 = vmatmul.mubr.msk.bf16.vlgmr.msra.gmra.mrb[4].mxu0 %vm451_vm0, %v1251_v17  ;;  %670 = vmatprep.subr.bf16.mxu1 %v1071_v37 }
  0x5b   :  { %628 = vmatpush1.bf16.msra.mxu0 %v1051_v34  ;;  %659 = vmatprep.mubr.bf16.mxu0 %v1186_v0  ;;  %v143_v34 = vsub.s32 6, %v1271_v56 }
  0x5c   :  { %629 = vmatprep.subr.bf16.mxu0 %v1059_v35  ;;  %948 = vmatmul.mubr.msk.bf16.vlgmr.msra.gmra.mrb[4].mxu1 %vm451_vm0, %v1251_v17  ;;  %v147_v35 = vsub.s32 7, %v1271_v56 }
  0x5d   :  { %671 = vmatpush1.bf16.msra.mxu1 %v1069_v40  ;;  %702 = vmatprep.mubr.bf16.mxu1 %v1186_v0 }
  0x5e   :  { %672 = vmatprep.subr.bf16.mxu1 %v1074_v41  ;;  %v144_v41 = vrot.slane %v113_v58, %v143_v34 }
  0x5f   :  { %630 = vmatpush1.bf16.msra.mxu0 %v1057_v38 }
  0x60   :  { %631 = vmatprep.subr.bf16.mxu0 %v1065_v39 }
  0x61   :  { %673 = vmatpush1.bf16.msra.mxu1 %v1072_v44 }
  0x62   :  { %674 = vmatprep.subr.bf16.mxu1 %v1078_v45  ;;  %v148_v45 = vrot.slane %v113_v58, %v147_v35  ;;  %v114_v58 = vld [vmem:[#allocation7 + $0x8] sm:$0x1f] }
  0x63   :  { %632 = vmatpush1.bf16.msra.mxu0 %v1063_v42 }
  0x64   :  { %633 = vmatprep.subr.bf16.mxu0 %v1068_v43 }
  0x65   :  { %675 = vmatpush1.bf16.msra.mxu1 %v1076_v47 }
  0x66   :  { %676 = vmatprep.subr.bf16.mxu1 %v1082_v48 }
  0x67   :  { %634 = vmatpush1.bf16.msra.mxu0 %v1066_v46 }
  0x68   :  { %985 = vmatprep.subr.bf16.mxu0 %v1187_v50 }
  0x69   :  { %677 = vmatpush1.bf16.msra.mxu1 %v1080_v51 }
  0x6a   :  { %949 = vmatmul.mubr.msk.bf16.vlgmr.msra.gmra.mrb[8].mxu0 %vm451_vm0, %v1251_v17 }
  0x6b   :  { %986 = vmatpush3.bf16.msra.mxu0 %v1075_v49  ;;  %993 = vmatprep.mubr.msk.bf16.mxu0 %vm1188_vm1, %v1187_v50 }
  0x6c   :  { %987 = vmatprep.subr.bf16.mxu0 %v1187_v50  ;;  %950 = vmatmul.mubr.msk.bf16.vlgmr.msra.gmra.mrb[8].mxu1 %vm451_vm0, %v1251_v17 }
  0x6f   :  { %988 = vmatpush3.bf16.msra.mxu0 %v1079_v52 }
  0x70   :  { %989 = vmatprep.subr.bf16.mxu0 %v1187_v50 }
  0x73   :  { %990 = vmatpush3.bf16.msra.mxu0 %v1083_v53 }
  0x74   :  { %991 = vmatprep.subr.bf16.mxu0 %v1187_v50 }
  0x77   :  { %992 = vmatpush3.bf16.msra.mxu0 %v1084_v54 }
  0x7a   :  { %994 = vmatmul.mubr.msk.bf16.vlgmr.msra.gmra.mrb[12].mxu0 %vm451_vm0, %v1251_v17 }
 0x11d   :  { %v489_v0 = vpop.f32.mrb[0].mxu0 }
 0x11e   :  { %v490_v1 = vadd.f32 %v489_v0, %v120_v60  ;;  %v491_v2 = vpop.f32.mrb[1].mxu0 }
 0x11f   :  { %v492_v3 = vadd.f32 %v491_v2, %v124_v61  ;;  %v493_v4 = vpop.f32.mrb[2].mxu0  ;;  %v532_v13 = vpop.f32.mrb[0].mxu1 }
 0x120   :  { %v754_v6 = vmax.f32 %v490_v1, 0.0  ;;  %v494_v7 = vadd.f32 %v493_v4, %v120_v60  ;;  %v495_v8 = vpop.f32.mrb[3].mxu0  ;;  %v533_v16 = vadd.f32 %v532_v13, %v128_v5  ;;  %v534_v17 = vpop.f32.mrb[1].mxu1 }
 0x121   :  { %v755_v10 = vmax.f32 %v492_v3, 0.0  ;;  %v496_v11 = vadd.f32 %v495_v8, %v124_v61  ;;  %v535_v18 = vadd.f32 %v534_v17, %v132_v9  ;;  %v536_v19 = vpop.f32.mrb[2].mxu1  ;;  %v152_v8 = vrot.slane %v114_v58, %v119_v57 }
 0x122   :  { %v767_v12 = vmax.f32 %v494_v7, 0.0  ;;  %v756_v21 = vmax.f32 %v533_v16, 0.0  ;;  %v537_v22 = vadd.f32 %v536_v19, %v128_v5  ;;  %v538_v23 = vpop.f32.mrb[3].mxu1  ;;  %v164_v19 = vrot.slane %v114_v58, %v131_v63 }
 0x123   :  { %v966_v14 = vpack.c.bf16 %v755_v10, %v754_v6  ;;  %v768_v15 = vmax.f32 %v496_v11, 0.0  ;;  %v757_v24 = vmax.f32 %v535_v18, 0.0  ;;  %v539_v25 = vadd.f32 %v538_v23, %v132_v9 }
 0x124   :  { %v769_v27 = vmax.f32 %v537_v22, 0.0  ;;  %v156_v9 = vrot.slane %v114_v58, %v123_v59 }
 0x125   :  { %860 = vst [vmem:[#allocation8] sm:$0xff] %v966_v14  ;;  %v973_v20 = vpack.c.bf16 %v768_v15, %v767_v12  ;;  %v967_v29 = vpack.c.bf16 %v757_v24, %v756_v21  ;;  %v770_v30 = vmax.f32 %v539_v25, 0.0  ;;  %v160_v15 = vrot.slane %v114_v58, %v127_v62 }
 0x127   :  { %867 = vst [vmem:[#allocation8 + $0x34] sm:$0xff] %v973_v20  ;;  %861 = vst [vmem:[#allocation8 + $0x8] sm:$0xff] %v967_v29  ;;  %v974_v31 = vpack.c.bf16 %v770_v30, %v769_v27 }
 0x129   :  { %868 = vst [vmem:[#allocation8 + $0x3c] sm:$0xff] %v974_v31 }
 0x12d   :  { %v575_v36 = vpop.f32.mrb[4].mxu0 }
 0x12e   :  { %v576_v37 = vadd.f32 %v575_v36, %v136_v32  ;;  %v577_v38 = vpop.f32.mrb[5].mxu0 }
 0x12f   :  { %v578_v39 = vadd.f32 %v577_v38, %v140_v33  ;;  %v579_v40 = vpop.f32.mrb[6].mxu0  ;;  %v618_v49 = vpop.f32.mrb[4].mxu1 }
 0x130   :  { %v758_v42 = vmax.f32 %v576_v37, 0.0  ;;  %v580_v43 = vadd.f32 %v579_v40, %v136_v32  ;;  %v581_v44 = vpop.f32.mrb[7].mxu0  ;;  %v619_v52 = vadd.f32 %v618_v49, %v144_v41  ;;  %v620_v53 = vpop.f32.mrb[5].mxu1  ;;  %v168_v37 = vrot.slane %v114_v58, %v135_v26 }
 0x131   :  { %v759_v46 = vmax.f32 %v578_v39, 0.0  ;;  %v582_v47 = vadd.f32 %v581_v44, %v140_v33  ;;  %v621_v54 = vadd.f32 %v620_v53, %v148_v45  ;;  %v622_v55 = vpop.f32.mrb[6].mxu1 }
 0x132   :  { %v771_v48 = vmax.f32 %v580_v43, 0.0  ;;  %v760_v61 = vmax.f32 %v619_v52, 0.0  ;;  %v623_v0 = vadd.f32 %v622_v55, %v144_v41  ;;  %v624_v1 = vpop.f32.mrb[7].mxu1 }
 0x133   :  { %v968_v50 = vpack.c.bf16 %v759_v46, %v758_v42  ;;  %v772_v51 = vmax.f32 %v582_v47, 0.0  ;;  %v761_v2 = vmax.f32 %v621_v54, 0.0  ;;  %v625_v3 = vadd.f32 %v624_v1, %v148_v45 }
 0x134   :  { %v773_v4 = vmax.f32 %v623_v0, 0.0 }
 0x135   :  { %862 = vst [vmem:[#allocation8 + $0x10] sm:$0xff] %v968_v50  ;;  %v975_v60 = vpack.c.bf16 %v772_v51, %v771_v48  ;;  %v969_v5 = vpack.c.bf16 %v761_v2, %v760_v61  ;;  %v774_v6 = vmax.f32 %v625_v3, 0.0 }
 0x137   :  { %869 = vst [vmem:[#allocation8 + $0x44] sm:$0xff] %v975_v60  ;;  %863 = vst [vmem:[#allocation8 + $0x18] sm:$0xff] %v969_v5  ;;  %v976_v7 = vpack.c.bf16 %v774_v6, %v773_v4 }
 0x139   :  { %870 = vst [vmem:[#allocation8 + $0x4c] sm:$0xff] %v976_v7 }
 0x13d   :  { %v661_v10 = vpop.f32.mrb[8].mxu0 }
 0x13e   :  { %v662_v11 = vadd.f32 %v661_v10, %v152_v8  ;;  %v663_v12 = vpop.f32.mrb[9].mxu0 }
 0x13f   :  { %v664_v13 = vadd.f32 %v663_v12, %v156_v9  ;;  %v665_v14 = vpop.f32.mrb[10].mxu0  ;;  %v704_v22 = vpop.f32.mrb[8].mxu1 }
 0x140   :  { %v762_v16 = vmax.f32 %v662_v11, 0.0  ;;  %v666_v17 = vadd.f32 %v665_v14, %v152_v8  ;;  %v667_v18 = vpop.f32.mrb[11].mxu0  ;;  %v705_v24 = vadd.f32 %v704_v22, %v160_v15  ;;  %v706_v25 = vpop.f32.mrb[9].mxu1 }
 0x141   :  { %v763_v20 = vmax.f32 %v664_v13, 0.0  ;;  %v668_v57 = vadd.f32 %v667_v18, %v156_v9  ;;  %v707_v27 = vadd.f32 %v706_v25, %v164_v19  ;;  %v708_v28 = vpop.f32.mrb[10].mxu1 }
 0x142   :  { %v775_v21 = vmax.f32 %v666_v17, 0.0  ;;  %v764_v30 = vmax.f32 %v705_v24, 0.0  ;;  %v709_v62 = vadd.f32 %v708_v28, %v160_v15  ;;  %v710_v31 = vpop.f32.mrb[11].mxu1 }
 0x143   :  { %v970_v59 = vpack.c.bf16 %v763_v20, %v762_v16  ;;  %v776_v23 = vmax.f32 %v668_v57, 0.0  ;;  %v765_v32 = vmax.f32 %v707_v27, 0.0  ;;  %v711_v33 = vadd.f32 %v710_v31, %v164_v19 }
 0x144   :  { %v777_v34 = vmax.f32 %v709_v62, 0.0 }
 0x145   :  { %864 = vst [vmem:[#allocation8 + $0x20] sm:$0xff] %v970_v59  ;;  %v977_v29 = vpack.c.bf16 %v776_v23, %v775_v21  ;;  %v971_v63 = vpack.c.bf16 %v765_v32, %v764_v30  ;;  %v778_v35 = vmax.f32 %v711_v33, 0.0 }
 0x147   :  { %871 = vst [vmem:[#allocation8 + $0x54] sm:$0xff] %v977_v29  ;;  %865 = vst [vmem:[#allocation8 + $0x28] sm:$0xff] %v971_v63  ;;  %v978_v36 = vpack.c.bf16 %v778_v35, %v777_v34 }
 0x149   :  { %872 = vst [vmem:[#allocation8 + $0x5c] sm:$0xff] %v978_v36 }
 0x14d   :  { %v747_v38 = vpop.f32.mrb[12].mxu0 }
 0x14e   :  { %v748_v39 = vadd.f32 %v747_v38, %v168_v37  ;;  %v995_v40 = vpop.f32.mrb[13].mxu0 }
 0x14f   :  { %v750_v41 = vpop.f32.mrb[14].mxu0 }
 0x150   :  { %v766_v42 = vmax.f32 %v748_v39, 0.0  ;;  %v751_v43 = vadd.f32 %v750_v41, %v168_v37  ;;  %v996_v44 = vpop.f32.mrb[15].mxu0 }
 0x152   :  { %v972_v45 = vpack.c.bf16 %v766_v42, %v766_v42  ;;  %v779_v46 = vmax.f32 %v751_v43, 0.0 }
 0x154   :  { %866 = vst [vmem:[#allocation8 + $0x30] sm:$0xf] %v972_v45  ;;  %v979_v47 = vpack.c.bf16 %v779_v46, %v779_v46 }
 0x156   :  { %873 = vst [vmem:[#allocation8 + $0x64] sm:$0xf] %v979_v47 }
 0x157   :  { %1162 = shalt.err (!%p1159_p0)
}
 0x158   :  { %s1163_s30 = scalar_lea.hbm %s1319_s3, 1664 }
 0x159   :  { %p1164_p1 = scmp.ne.s32.totalorder %s1319_s3, %s1163_s30  ;;  %p1167_p2 = scmp.lt.u32.totalorder %s1163_s30, %s1319_s3 }
 0x15b   :  { %p1169_p3 = pnand %p1167_p2, %p1164_p1 }
 0x15d   :  { %1172 = shalt.err (!%p1169_p3)
}
 0x15e   :  { %885 = dma.vmem_to_hbm [thread:$0]  %s880_s26, 1664, %s1319_s3, [#allocation4], %s1180_s22, %s1180_s22, %s1181_s23  }
 0x15f   :  { %1177 = dma.done.wait [#allocation4], 1664  }
 0x160   :  { %1178 = vsyncadd [#allocation4], 4294965632 }
 0x161   :  { %889 = vsyncpa [#allocation3], 1 }
 0x162   :  { %890 = vsyncpa [#allocation6], 1 }
 0x163   :  { %891 = vsyncpa [#allocation4], 1 }

// kernel: autoencoder_forward.8
= control target key start
LH: loop header
LB: loop body
LE: loop exit
PB: predicated region body
PF: predicated region fallthrough
CT: control target
= control target key end

     0   :  { %8 = vsyncpa [#allocation3], 0  ;;  %s1814_s0 = inlined_call_operand.hbm [shape: bf16[16,1568], index: 0, kind: input, shape index: {}]   ;;  %s1815_s1 = inlined_call_operand.hbm [shape: bf16[1568,128], index: 1, kind: input, shape index: {}]   ;;  %s1816_s2 = inlined_call_operand.hbm [shape: f32[1,128], index: 2, kind: input, shape index: {}]   ;;  %s1817_s3 = inlined_call_operand.hbm [shape: bf16[16,128], index: 3, kind: output, shape index: {}]  }
   0x1   :  { %9 = vsyncpa [#allocation6], 0 }
   0x2   :  { %10 = vsyncpa [#allocation4], 0  ;;  %s1730_s12 = smov [#allocation5]   ;;  %s1636_s16 = scalar_lea.hbm %s1815_s1, 12544 }
   0x3   :  { %s28_s13 = sshll.u32 %s1730_s12, 4  ;;  %p1637_p0 = scmp.ne.s32.totalorder %s1815_s1, %s1636_s16  ;;  %s29_s13 = int_to_ptr.vmem [resolvable:$true] %s28_s13 }
   0x4   :  { %p1640_p1 = scmp.lt.u32.totalorder %s1636_s16, %s1815_s1 }
   0x6   :  { %p1642_p2 = pnand %p1640_p1, %p1637_p0 }
   0x8   :  { %1645 = shalt.err (!%p1642_p2)
}
   0x9   :  { %s1646_s21 = scalar_lea.vmem %s29_s13, 12544  ;;  %p1651_p4 = scmp.lt.s32.totalorder %s29_s13, %s29_s13 }
   0xa   :  { %p1647_p3 = scmp.ne.s32.totalorder %s29_s13, %s1646_s21  ;;  %p1652_p5 = scmp.lt.s32.totalorder %s1646_s21, %s1646_s21 }
   0xc   :  { %p1653_p6 = por %p1652_p5, %p1651_p4 }
   0xe   :  { %p1654_p7 = pnand %p1653_p6, %p1647_p3 }
  0x10   :  { %1657 = shalt.err (!%p1654_p7)
}
  0x11   :  { %s1731_s22 = smov 64   ;;  %s1732_s23 = smov 4  }
  0x12   :  { %34 = dma.hbm_to_vmem [thread:$0]  %s1815_s1, 12544, %s29_s13, [#allocation6], %s1731_s22, %s1731_s22, %s1732_s23  }
  0x13   :  { %s1733_s26 = smov [#allocation2]   ;;  %s1658_s30 = scalar_lea.hbm %s1814_s0, 1664 }
  0x14   :  { %s16_s27 = sshll.u32 %s1733_s26, 4  ;;  %p1659_p8 = scmp.ne.s32.totalorder %s1814_s0, %s1658_s30  ;;  %s17_s27 = int_to_ptr.vmem [resolvable:$true] %s16_s27 }
  0x15   :  { %p1662_p9 = scmp.lt.u32.totalorder %s1658_s30, %s1814_s0 }
  0x17   :  { %p1664_p10 = pnand %p1662_p9, %p1659_p8 }
  0x19   :  { %1667 = shalt.err (!%p1664_p10)
}
  0x1a   :  { %s1668_s8 = scalar_lea.vmem %s17_s27, 1664  ;;  %p1673_p12 = scmp.lt.s32.totalorder %s17_s27, %s17_s27 }
  0x1b   :  { %p1669_p11 = scmp.ne.s32.totalorder %s17_s27, %s1668_s8  ;;  %p1674_p13 = scmp.lt.s32.totalorder %s1668_s8, %s1668_s8 }
  0x1d   :  { %p1675_p0 = por %p1674_p13, %p1673_p12 }
  0x1f   :  { %p1676_p1 = pnand %p1675_p0, %p1669_p11 }
  0x21   :  { %1679 = shalt.err (!%p1676_p1)
}
  0x22   :  { %s1734_s1 = smov 832   ;;  %s1735_s9 = smov 52  }
  0x23   :  { %22 = dma.hbm_to_vmem [thread:$0]  %s1814_s0, 1664, %s17_s27, [#allocation3], %s1734_s1, %s1734_s1, %s1735_s9  }
  0x24   :  { %s1736_s12 = smov [#allocation7]   ;;  %s1680_s16 = scalar_lea.hbm %s1816_s2, 16 }
  0x25   :  { %s41_s13 = sshll.u32 %s1736_s12, 4  ;;  %p1681_p2 = scmp.ne.s32.totalorder %s1816_s2, %s1680_s16  ;;  %s42_s13 = int_to_ptr.vmem [resolvable:$true] %s41_s13 }
  0x26   :  { %p1684_p3 = scmp.lt.u32.totalorder %s1680_s16, %s1816_s2 }
  0x28   :  { %p1686_p4 = pnand %p1684_p3, %p1681_p2 }
  0x2a   :  { %1689 = shalt.err (!%p1686_p4)
}
  0x2b   :  { %s1690_s21 = scalar_lea.vmem %s42_s13, 16  ;;  %s1694_s0 = scalar_lea.vmem %s42_s13, 32 }
  0x2c   :  { %p1691_p5 = scmp.ne.s32.totalorder %s42_s13, %s1690_s21  ;;  %p1695_p6 = scmp.lt.s32.totalorder %s42_s13, %s42_s13 }
  0x2d   :  { %p1696_p7 = scmp.lt.s32.totalorder %s1694_s0, %s1690_s21 }
  0x2f   :  { %p1697_p8 = por %p1696_p7, %p1695_p6 }
  0x31   :  { %p1698_p9 = pnand %p1697_p8, %p1691_p5 }
  0x33   :  { %1701 = shalt.err (!%p1698_p9)
}
  0x34   :  { %44 = dma.hbm_to_vmem [thread:$0]  %s1816_s2, 16, %s42_s13, [#allocation6]  }
  0x35   :  { %1724 = dma.done.wait [#allocation3], 1664  }
  0x36   :  { %1725 = vsyncadd [#allocation3], 4294965632 }
  0x37   :  { %1726 = dma.done.wait [#allocation6], 12560  }
  0x38   :  { %1727 = vsyncadd [#allocation6], 4294954736  ;;  %v1519_v0 = vld [vmem:[#allocation5 + $0x40] sm:$0xff]   ;;  %v1523_v4 = vld [vmem:[#allocation5 + $0x48] sm:$0xff]   ;;  %vm1738_vm0 = vmmov 0   ;;  %vm925_vm1 = vcmask 261120  }
  0x39   :  { %v1520_v1 = vld [vmem:[#allocation5] sm:$0xff]   ;;  %1366 = vmatprep.subr.bf16.mxu0 %v1519_v0  ;;  %v1524_v5 = vld [vmem:[#allocation5 + $0x8] sm:$0xff]   ;;  %v1527_v8 = vld [vmem:[#allocation5 + $0x50] sm:$0xff]   ;;  %s1739_s2 = smov [#allocation8]  }
  0x3a   :  { %v1521_v2 = vld [vmem:[#allocation5 + $0xc0] sm:$0xff]   ;;  %1367 = vmatpush3.bf16.msra.mxu0 %v1520_v1  ;;  %v1525_v6 = vld [vmem:[#allocation5 + $0xc8] sm:$0xff]   ;;  %v1528_v9 = vld [vmem:[#allocation5 + $0x10] sm:$0xff]   ;;  %s1231_s26 = sshll.u32 %s1739_s2, 4  ;;  %s1232_s26 = int_to_ptr.vmem [resolvable:$true] %s1231_s26 }
  0x3b   :  { %v1522_v3 = vld [vmem:[#allocation5 + $0x80] sm:$0xff]   ;;  %1388 = vmatprep.subr.bf16.mxu1 %v1521_v2  ;;  %1368 = vmatprep.subr.bf16.mxu0 %v1523_v4  ;;  %v1526_v7 = vld [vmem:[#allocation5 + $0x88] sm:$0xff]   ;;  %v1529_v10 = vld [vmem:[#allocation5 + $0xd0] sm:$0xff]   ;;  %s1702_s27 = scalar_lea.vmem %s1232_s26, 128  ;;  %p1707_p11 = scmp.lt.s32.totalorder %s1232_s26, %s1232_s26 }
  0x3c   :  { %1389 = vmatpush3.bf16.msra.mxu1 %v1522_v3  ;;  %v1530_v11 = vld [vmem:[#allocation5 + $0x90] sm:$0xff]   ;;  %v1531_v12 = vld [vmem:[#allocation5 + $0x58] sm:$0xff]   ;;  %v1535_v16 = vld [vmem:[#allocation5 + $0x60] sm:$0xff]   ;;  %p1703_p10 = scmp.ne.s32.totalorder %s1232_s26, %s1702_s27  ;;  %p1708_p12 = scmp.lt.s32.totalorder %s1702_s27, %s1702_s27 }
  0x3d   :  { %1390 = vmatprep.subr.bf16.mxu1 %v1525_v6  ;;  %v1532_v13 = vld [vmem:[#allocation5 + $0x18] sm:$0xff]   ;;  %v1536_v17 = vld [vmem:[#allocation5 + $0x20] sm:$0xff]   ;;  %v1539_v20 = vld [vmem:[#allocation5 + $0x68] sm:$0xff]  }
  0x3e   :  { %1369 = vmatpush3.bf16.msra.mxu0 %v1524_v5  ;;  %v1533_v14 = vld [vmem:[#allocation5 + $0xd8] sm:$0xff]   ;;  %v1537_v18 = vld [vmem:[#allocation5 + $0xe0] sm:$0xff]   ;;  %v1540_v21 = vld [vmem:[#allocation5 + $0x28] sm:$0xff]   ;;  %p1709_p13 = por %p1708_p12, %p1707_p11 }
  0x3f   :  { %1370 = vmatprep.subr.bf16.mxu0 %v1527_v8  ;;  %v1534_v15 = vld [vmem:[#allocation5 + $0x98] sm:$0xff]   ;;  %v1538_v19 = vld [vmem:[#allocation5 + $0xa0] sm:$0xff]   ;;  %v1541_v22 = vld [vmem:[#allocation5 + $0xe8] sm:$0xff]  }
  0x40   :  { %1391 = vmatpush3.bf16.msra.mxu1 %v1526_v7  ;;  %v1542_v23 = vld [vmem:[#allocation5 + $0xa8] sm:$0xff]   ;;  %v1543_v24 = vld [vmem:[#allocation5 + $0x70] sm:$0xff]   ;;  %v1547_v28 = vld [vmem:[#allocation5 + $0x78] sm:$0xff]   ;;  %p1710_p0 = pnand %p1709_p13, %p1703_p10 }
  0x41   :  { %1392 = vmatprep.subr.bf16.mxu1 %v1529_v10  ;;  %v1544_v25 = vld [vmem:[#allocation5 + $0x30] sm:$0xff]   ;;  %v1548_v29 = vld [vmem:[#allocation5 + $0x38] sm:$0xff]   ;;  %v1554_v34 = vld [vmem:[#allocation5 + $0x140] sm:$0xff]  }
  0x42   :  { %1371 = vmatpush3.bf16.msra.mxu0 %v1528_v9  ;;  %v1545_v26 = vld [vmem:[#allocation5 + $0xf0] sm:$0xff]   ;;  %v1549_v30 = vld [vmem:[#allocation5 + $0xf8] sm:$0xff]   ;;  %v1558_v37 = vld [vmem:[#allocation5 + $0x100] sm:$0xff]  }
  0x43   :  { %1372 = vmatprep.subr.bf16.mxu0 %v1531_v12  ;;  %v1546_v27 = vld [vmem:[#allocation5 + $0xb0] sm:$0xff]   ;;  %v1550_v31 = vld [vmem:[#allocation5 + $0xb8] sm:$0xff]   ;;  %v1559_v38 = vld [vmem:[#allocation5 + $0x1c0] sm:$0xff]  }
  0x44   :  { %1393 = vmatpush3.bf16.msra.mxu1 %v1530_v11  ;;  %v1551_v32 = vld [vmem:[#allocation2] ss:$52 sps:$4 sm:$0xff]   ;;  %v1553_v33 = vld [vmem:[#allocation2 + $0x4] ss:$52 sps:$4 sm:$0xff]   ;;  %v1555_v35 = vld [vmem:[#allocation2 + $0x8] ss:$52 sps:$4 sm:$0xff]  }
  0x45   :  { %1394 = vmatprep.subr.bf16.mxu1 %v1533_v14  ;;  %961 = vmatprep.mubr.bf16.mxu0 %v1553_v33  ;;  %v1557_v36 = vld [vmem:[#allocation2 + $0xc] ss:$52 sps:$4 sm:$0xff]   ;;  %v1561_v40 = vld [vmem:[#allocation5 + $0x148] sm:$0xff]   ;;  %v1565_v44 = vld [vmem:[#allocation5 + $0x150] sm:$0xff]  }
  0x46   :  { %1373 = vmatpush3.bf16.msra.mxu0 %v1532_v13  ;;  %1002 = vmatprep.mubr.bf16.mxu1 %v1557_v36  ;;  %v1560_v39 = vld [vmem:[#allocation5 + $0x180] sm:$0xff]   ;;  %v1562_v41 = vld [vmem:[#allocation5 + $0x108] sm:$0xff]   ;;  %v1566_v45 = vld [vmem:[#allocation5 + $0x110] sm:$0xff]  }
  0x47   :  { %1374 = vmatprep.subr.bf16.mxu0 %v1535_v16  ;;  %v1563_v42 = vld [vmem:[#allocation5 + $0x1c8] sm:$0xff]   ;;  %v1567_v46 = vld [vmem:[#allocation5 + $0x1d0] sm:$0xff]   ;;  %v1569_v48 = vld [vmem:[#allocation5 + $0x158] sm:$0xff]  }
  0x48   :  { %1395 = vmatpush3.bf16.msra.mxu1 %v1534_v15  ;;  %v1564_v43 = vld [vmem:[#allocation5 + $0x188] sm:$0xff]   ;;  %v1568_v47 = vld [vmem:[#allocation5 + $0x190] sm:$0xff]   ;;  %v1570_v49 = vld [vmem:[#allocation5 + $0x118] sm:$0xff]  }
  0x49   :  { %1396 = vmatprep.subr.bf16.mxu1 %v1537_v18  ;;  %v1571_v50 = vld [vmem:[#allocation5 + $0x1d8] sm:$0xff]   ;;  %v1573_v52 = vld [vmem:[#allocation5 + $0x160] sm:$0xff]   ;;  %v1577_v56 = vld [vmem:[#allocation5 + $0x168] sm:$0xff]  }
  0x4a   :  { %1375 = vmatpush3.bf16.msra.mxu0 %v1536_v17  ;;  %v1572_v51 = vld [vmem:[#allocation5 + $0x198] sm:$0xff]   ;;  %v1574_v53 = vld [vmem:[#allocation5 + $0x120] sm:$0xff]   ;;  %v1578_v57 = vld [vmem:[#allocation5 + $0x128] sm:$0xff]  }
  0x4b   :  { %1376 = vmatprep.subr.bf16.mxu0 %v1539_v20  ;;  %v1575_v54 = vld [vmem:[#allocation5 + $0x1e0] sm:$0xff]   ;;  %v1579_v58 = vld [vmem:[#allocation5 + $0x1e8] sm:$0xff]   ;;  %v1581_v60 = vld [vmem:[#allocation5 + $0x170] sm:$0xff]  }
  0x4c   :  { %1397 = vmatpush3.bf16.msra.mxu1 %v1538_v19  ;;  %v1576_v55 = vld [vmem:[#allocation5 + $0x1a0] sm:$0xff]   ;;  %v1580_v59 = vld [vmem:[#allocation5 + $0x1a8] sm:$0xff]   ;;  %v1582_v61 = vld [vmem:[#allocation5 + $0x130] sm:$0xff]  }
  0x4d   :  { %1398 = vmatprep.subr.bf16.mxu1 %v1541_v22  ;;  %v1583_v62 = vld [vmem:[#allocation5 + $0x1f0] sm:$0xff]   ;;  %v1585_v0 = vld [vmem:[#allocation5 + $0x178] sm:$0xff]   ;;  %v1591_v5 = vld [vmem:[#allocation2 + $0x14] ss:$52 sps:$4 sm:$0xff]  }
  0x4e   :  { %1377 = vmatpush3.bf16.msra.mxu0 %v1540_v21  ;;  %v1584_v63 = vld [vmem:[#allocation5 + $0x1b0] sm:$0xff]   ;;  %v1586_v1 = vld [vmem:[#allocation5 + $0x138] sm:$0xff]   ;;  %v1592_v6 = vld [vmem:[#allocation5 + $0x240] sm:$0xff]  }
  0x4f   :  { %1378 = vmatprep.subr.bf16.mxu0 %v1543_v24  ;;  %v1587_v2 = vld [vmem:[#allocation5 + $0x1f8] sm:$0xff]   ;;  %v1593_v7 = vld [vmem:[#allocation2 + $0x18] ss:$52 sps:$4 sm:$0xff]   ;;  %v1595_v8 = vld [vmem:[#allocation2 + $0x1c] ss:$52 sps:$4 sm:$0xff]  }
  0x50   :  { %1399 = vmatpush3.bf16.msra.mxu1 %v1542_v23  ;;  %v1588_v3 = vld [vmem:[#allocation5 + $0x1b8] sm:$0xff]   ;;  %v1596_v9 = vld [vmem:[#allocation5 + $0x200] sm:$0xff]   ;;  %v1599_v12 = vld [vmem:[#allocation5 + $0x248] sm:$0xff]  }
  0x51   :  { %1400 = vmatprep.subr.bf16.mxu1 %v1545_v26  ;;  %v1589_v4 = vld [vmem:[#allocation2 + $0x10] ss:$52 sps:$4 sm:$0xff]   ;;  %v1597_v10 = vld [vmem:[#allocation5 + $0x2c0] sm:$0xff]   ;;  %v1603_v16 = vld [vmem:[#allocation5 + $0x250] sm:$0xff]  }
  0x52   :  { %1379 = vmatpush3.bf16.msra.mxu0 %v1544_v25  ;;  %v1598_v11 = vld [vmem:[#allocation5 + $0x280] sm:$0xff]   ;;  %v1600_v13 = vld [vmem:[#allocation5 + $0x208] sm:$0xff]   ;;  %v1604_v17 = vld [vmem:[#allocation5 + $0x210] sm:$0xff]  }
  0x53   :  { %1380 = vmatprep.subr.bf16.mxu0 %v1547_v28  ;;  %v1601_v14 = vld [vmem:[#allocation5 + $0x2c8] sm:$0xff]   ;;  %v1605_v18 = vld [vmem:[#allocation5 + $0x2d0] sm:$0xff]   ;;  %v1607_v20 = vld [vmem:[#allocation5 + $0x258] sm:$0xff]  }
  0x54   :  { %1401 = vmatpush3.bf16.msra.mxu1 %v1546_v27  ;;  %v1602_v15 = vld [vmem:[#allocation5 + $0x288] sm:$0xff]   ;;  %v1606_v19 = vld [vmem:[#allocation5 + $0x290] sm:$0xff]   ;;  %v1608_v21 = vld [vmem:[#allocation5 + $0x218] sm:$0xff]  }
  0x55   :  { %1402 = vmatprep.subr.bf16.mxu1 %v1549_v30  ;;  %v1609_v22 = vld [vmem:[#allocation5 + $0x2d8] sm:$0xff]   ;;  %v1611_v24 = vld [vmem:[#allocation5 + $0x260] sm:$0xff]   ;;  %v1615_v28 = vld [vmem:[#allocation5 + $0x268] sm:$0xff]  }
  0x56   :  { %1381 = vmatpush3.bf16.msra.mxu0 %v1548_v29  ;;  %v1610_v23 = vld [vmem:[#allocation5 + $0x298] sm:$0xff]   ;;  %v1612_v25 = vld [vmem:[#allocation5 + $0x220] sm:$0xff]   ;;  %v1616_v29 = vld [vmem:[#allocation5 + $0x228] sm:$0xff]  }
  0x57   :  { %1410 = vmatprep.subr.bf16.mxu0 %v1554_v34  ;;  %v1613_v26 = vld [vmem:[#allocation5 + $0x2e0] sm:$0xff]   ;;  %v1617_v30 = vld [vmem:[#allocation5 + $0x2e8] sm:$0xff]   ;;  %v1620_v33 = vld [vmem:[#allocation5 + $0x230] sm:$0xff]  }
  0x58   :  { %1403 = vmatpush3.bf16.msra.mxu1 %v1550_v31  ;;  %v1614_v27 = vld [vmem:[#allocation5 + $0x2a0] sm:$0xff]   ;;  %v1618_v31 = vld [vmem:[#allocation5 + $0x2a8] sm:$0xff]   ;;  %v1621_v34 = vld [vmem:[#allocation5 + $0x2f0] sm:$0xff]  }
  0x59   :  { %962 = vmatmul.mubr.bf16.vlgmr.msra.gmra.mrb[0].mxu0 %v1551_v32  ;;  %1432 = vmatprep.subr.bf16.mxu1 %v1559_v38  ;;  %v1619_v32 = vld [vmem:[#allocation5 + $0x270] sm:$0xff]   ;;  %v1623_v36 = vld [vmem:[#allocation5 + $0x278] sm:$0xff]  }
  0x5a   :  { %1411 = vmatpush3.bf16.msra.mxu0 %v1558_v37  ;;  %1043 = vmatprep.mubr.bf16.mxu0 %v1591_v5  ;;  %v1624_v37 = vld [vmem:[#allocation5 + $0x238] sm:$0xff]  }
  0x5b   :  { %1003 = vmatmul.mubr.bf16.vlgmr.msra.gmra.mrb[0].mxu1 %v1555_v35  ;;  %1412 = vmatprep.subr.bf16.mxu0 %v1561_v40  ;;  %v1622_v35 = vld [vmem:[#allocation5 + $0x2b0] sm:$0xff]   ;;  %v1625_v38 = vld [vmem:[#allocation5 + $0x2f8] sm:$0xff]  }
  0x5c   :  { %1433 = vmatpush3.bf16.msra.mxu1 %v1560_v39  ;;  %1084 = vmatprep.mubr.bf16.mxu1 %v1595_v8  ;;  %v1626_v39 = vld [vmem:[#allocation5 + $0x2b8] sm:$0xff]  }
  0x5d   :  { %1434 = vmatprep.subr.bf16.mxu1 %v1563_v42  ;;  %v1627_v40 = vld [vmem:[#allocation2 + $0x20] ss:$52 sps:$4 sm:$0xff]   ;;  %v1737_v42 = vmov 0.0  }
  0x5e   :  { %1413 = vmatpush3.bf16.msra.mxu0 %v1562_v41  ;;  %v1629_v41 = vld [vmem:[#allocation2 + $0x24] ss:$52 sps:$4 sm:$0xff]  }
  0x5f   :  { %1414 = vmatprep.subr.bf16.mxu0 %v1565_v44  ;;  %v1632_v44 = vld [vmem:[#allocation2 + $0x2c] ss:$52 sps:$4 sm:$0xff]  }
  0x60   :  { %1435 = vmatpush3.bf16.msra.mxu1 %v1564_v43  ;;  %v1630_v43 = vld [vmem:[#allocation2 + $0x28] ss:$52 sps:$4 sm:$0xff]  }
  0x61   :  { %1436 = vmatprep.subr.bf16.mxu1 %v1567_v46  ;;  %v1634_v46 = vld [vmem:[#allocation5 + $0x308] sm:$0xff]  }
  0x62   :  { %1415 = vmatpush3.bf16.msra.mxu0 %v1566_v45  ;;  %v1633_v45 = vld [vmem:[#allocation5 + $0x300] sm:$0xff]  }
  0x63   :  { %1416 = vmatprep.subr.bf16.mxu0 %v1569_v48 }
  0x64   :  { %1437 = vmatpush3.bf16.msra.mxu1 %v1568_v47  ;;  %v1635_v47 = vld [vmem:[#allocation2 + $0x30] ss:$52 sps:$4 sm:$0xff]  }
  0x65   :  { %1438 = vmatprep.subr.bf16.mxu1 %v1571_v50 }
  0x66   :  { %1417 = vmatpush3.bf16.msra.mxu0 %v1570_v49  ;;  %v1244_v49 = vld [vmem:[#allocation7] ss:$0 sm:$0xff] }
  0x67   :  { %1418 = vmatprep.subr.bf16.mxu0 %v1573_v52 }
  0x68   :  { %1439 = vmatpush3.bf16.msra.mxu1 %v1572_v51 }
  0x69   :  { %1440 = vmatprep.subr.bf16.mxu1 %v1575_v54 }
  0x6a   :  { %1419 = vmatpush3.bf16.msra.mxu0 %v1574_v53 }
  0x6b   :  { %1420 = vmatprep.subr.bf16.mxu0 %v1577_v56 }
  0x6c   :  { %1441 = vmatpush3.bf16.msra.mxu1 %v1576_v55 }
  0x6d   :  { %1442 = vmatprep.subr.bf16.mxu1 %v1579_v58 }
  0x6e   :  { %1421 = vmatpush3.bf16.msra.mxu0 %v1578_v57 }
  0x6f   :  { %1422 = vmatprep.subr.bf16.mxu0 %v1581_v60 }
  0x70   :  { %1443 = vmatpush3.bf16.msra.mxu1 %v1580_v59 }
  0x71   :  { %1444 = vmatprep.subr.bf16.mxu1 %v1583_v62 }
  0x72   :  { %1423 = vmatpush3.bf16.msra.mxu0 %v1582_v61 }
  0x73   :  { %1424 = vmatprep.subr.bf16.mxu0 %v1585_v0 }
  0x74   :  { %1445 = vmatpush3.bf16.msra.mxu1 %v1584_v63 }
  0x75   :  { %1446 = vmatprep.subr.bf16.mxu1 %v1587_v2 }
  0x76   :  { %1425 = vmatpush3.bf16.msra.mxu0 %v1586_v1 }
  0x77   :  { %1454 = vmatprep.subr.bf16.mxu0 %v1592_v6 }
  0x78   :  { %1447 = vmatpush3.bf16.msra.mxu1 %v1588_v3 }
  0x79   :  { %1044 = vmatmul.mubr.bf16.vlgmr.msra.gmra.mrb[4].mxu0 %v1589_v4  ;;  %1476 = vmatprep.subr.bf16.mxu1 %v1597_v10 }
  0x7a   :  { %1455 = vmatpush3.bf16.msra.mxu0 %v1596_v9  ;;  %1125 = vmatprep.mubr.bf16.mxu0 %v1629_v41 }
  0x7b   :  { %1085 = vmatmul.mubr.bf16.vlgmr.msra.gmra.mrb[4].mxu1 %v1593_v7  ;;  %1456 = vmatprep.subr.bf16.mxu0 %v1599_v12 }
  0x7c   :  { %1477 = vmatpush3.bf16.msra.mxu1 %v1598_v11  ;;  %1166 = vmatprep.mubr.bf16.mxu1 %v1632_v44 }
  0x7d   :  { %1478 = vmatprep.subr.bf16.mxu1 %v1601_v14 }
  0x7e   :  { %1457 = vmatpush3.bf16.msra.mxu0 %v1600_v13 }
  0x7f   :  { %1458 = vmatprep.subr.bf16.mxu0 %v1603_v16 }
  0x80   :  { %1479 = vmatpush3.bf16.msra.mxu1 %v1602_v15 }
  0x81   :  { %1480 = vmatprep.subr.bf16.mxu1 %v1605_v18 }
  0x82   :  { %1459 = vmatpush3.bf16.msra.mxu0 %v1604_v17 }
  0x83   :  { %1460 = vmatprep.subr.bf16.mxu0 %v1607_v20 }
  0x84   :  { %1481 = vmatpush3.bf16.msra.mxu1 %v1606_v19 }
  0x85   :  { %1482 = vmatprep.subr.bf16.mxu1 %v1609_v22 }
  0x86   :  { %1461 = vmatpush3.bf16.msra.mxu0 %v1608_v21 }
  0x87   :  { %1462 = vmatprep.subr.bf16.mxu0 %v1611_v24 }
  0x88   :  { %1483 = vmatpush3.bf16.msra.mxu1 %v1610_v23 }
  0x89   :  { %1484 = vmatprep.subr.bf16.mxu1 %v1613_v26 }
  0x8a   :  { %1463 = vmatpush3.bf16.msra.mxu0 %v1612_v25 }
  0x8b   :  { %1464 = vmatprep.subr.bf16.mxu0 %v1615_v28 }
  0x8c   :  { %1485 = vmatpush3.bf16.msra.mxu1 %v1614_v27 }
  0x8d   :  { %1486 = vmatprep.subr.bf16.mxu1 %v1617_v30 }
  0x8e   :  { %1465 = vmatpush3.bf16.msra.mxu0 %v1616_v29 }
  0x8f   :  { %1466 = vmatprep.subr.bf16.mxu0 %v1619_v32 }
  0x90   :  { %1487 = vmatpush3.bf16.msra.mxu1 %v1618_v31 }
  0x91   :  { %1488 = vmatprep.subr.bf16.mxu1 %v1621_v34 }
  0x92   :  { %1467 = vmatpush3.bf16.msra.mxu0 %v1620_v33 }
  0x93   :  { %1468 = vmatprep.subr.bf16.mxu0 %v1623_v36 }
  0x94   :  { %1489 = vmatpush3.bf16.msra.mxu1 %v1622_v35 }
  0x95   :  { %1490 = vmatprep.subr.bf16.mxu1 %v1625_v38 }
  0x96   :  { %1469 = vmatpush3.bf16.msra.mxu0 %v1624_v37 }
  0x97   :  { %1501 = vmatprep.subr.bf16.mxu0 %v1737_v42 }
  0x98   :  { %1491 = vmatpush3.bf16.msra.mxu1 %v1626_v39 }
  0x99   :  { %1126 = vmatmul.mubr.bf16.vlgmr.msra.gmra.mrb[8].mxu0 %v1627_v40 }
  0x9a   :  { %1502 = vmatpush3.bf16.msra.mxu0 %v1633_v45  ;;  %1505 = vmatprep.mubr.msk.bf16.mxu0 %vm1738_vm0, %v1737_v42 }
  0x9b   :  { %1167 = vmatmul.mubr.bf16.vlgmr.msra.gmra.mrb[8].mxu1 %v1630_v43  ;;  %1503 = vmatprep.subr.bf16.mxu0 %v1737_v42 }
  0x9e   :  { %1504 = vmatpush3.bf16.msra.mxu0 %v1634_v46 }
  0xa1   :  { %1506 = vmatmul.mubr.msk.bf16.vlgmr.msra.gmra.mrb[12].mxu0 %vm925_vm1, %v1635_v47 }
 0x12c   :  { %v1382_v48 = vpop.f32.mrb[0].mxu0 }
 0x12d   :  { %v1383_v50 = vpop.f32.mrb[1].mxu0 }
 0x12e   :  { %v1384_v51 = vadd.f32 %v1383_v50, %v1382_v48  ;;  %v1385_v52 = vpop.f32.mrb[2].mxu0  ;;  %v1404_v53 = vpop.f32.mrb[0].mxu1 }
 0x12f   :  { %v1386_v54 = vpop.f32.mrb[3].mxu0  ;;  %v1405_v55 = vpop.f32.mrb[1].mxu1 }
 0x130   :  { %v964_v56 = vadd.f32 %v1384_v51, %v1244_v49  ;;  %v1387_v57 = vadd.f32 %v1386_v54, %v1385_v52  ;;  %v1406_v58 = vadd.f32 %v1405_v55, %v1404_v53  ;;  %v1407_v59 = vpop.f32.mrb[2].mxu1 }
 0x131   :  { %v1408_v60 = vpop.f32.mrb[3].mxu1 }
 0x132   :  { %v967_v61 = vadd.f32 %v1387_v57, %v1244_v49  ;;  %v1005_v62 = vadd.f32 %v1406_v58, %v964_v56  ;;  %v1409_v63 = vadd.f32 %v1408_v60, %v1407_v59 }
 0x134   :  { %v1008_v0 = vadd.f32 %v1409_v63, %v967_v61 }
 0x14c   :  { %v1426_v1 = vpop.f32.mrb[4].mxu0 }
 0x14d   :  { %v1427_v2 = vpop.f32.mrb[5].mxu0 }
 0x14e   :  { %v1428_v3 = vadd.f32 %v1427_v2, %v1426_v1  ;;  %v1429_v4 = vpop.f32.mrb[6].mxu0  ;;  %v1448_v5 = vpop.f32.mrb[4].mxu1 }
 0x14f   :  { %v1430_v6 = vpop.f32.mrb[7].mxu0  ;;  %v1449_v9 = vpop.f32.mrb[5].mxu1 }
 0x150   :  { %v1046_v7 = vadd.f32 %v1428_v3, %v1005_v62  ;;  %v1431_v8 = vadd.f32 %v1430_v6, %v1429_v4  ;;  %v1450_v10 = vadd.f32 %v1449_v9, %v1448_v5  ;;  %v1451_v11 = vpop.f32.mrb[6].mxu1 }
 0x151   :  { %v1452_v13 = vpop.f32.mrb[7].mxu1 }
 0x152   :  { %v1049_v12 = vadd.f32 %v1431_v8, %v1008_v0  ;;  %v1087_v14 = vadd.f32 %v1450_v10, %v1046_v7  ;;  %v1453_v15 = vadd.f32 %v1452_v13, %v1451_v11 }
 0x154   :  { %v1090_v16 = vadd.f32 %v1453_v15, %v1049_v12 }
 0x16c   :  { %v1470_v17 = vpop.f32.mrb[8].mxu0 }
 0x16d   :  { %v1471_v18 = vpop.f32.mrb[9].mxu0 }
 0x16e   :  { %v1492_v19 = vpop.f32.mrb[8].mxu1  ;;  %v1472_v20 = vadd.f32 %v1471_v18, %v1470_v17  ;;  %v1473_v21 = vpop.f32.mrb[10].mxu0 }
 0x16f   :  { %v1493_v22 = vpop.f32.mrb[9].mxu1  ;;  %v1474_v24 = vpop.f32.mrb[11].mxu0 }
 0x170   :  { %v1494_v23 = vadd.f32 %v1493_v22, %v1492_v19  ;;  %v1495_v25 = vpop.f32.mrb[10].mxu1  ;;  %v1128_v26 = vadd.f32 %v1472_v20, %v1087_v14  ;;  %v1475_v27 = vadd.f32 %v1474_v24, %v1473_v21 }
 0x171   :  { %v1496_v28 = vpop.f32.mrb[11].mxu1 }
 0x172   :  { %v1497_v29 = vadd.f32 %v1496_v28, %v1495_v25  ;;  %v1131_v30 = vadd.f32 %v1475_v27, %v1090_v16  ;;  %v1169_v31 = vadd.f32 %v1494_v23, %v1128_v26 }
 0x174   :  { %v1209_v32 = vpop.f32.mrb[12].mxu0  ;;  %v1172_v33 = vadd.f32 %v1497_v29, %v1131_v30 }
 0x175   :  { %v1210_v34 = vadd.f32 %v1209_v32, %v1169_v31  ;;  %v1507_v35 = vpop.f32.mrb[13].mxu0 }
 0x176   :  { %v1212_v36 = vpop.f32.mrb[14].mxu0 }
 0x177   :  { %v1213_v37 = vadd.f32 %v1212_v36, %v1172_v33  ;;  %v1508_v38 = vpop.f32.mrb[15].mxu0 }
 0x179   :  { %v1364_v39 = vpack.c.bf16 %v1213_v37, %v1210_v34 }
 0x17b   :  { %1365 = vst [vmem:[#allocation8] sm:$0xff] %v1364_v39  }
 0x17c   :  { %1713 = shalt.err (!%p1710_p0)
}
 0x17d   :  { %s1714_s30 = scalar_lea.hbm %s1817_s3, 128 }
 0x17e   :  { %p1715_p1 = scmp.ne.s32.totalorder %s1817_s3, %s1714_s30  ;;  %p1718_p2 = scmp.lt.u32.totalorder %s1714_s30, %s1817_s3 }
 0x180   :  { %p1720_p3 = pnand %p1718_p2, %p1715_p1 }
 0x182   :  { %1723 = shalt.err (!%p1720_p3)
}
 0x183   :  { %1237 = dma.vmem_to_hbm [thread:$0]  %s1232_s26, 128, %s1817_s3, [#allocation4], %s1731_s22, %s1731_s22, %s1732_s23  }
 0x184   :  { %1728 = dma.done.wait [#allocation4], 128  }
 0x185   :  { %1729 = vsyncadd [#allocation4], 4294967168 }
 0x186   :  { %1241 = vsyncpa [#allocation3], 1 }
 0x187   :  { %1242 = vsyncpa [#allocation6], 1 }
 0x188   :  { %1243 = vsyncpa [#allocation4], 1 }

// kernel: tile.23
= control target key start
LH: loop header
LB: loop body
LE: loop exit
PB: predicated region body
PF: predicated region fallthrough
CT: control target
= control target key end

     0   :  { %s22_s0 = inlined_call_operand.vmem [shape: f32[16], index: 0, kind: input, shape index: {}]   ;;  %s23_s1 = inlined_call_operand.vmem [shape: f32[4,16], index: 1, kind: output, shape index: {}]  }
   0x1   :  { %v4_v0 = vld [vmem:[%s22_s0] ss:$0 sm:$0xff] }
   0x2   :  { %5 = vst [vmem:[%s23_s1] sm:$0xf] %v4_v0 }

// kernel: tile.24
= control target key start
LH: loop header
LB: loop body
LE: loop exit
PB: predicated region body
PF: predicated region fallthrough
CT: control target
= control target key end

     0   :  { %vm7_vm0 = vcmask 130048   ;;  %s37_s8 = smov 16   ;;  %s38_s9 = smov 32   ;;  %vm13_vm1 = vcmask 523648   ;;  %vm19_vm2 = vcmask 392448   ;;  %vm25_vm3 = vcmask 261248   ;;  %s55_s0 = inlined_call_operand.vmem [shape: f32[4,16], index: 0, kind: input, shape index: {}]   ;;  %s56_s1 = inlined_call_operand.vmem [shape: f32[64], index: 1, kind: output, shape index: {}]  }
   0x1   :  { %v4_v0 = vld [vmem:[%s55_s0] sm:$0xf]  ;;  %s36_s0 = smov 48  }
   0x2   :  { %5 = vst [vmem:[#allocation1] sm:$0xf] %v4_v0 }
   0x9   :  { %v10_v1 = vld [vmem:[#allocation1 + $0x3] sm:$0x1]   ;;  %v22_v2 = vld [vmem:[#allocation1 + $0x1] sm:$0x1]   ;;  %v6_v3 = vld [vmem:[#allocation1] sm:$0x1]  }
   0xa   :  { %11 = vrot.lane.b32.xlu0 %v10_v1, %s36_s0  ;;  %23 = vrot.lane.b32.xlu1 %v22_v2, %s37_s8  ;;  %v16_v4 = vld [vmem:[#allocation1 + $0x2] sm:$0x1]   ;;  %8 = vst.msk [vmem:[#allocation0] sm:$0x1] %vm7_vm0, %v6_v3  }
   0xe   :  { %17 = vrot.lane.b32.xlu0 %v16_v4, %s38_s9 }
  0x7c   :  { %v12_v5 = vpop.permute.xlu0 %11   ;;  %v24_v6 = vpop.permute.xlu1 %23  }
  0x7d   :  { %14 = vst.msk [vmem:[#allocation0] sm:$0x1] %vm13_vm1, %v12_v5  }
  0x80   :  { %v18_v7 = vpop.permute.xlu0 %17  }
  0x81   :  { %20 = vst.msk [vmem:[#allocation0] sm:$0x1] %vm19_vm2, %v18_v7  }
  0x82   :  { %26 = vst.msk [vmem:[#allocation0] sm:$0x1] %vm25_vm3, %v24_v6  }
  0x89   :  { %v30_v8 = vld [vmem:[#allocation0] sm:$0x1] }
  0x8a   :  { %32 = vst [vmem:[%s56_s1] sm:$0x1] %v30_v8 }

// kernel: autoencoder_forward.10
= control target key start
LH: loop header
LB: loop body
LE: loop exit
PB: predicated region body
PF: predicated region fallthrough
CT: control target
= control target key end

     0   :  { %8 = vsyncpa [#allocation3], 0  ;;  %s765_s0 = inlined_call_operand.hbm [shape: bf16[112,128], index: 0, kind: input, shape index: {}]   ;;  %s766_s1 = inlined_call_operand.hbm [shape: bf16[128,128], index: 1, kind: input, shape index: {}]   ;;  %s767_s2 = inlined_call_operand.hbm [shape: f32[1,128], index: 2, kind: input, shape index: {}]   ;;  %s768_s3 = inlined_call_operand.hbm [shape: bf16[112,128], index: 3, kind: output, shape index: {}]  }
   0x1   :  { %9 = vsyncpa [#allocation6], 0 }
   0x2   :  { %10 = vsyncpa [#allocation4], 0  ;;  %s650_s12 = smov [#allocation5]   ;;  %s651_s14 = smov [#allocation2]  }
   0x3   :  { %s28_s13 = sshll.u32 %s650_s12, 4  ;;  %s16_s15 = sshll.u32 %s651_s14, 4  ;;  %s29_s13 = int_to_ptr.vmem [resolvable:$true] %s28_s13  ;;  %s678_s15 = int_to_ptr.vmem [resolvable:$true] %s16_s15 }
   0x4   :  { %s556_s18 = scalar_lea.hbm %s766_s1, 1024 }
   0x5   :  { %p557_p0 = scmp.ne.s32.totalorder %s766_s1, %s556_s18  ;;  %p560_p1 = scmp.lt.u32.totalorder %s556_s18, %s766_s1 }
   0x7   :  { %p562_p2 = pnand %p560_p1, %p557_p0 }
   0x9   :  { %565 = shalt.err (!%p562_p2)
}
   0xa   :  { %s566_s23 = scalar_lea.vmem %s29_s13, 1024  ;;  %p571_p4 = scmp.lt.s32.totalorder %s29_s13, %s29_s13 }
   0xb   :  { %p567_p3 = scmp.ne.s32.totalorder %s29_s13, %s566_s23  ;;  %p572_p5 = scmp.lt.s32.totalorder %s566_s23, %s566_s23 }
   0xd   :  { %p573_p6 = por %p572_p5, %p571_p4 }
   0xf   :  { %p574_p7 = pnand %p573_p6, %p567_p3 }
  0x11   :  { %577 = shalt.err (!%p574_p7)
}
  0x12   :  { %s652_s24 = smov 64   ;;  %s653_s25 = smov 4  }
  0x13   :  { %34 = dma.hbm_to_vmem [thread:$0]  %s766_s1, 1024, %s29_s13, [#allocation6], %s652_s24, %s652_s24, %s653_s25  }
  0x14   :  { %s578_s30 = scalar_lea.hbm %s765_s0, 896 }
  0x15   :  { %p579_p8 = scmp.ne.s32.totalorder %s765_s0, %s578_s30  ;;  %p582_p9 = scmp.lt.u32.totalorder %s578_s30, %s765_s0 }
  0x17   :  { %p584_p10 = pnand %p582_p9, %p579_p8 }
  0x19   :  { %587 = shalt.err (!%p584_p10)
}
  0x1a   :  { %s588_s8 = scalar_lea.vmem %s678_s15, 896  ;;  %p593_p12 = scmp.lt.s32.totalorder %s678_s15, %s678_s15 }
  0x1b   :  { %p589_p11 = scmp.ne.s32.totalorder %s678_s15, %s588_s8  ;;  %p594_p13 = scmp.lt.s32.totalorder %s588_s8, %s588_s8 }
  0x1d   :  { %p595_p0 = por %p594_p13, %p593_p12 }
  0x1f   :  { %p596_p1 = pnand %p595_p0, %p589_p11 }
  0x21   :  { %599 = shalt.err (!%p596_p1)
}
  0x22   :  { %22 = dma.hbm_to_vmem [thread:$0]  %s765_s0, 896, %s678_s15, [#allocation3], %s652_s24, %s652_s24, %s653_s25  }
  0x23   :  { %s654_s10 = smov [#allocation7]   ;;  %s600_s14 = scalar_lea.hbm %s767_s2, 16 }
  0x24   :  { %s41_s11 = sshll.u32 %s654_s10, 4  ;;  %p601_p2 = scmp.ne.s32.totalorder %s767_s2, %s600_s14  ;;  %s42_s11 = int_to_ptr.vmem [resolvable:$true] %s41_s11 }
  0x25   :  { %p604_p3 = scmp.lt.u32.totalorder %s600_s14, %s767_s2 }
  0x27   :  { %p606_p4 = pnand %p604_p3, %p601_p2 }
  0x29   :  { %609 = shalt.err (!%p606_p4)
}
  0x2a   :  { %s610_s20 = scalar_lea.vmem %s42_s11, 16  ;;  %s614_s0 = scalar_lea.vmem %s42_s11, 32 }
  0x2b   :  { %p611_p5 = scmp.ne.s32.totalorder %s42_s11, %s610_s20  ;;  %p615_p6 = scmp.lt.s32.totalorder %s42_s11, %s42_s11 }
  0x2c   :  { %p616_p7 = scmp.lt.s32.totalorder %s614_s0, %s610_s20 }
  0x2e   :  { %p617_p8 = por %p616_p7, %p615_p6 }
  0x30   :  { %p618_p9 = pnand %p617_p8, %p611_p5 }
  0x32   :  { %621 = shalt.err (!%p618_p9)
}
  0x33   :  { %44 = dma.hbm_to_vmem [thread:$0]  %s767_s2, 16, %s42_s11, [#allocation6]  }
  0x34   :  { %644 = dma.done.wait [#allocation3], 896  }
  0x35   :  { %645 = vsyncadd [#allocation3], 4294966400 }
  0x36   :  { %646 = dma.done.wait [#allocation6], 1040  }
  0x37   :  { %647 = vsyncadd [#allocation6], 4294966256  ;;  %v655_v0 = vmov 0.0   ;;  %vm656_vm0 = vmmov 0   ;;  %v541_v1 = vld [vmem:[#allocation5] sm:$0xff]   ;;  %v542_v2 = vld [vmem:[#allocation5 + $0x8] sm:$0xff]  }
  0x38   :  { %473 = vmatprep.subr.bf16.mxu0 %v655_v0  ;;  %517 = vmatprep.subr.bf16.mxu1 %v655_v0  ;;  %v543_v3 = vld [vmem:[#allocation5 + $0x10] sm:$0xff]   ;;  %v544_v4 = vld [vmem:[#allocation5 + $0x18] sm:$0xff]   ;;  %v545_v5 = vld [vmem:[#allocation5 + $0x20] sm:$0xff]   ;;  %s657_s2 = smov [#allocation8]  }
  0x39   :  { %489 = vmatprep.mubr.msk.bf16.mxu0 %vm656_vm0, %v655_v0  ;;  %505 = vmatprep.mubr.msk.bf16.mxu1 %vm656_vm0, %v655_v0  ;;  %v546_v6 = vld [vmem:[#allocation5 + $0x28] sm:$0xff]   ;;  %v547_v7 = vld [vmem:[#allocation5 + $0x30] sm:$0xff]   ;;  %v548_v8 = vld [vmem:[#allocation5 + $0x38] sm:$0xff]   ;;  %s360_s22 = sshll.u32 %s657_s2, 4  ;;  %s361_s22 = int_to_ptr.vmem [resolvable:$true] %s360_s22 }
  0x3a   :  { %474 = vmatpush3.bf16.msra.mxu0 %v541_v1  ;;  %525 = vmatpush3.bf16.msra.mxu1 %v541_v1  ;;  %v549_v9 = vld [vmem:[#allocation2] sm:$0xff]   ;;  %v551_v11 = vld [vmem:[#allocation2 + $0x8] sm:$0xff]   ;;  %v553_v13 = vld [vmem:[#allocation2 + $0x10] sm:$0xff]   ;;  %s622_s23 = scalar_lea.vmem %s361_s22, 896  ;;  %p627_p11 = scmp.lt.s32.totalorder %s361_s22, %s361_s22 }
  0x3b   :  { %475 = vmatprep.subr.bf16.mxu0 %v655_v0  ;;  %518 = vmatprep.subr.bf16.mxu1 %v655_v0  ;;  %v550_v10 = vld [vmem:[#allocation2 + $0x20] sm:$0xff]   ;;  %v552_v12 = vld [vmem:[#allocation2 + $0x28] sm:$0xff]   ;;  %v554_v14 = vld [vmem:[#allocation2 + $0x30] sm:$0xff]   ;;  %p623_p10 = scmp.ne.s32.totalorder %s361_s22, %s622_s23  ;;  %p628_p12 = scmp.lt.s32.totalorder %s622_s23, %s622_s23 }
  0x3c   :  { %v555_v15 = vld [vmem:[#allocation2 + $0x18] sm:$0xff]  }
  0x3d   :  { %v734_v16 = vld [vmem:[#allocation7] ss:$0 sm:$0xff]  ;;  %p629_p13 = por %p628_p12, %p627_p11 }
  0x3e   :  { %476 = vmatpush3.bf16.msra.mxu0 %v542_v2  ;;  %526 = vmatpush3.bf16.msra.mxu1 %v542_v2 }
  0x3f   :  { %477 = vmatprep.subr.bf16.mxu0 %v655_v0  ;;  %519 = vmatprep.subr.bf16.mxu1 %v655_v0  ;;  %p630_p0 = pnand %p629_p13, %p623_p10 }
  0x42   :  { %478 = vmatpush3.bf16.msra.mxu0 %v543_v3  ;;  %527 = vmatpush3.bf16.msra.mxu1 %v543_v3 }
  0x43   :  { %479 = vmatprep.subr.bf16.mxu0 %v655_v0  ;;  %520 = vmatprep.subr.bf16.mxu1 %v655_v0 }
  0x46   :  { %480 = vmatpush3.bf16.msra.mxu0 %v544_v4  ;;  %528 = vmatpush3.bf16.msra.mxu1 %v544_v4 }
  0x47   :  { %481 = vmatprep.subr.bf16.mxu0 %v655_v0  ;;  %521 = vmatprep.subr.bf16.mxu1 %v655_v0 }
  0x4a   :  { %482 = vmatpush3.bf16.msra.mxu0 %v545_v5  ;;  %529 = vmatpush3.bf16.msra.mxu1 %v545_v5 }
  0x4b   :  { %483 = vmatprep.subr.bf16.mxu0 %v655_v0  ;;  %522 = vmatprep.subr.bf16.mxu1 %v655_v0 }
  0x4e   :  { %484 = vmatpush3.bf16.msra.mxu0 %v546_v6  ;;  %530 = vmatpush3.bf16.msra.mxu1 %v546_v6 }
  0x4f   :  { %485 = vmatprep.subr.bf16.mxu0 %v655_v0  ;;  %523 = vmatprep.subr.bf16.mxu1 %v655_v0 }
  0x52   :  { %486 = vmatpush3.bf16.msra.mxu0 %v547_v7  ;;  %531 = vmatpush3.bf16.msra.mxu1 %v547_v7 }
  0x53   :  { %487 = vmatprep.subr.bf16.mxu0 %v655_v0  ;;  %524 = vmatprep.subr.bf16.mxu1 %v655_v0 }
  0x56   :  { %488 = vmatpush3.bf16.msra.mxu0 %v548_v8  ;;  %532 = vmatpush3.bf16.msra.mxu1 %v548_v8 }
  0x59   :  { %490 = vmatmul.mubr.bf16.vlgmr.msra.gmra.mrb[0].mxu0 %v549_v9  ;;  %506 = vmatmul.mubr.bf16.vlgmr.msra.gmra.mrb[0].mxu1 %v550_v10 }
  0x5a   :  { %493 = vmatprep.mubr.msk.bf16.mxu0 %vm656_vm0, %v655_v0  ;;  %509 = vmatprep.mubr.msk.bf16.mxu1 %vm656_vm0, %v655_v0 }
  0x61   :  { %494 = vmatmul.mubr.bf16.gmra.mrb[4].mxu0 %v551_v11  ;;  %510 = vmatmul.mubr.bf16.gmra.mrb[4].mxu1 %v552_v12 }
  0x62   :  { %497 = vmatprep.mubr.msk.bf16.mxu0 %vm656_vm0, %v655_v0  ;;  %513 = vmatprep.mubr.msk.bf16.mxu1 %vm656_vm0, %v655_v0 }
  0x69   :  { %498 = vmatmul.mubr.bf16.gmra.mrb[8].mxu0 %v553_v13  ;;  %514 = vmatmul.mubr.bf16.gmra.mrb[8].mxu1 %v554_v14 }
  0x6a   :  { %501 = vmatprep.mubr.msk.bf16.mxu0 %vm656_vm0, %v655_v0 }
  0x71   :  { %502 = vmatmul.mubr.bf16.gmra.mrb[12].mxu0 %v555_v15 }
 0x12c   :  { %v216_v17 = vpop.f32.mrb[0].mxu0  ;;  %v248_v18 = vpop.f32.mrb[0].mxu1 }
 0x12d   :  { %v217_v19 = vadd.f32 %v734_v16, %v216_v17  ;;  %v491_v20 = vpop.f32.mrb[1].mxu0  ;;  %v249_v21 = vadd.f32 %v734_v16, %v248_v18  ;;  %v507_v22 = vpop.f32.mrb[1].mxu1 }
 0x12e   :  { %v219_v23 = vpop.f32.mrb[2].mxu0  ;;  %v251_v24 = vpop.f32.mrb[2].mxu1 }
 0x12f   :  { %v220_v25 = vadd.f32 %v734_v16, %v219_v23  ;;  %v492_v26 = vpop.f32.mrb[3].mxu0  ;;  %v279_v27 = vmax.f32 %v249_v21, 0.0  ;;  %v252_v28 = vadd.f32 %v734_v16, %v251_v24  ;;  %v508_v29 = vpop.f32.mrb[3].mxu1  ;;  %v271_v30 = vmax.f32 %v217_v19, 0.0 }
 0x131   :  { %v272_v31 = vmax.f32 %v220_v25, 0.0  ;;  %v280_v32 = vmax.f32 %v252_v28, 0.0 }
 0x133   :  { %v420_v33 = vpack.c.bf16 %v272_v31, %v271_v30  ;;  %v440_v34 = vpack.c.bf16 %v280_v32, %v279_v27 }
 0x134   :  { %v224_v35 = vpop.f32.mrb[4].mxu0  ;;  %v256_v36 = vpop.f32.mrb[4].mxu1 }
 0x135   :  { %421 = vst [vmem:[#allocation8] sm:$0xff] %v420_v33   ;;  %455 = vst [vmem:[#allocation8 + $0x20] sm:$0xff] %v440_v34   ;;  %v225_v37 = vadd.f32 %v734_v16, %v224_v35  ;;  %v495_v38 = vpop.f32.mrb[5].mxu0  ;;  %v257_v39 = vadd.f32 %v734_v16, %v256_v36  ;;  %v511_v40 = vpop.f32.mrb[5].mxu1 }
 0x136   :  { %v227_v41 = vpop.f32.mrb[6].mxu0  ;;  %v259_v42 = vpop.f32.mrb[6].mxu1 }
 0x137   :  { %v228_v43 = vadd.f32 %v734_v16, %v227_v41  ;;  %v496_v44 = vpop.f32.mrb[7].mxu0  ;;  %v281_v45 = vmax.f32 %v257_v39, 0.0  ;;  %v260_v46 = vadd.f32 %v734_v16, %v259_v42  ;;  %v512_v47 = vpop.f32.mrb[7].mxu1  ;;  %v273_v48 = vmax.f32 %v225_v37, 0.0 }
 0x139   :  { %v274_v49 = vmax.f32 %v228_v43, 0.0  ;;  %v282_v50 = vmax.f32 %v260_v46, 0.0 }
 0x13b   :  { %v425_v51 = vpack.c.bf16 %v274_v49, %v273_v48  ;;  %v445_v52 = vpack.c.bf16 %v282_v50, %v281_v45 }
 0x13c   :  { %v232_v53 = vpop.f32.mrb[8].mxu0  ;;  %v264_v54 = vpop.f32.mrb[8].mxu1 }
 0x13d   :  { %452 = vst [vmem:[#allocation8 + $0x8] sm:$0xff] %v425_v51   ;;  %456 = vst [vmem:[#allocation8 + $0x28] sm:$0xff] %v445_v52   ;;  %v233_v55 = vadd.f32 %v734_v16, %v232_v53  ;;  %v499_v56 = vpop.f32.mrb[9].mxu0  ;;  %v265_v57 = vadd.f32 %v734_v16, %v264_v54  ;;  %v515_v58 = vpop.f32.mrb[9].mxu1 }
 0x13e   :  { %v235_v59 = vpop.f32.mrb[10].mxu0  ;;  %v267_v60 = vpop.f32.mrb[10].mxu1 }
 0x13f   :  { %v236_v61 = vadd.f32 %v734_v16, %v235_v59  ;;  %v500_v62 = vpop.f32.mrb[11].mxu0  ;;  %v283_v63 = vmax.f32 %v265_v57, 0.0  ;;  %v268_v0 = vadd.f32 %v734_v16, %v267_v60  ;;  %v516_v1 = vpop.f32.mrb[11].mxu1  ;;  %v275_v2 = vmax.f32 %v233_v55, 0.0 }
 0x141   :  { %v276_v3 = vmax.f32 %v236_v61, 0.0  ;;  %v284_v4 = vmax.f32 %v268_v0, 0.0 }
 0x143   :  { %v430_v5 = vpack.c.bf16 %v276_v3, %v275_v2  ;;  %v450_v6 = vpack.c.bf16 %v284_v4, %v283_v63 }
 0x144   :  { %v240_v7 = vpop.f32.mrb[12].mxu0 }
 0x145   :  { %453 = vst [vmem:[#allocation8 + $0x10] sm:$0xff] %v430_v5   ;;  %457 = vst [vmem:[#allocation8 + $0x30] sm:$0xff] %v450_v6   ;;  %v241_v8 = vadd.f32 %v734_v16, %v240_v7  ;;  %v503_v9 = vpop.f32.mrb[13].mxu0 }
 0x146   :  { %v243_v10 = vpop.f32.mrb[14].mxu0 }
 0x147   :  { %v244_v11 = vadd.f32 %v734_v16, %v243_v10  ;;  %v504_v12 = vpop.f32.mrb[15].mxu0  ;;  %v277_v13 = vmax.f32 %v241_v8, 0.0 }
 0x149   :  { %v278_v14 = vmax.f32 %v244_v11, 0.0 }
 0x14b   :  { %v435_v15 = vpack.c.bf16 %v278_v14, %v277_v13 }
 0x14d   :  { %454 = vst [vmem:[#allocation8 + $0x18] sm:$0xff] %v435_v15  }
 0x14e   :  { %633 = shalt.err (!%p630_p0)
}
 0x14f   :  { %s634_s28 = scalar_lea.hbm %s768_s3, 896 }
 0x150   :  { %p635_p1 = scmp.ne.s32.totalorder %s768_s3, %s634_s28  ;;  %p638_p2 = scmp.lt.u32.totalorder %s634_s28, %s768_s3 }
 0x152   :  { %p640_p3 = pnand %p638_p2, %p635_p1 }
 0x154   :  { %643 = shalt.err (!%p640_p3)
}
 0x155   :  { %366 = dma.vmem_to_hbm [thread:$0]  %s361_s22, 896, %s768_s3, [#allocation4], %s652_s24, %s652_s24, %s653_s25  }
 0x156   :  { %648 = dma.done.wait [#allocation4], 896  }
 0x157   :  { %649 = vsyncadd [#allocation4], 4294966400 }
 0x158   :  { %370 = vsyncpa [#allocation3], 1 }
 0x159   :  { %371 = vsyncpa [#allocation6], 1 }
 0x15a   :  { %372 = vsyncpa [#allocation4], 1 }

// kernel: autoencoder_forward.11
= control target key start
LH: loop header
LB: loop body
LE: loop exit
PB: predicated region body
PF: predicated region fallthrough
CT: control target
= control target key end

     0   :  { %8 = vsyncpa [#allocation3], 0  ;;  %s1749_s0 = inlined_call_operand.hbm [shape: bf16[400,64], index: 0, kind: input, shape index: {}]   ;;  %s1750_s1 = inlined_call_operand.hbm [shape: bf16[64,128], index: 1, kind: input, shape index: {}]   ;;  %s1751_s2 = inlined_call_operand.hbm [shape: f32[1,128], index: 2, kind: input, shape index: {}]   ;;  %s1752_s3 = inlined_call_operand.hbm [shape: f32[400,128], index: 3, kind: output, shape index: {}]  }
   0x1   :  { %9 = vsyncpa [#allocation6], 0 }
   0x2   :  { %10 = vsyncpa [#allocation4], 0  ;;  %s1529_s12 = smov [#allocation5]   ;;  %s1530_s14 = smov [#allocation2]  }
   0x3   :  { %s28_s13 = sshll.u32 %s1529_s12, 4  ;;  %s16_s15 = sshll.u32 %s1530_s14, 4  ;;  %s29_s13 = int_to_ptr.vmem [resolvable:$true] %s28_s13  ;;  %s1559_s15 = int_to_ptr.vmem [resolvable:$true] %s16_s15 }
   0x4   :  { %s1435_s18 = scalar_lea.hbm %s1750_s1, 512 }
   0x5   :  { %p1436_p0 = scmp.ne.s32.totalorder %s1750_s1, %s1435_s18  ;;  %p1439_p1 = scmp.lt.u32.totalorder %s1435_s18, %s1750_s1 }
   0x7   :  { %p1441_p2 = pnand %p1439_p1, %p1436_p0 }
   0x9   :  { %1444 = shalt.err (!%p1441_p2)
}
   0xa   :  { %s1445_s23 = scalar_lea.vmem %s29_s13, 512  ;;  %p1450_p4 = scmp.lt.s32.totalorder %s29_s13, %s29_s13 }
   0xb   :  { %p1446_p3 = scmp.ne.s32.totalorder %s29_s13, %s1445_s23  ;;  %p1451_p5 = scmp.lt.s32.totalorder %s1445_s23, %s1445_s23 }
   0xd   :  { %p1452_p6 = por %p1451_p5, %p1450_p4 }
   0xf   :  { %p1453_p7 = pnand %p1452_p6, %p1446_p3 }
  0x11   :  { %1456 = shalt.err (!%p1453_p7)
}
  0x12   :  { %s1531_s24 = smov 64   ;;  %s1532_s25 = smov 4  }
  0x13   :  { %34 = dma.hbm_to_vmem [thread:$0]  %s1750_s1, 512, %s29_s13, [#allocation6], %s1531_s24, %s1531_s24, %s1532_s25  }
  0x14   :  { %s1457_s30 = scalar_lea.hbm %s1749_s0, 3200 }
  0x15   :  { %p1458_p8 = scmp.ne.s32.totalorder %s1749_s0, %s1457_s30  ;;  %p1461_p9 = scmp.lt.u32.totalorder %s1457_s30, %s1749_s0 }
  0x17   :  { %p1463_p10 = pnand %p1461_p9, %p1458_p8 }
  0x19   :  { %1466 = shalt.err (!%p1463_p10)
}
  0x1a   :  { %s1467_s8 = scalar_lea.vmem %s1559_s15, 3200  ;;  %p1472_p12 = scmp.lt.s32.totalorder %s1559_s15, %s1559_s15 }
  0x1b   :  { %p1468_p11 = scmp.ne.s32.totalorder %s1559_s15, %s1467_s8  ;;  %p1473_p13 = scmp.lt.s32.totalorder %s1467_s8, %s1467_s8 }
  0x1d   :  { %p1474_p0 = por %p1473_p13, %p1472_p12 }
  0x1f   :  { %p1475_p1 = pnand %p1474_p0, %p1468_p11 }
  0x21   :  { %1478 = shalt.err (!%p1475_p1)
}
  0x22   :  { %22 = dma.hbm_to_vmem [thread:$0]  %s1749_s0, 3200, %s1559_s15, [#allocation3], %s1531_s24, %s1531_s24, %s1532_s25  }
  0x23   :  { %s1533_s10 = smov [#allocation7]   ;;  %s1479_s14 = scalar_lea.hbm %s1751_s2, 16 }
  0x24   :  { %s41_s11 = sshll.u32 %s1533_s10, 4  ;;  %p1480_p2 = scmp.ne.s32.totalorder %s1751_s2, %s1479_s14  ;;  %s42_s11 = int_to_ptr.vmem [resolvable:$true] %s41_s11 }
  0x25   :  { %p1483_p3 = scmp.lt.u32.totalorder %s1479_s14, %s1751_s2 }
  0x27   :  { %p1485_p4 = pnand %p1483_p3, %p1480_p2 }
  0x29   :  { %1488 = shalt.err (!%p1485_p4)
}
  0x2a   :  { %s1489_s20 = scalar_lea.vmem %s42_s11, 16  ;;  %s1493_s0 = scalar_lea.vmem %s42_s11, 32 }
  0x2b   :  { %p1490_p5 = scmp.ne.s32.totalorder %s42_s11, %s1489_s20  ;;  %p1494_p6 = scmp.lt.s32.totalorder %s42_s11, %s42_s11 }
  0x2c   :  { %p1495_p7 = scmp.lt.s32.totalorder %s1493_s0, %s1489_s20 }
  0x2e   :  { %p1496_p8 = por %p1495_p7, %p1494_p6 }
  0x30   :  { %p1497_p9 = pnand %p1496_p8, %p1490_p5 }
  0x32   :  { %1500 = shalt.err (!%p1497_p9)
}
  0x33   :  { %44 = dma.hbm_to_vmem [thread:$0]  %s1751_s2, 16, %s42_s11, [#allocation6]  }
  0x34   :  { %1523 = dma.done.wait [#allocation3], 3200  }
  0x35   :  { %1524 = vsyncadd [#allocation3], 4294964096 }
  0x36   :  { %1525 = dma.done.wait [#allocation6], 528  }
  0x37   :  { %1526 = vsyncadd [#allocation6], 4294966768  ;;  %v1534_v0 = vmov 0.0   ;;  %vm1535_vm0 = vmmov 0   ;;  %v1206_v1 = vld [vmem:[#allocation5] sm:$0xff]   ;;  %v1207_v2 = vld [vmem:[#allocation5 + $0x8] sm:$0xff]  }
  0x38   :  { %1080 = vmatprep.subr.bf16.mxu0 %v1534_v0  ;;  %1188 = vmatprep.subr.bf16.mxu1 %v1534_v0  ;;  %v1208_v3 = vld [vmem:[#allocation5 + $0x10] sm:$0xff]   ;;  %v1209_v4 = vld [vmem:[#allocation5 + $0x18] sm:$0xff]   ;;  %v1211_v6 = vld [vmem:[#allocation2 + $0x68] sm:$0xff]   ;;  %vm269_vm1 = vcmask 523264   ;;  %s1536_s2 = smov [#allocation8]  }
  0x39   :  { %1088 = vmatprep.mubr.msk.bf16.mxu0 %vm1535_vm0, %v1534_v0  ;;  %1140 = vmatprep.mubr.msk.bf16.mxu1 %vm1535_vm0, %v1534_v0  ;;  %v1210_v5 = vld [vmem:[#allocation2] sm:$0xff]   ;;  %v1212_v7 = vld [vmem:[#allocation2 + $0x8] sm:$0xff]   ;;  %v1213_v8 = vld [vmem:[#allocation2 + $0x70] sm:$0xff]   ;;  %s933_s22 = sshll.u32 %s1536_s2, 4  ;;  %s934_s22 = int_to_ptr.vmem [resolvable:$true] %s933_s22 }
  0x3a   :  { %1081 = vmatpush3.bf16.msra.mxu0 %v1206_v1  ;;  %1192 = vmatpush3.bf16.msra.mxu1 %v1206_v1  ;;  %v1214_v9 = vld [vmem:[#allocation2 + $0x10] sm:$0xff]   ;;  %v1215_v10 = vld [vmem:[#allocation2 + $0x78] sm:$0xff]   ;;  %v1217_v12 = vld [vmem:[#allocation2 + $0x80] sm:$0xff]   ;;  %s1501_s23 = scalar_lea.vmem %s934_s22, 6400  ;;  %p1506_p11 = scmp.lt.s32.totalorder %s934_s22, %s934_s22 }
  0x3b   :  { %1082 = vmatprep.subr.bf16.mxu0 %v1534_v0  ;;  %1189 = vmatprep.subr.bf16.mxu1 %v1534_v0  ;;  %v1216_v11 = vld [vmem:[#allocation2 + $0x18] sm:$0xff]   ;;  %v1218_v13 = vld [vmem:[#allocation2 + $0x20] sm:$0xff]   ;;  %v1219_v14 = vld [vmem:[#allocation2 + $0x88] sm:$0xff]   ;;  %p1502_p10 = scmp.ne.s32.totalorder %s934_s22, %s1501_s23  ;;  %p1507_p12 = scmp.lt.s32.totalorder %s1501_s23, %s1501_s23 }
  0x3c   :  { %v1220_v15 = vld [vmem:[#allocation2 + $0x28] sm:$0xff]   ;;  %v1221_v16 = vld [vmem:[#allocation2 + $0x90] sm:$0xff]   ;;  %v1223_v18 = vld [vmem:[#allocation2 + $0x98] sm:$0xff]  }
  0x3d   :  { %v1222_v17 = vld [vmem:[#allocation2 + $0x30] sm:$0xff]   ;;  %v1224_v19 = vld [vmem:[#allocation2 + $0x38] sm:$0xff]   ;;  %v1225_v20 = vld [vmem:[#allocation2 + $0xa0] sm:$0xff]   ;;  %p1508_p13 = por %p1507_p12, %p1506_p11 }
  0x3e   :  { %1083 = vmatpush3.bf16.msra.mxu0 %v1207_v2  ;;  %1193 = vmatpush3.bf16.msra.mxu1 %v1207_v2  ;;  %v1226_v21 = vld [vmem:[#allocation2 + $0x40] sm:$0xff]   ;;  %v1227_v22 = vld [vmem:[#allocation2 + $0xa8] sm:$0xff]   ;;  %v1229_v24 = vld [vmem:[#allocation2 + $0xb0] sm:$0xff]  }
  0x3f   :  { %1084 = vmatprep.subr.bf16.mxu0 %v1534_v0  ;;  %1190 = vmatprep.subr.bf16.mxu1 %v1534_v0  ;;  %v1228_v23 = vld [vmem:[#allocation2 + $0x48] sm:$0xff]   ;;  %v1230_v25 = vld [vmem:[#allocation2 + $0x50] sm:$0xff]   ;;  %v1231_v26 = vld [vmem:[#allocation2 + $0xb8] sm:$0xff]   ;;  %p1509_p0 = pnand %p1508_p13, %p1502_p10 }
  0x40   :  { %v1232_v27 = vld [vmem:[#allocation2 + $0x58] sm:$0xff]   ;;  %v1233_v28 = vld [vmem:[#allocation2 + $0xc0] sm:$0xff]   ;;  %v1685_v30 = vld [vmem:[#allocation7] ss:$0 sm:$0xff] }
  0x41   :  { %v1234_v29 = vld [vmem:[#allocation2 + $0x60] sm:$0xff]  }
  0x42   :  { %1085 = vmatpush3.bf16.msra.mxu0 %v1208_v3  ;;  %1194 = vmatpush3.bf16.msra.mxu1 %v1208_v3 }
  0x43   :  { %1086 = vmatprep.subr.bf16.mxu0 %v1534_v0  ;;  %1191 = vmatprep.subr.bf16.mxu1 %v1534_v0 }
  0x46   :  { %1087 = vmatpush3.bf16.msra.mxu0 %v1209_v4  ;;  %1195 = vmatpush3.bf16.msra.mxu1 %v1209_v4 }
  0x49   :  { %1089 = vmatmul.mubr.msk.bf16.vlgmr.msra.gmra.mrb[0].mxu0 %vm269_vm1, %v1210_v5  ;;  %1141 = vmatmul.mubr.msk.bf16.vlgmr.msra.gmra.mrb[0].mxu1 %vm269_vm1, %v1211_v6 }
  0x4a   :  { %1092 = vmatprep.mubr.msk.bf16.mxu0 %vm1535_vm0, %v1534_v0  ;;  %1144 = vmatprep.mubr.msk.bf16.mxu1 %vm1535_vm0, %v1534_v0 }
  0x51   :  { %1093 = vmatmul.mubr.msk.bf16.gmra.mrb[4].mxu0 %vm269_vm1, %v1212_v7  ;;  %1145 = vmatmul.mubr.msk.bf16.gmra.mrb[4].mxu1 %vm269_vm1, %v1213_v8 }
  0x52   :  { %1096 = vmatprep.mubr.msk.bf16.mxu0 %vm1535_vm0, %v1534_v0  ;;  %1148 = vmatprep.mubr.msk.bf16.mxu1 %vm1535_vm0, %v1534_v0 }
  0x59   :  { %1097 = vmatmul.mubr.msk.bf16.gmra.mrb[8].mxu0 %vm269_vm1, %v1214_v9  ;;  %1149 = vmatmul.mubr.msk.bf16.gmra.mrb[8].mxu1 %vm269_vm1, %v1215_v10 }
  0x5a   :  { %1100 = vmatprep.mubr.msk.bf16.mxu0 %vm1535_vm0, %v1534_v0  ;;  %1152 = vmatprep.mubr.msk.bf16.mxu1 %vm1535_vm0, %v1534_v0 }
  0x61   :  { %1101 = vmatmul.mubr.msk.bf16.gmra.mrb[12].mxu0 %vm269_vm1, %v1216_v11  ;;  %1153 = vmatmul.mubr.msk.bf16.gmra.mrb[12].mxu1 %vm269_vm1, %v1217_v12 }
  0x62   :  { %1104 = vmatprep.mubr.msk.bf16.mxu0 %vm1535_vm0, %v1534_v0  ;;  %1156 = vmatprep.mubr.msk.bf16.mxu1 %vm1535_vm0, %v1534_v0 }
  0x69   :  { %1105 = vmatmul.mubr.msk.bf16.gmra.mrb[16].mxu0 %vm269_vm1, %v1218_v13  ;;  %1157 = vmatmul.mubr.msk.bf16.gmra.mrb[16].mxu1 %vm269_vm1, %v1219_v14 }
  0x6a   :  { %1108 = vmatprep.mubr.msk.bf16.mxu0 %vm1535_vm0, %v1534_v0  ;;  %1160 = vmatprep.mubr.msk.bf16.mxu1 %vm1535_vm0, %v1534_v0 }
  0x71   :  { %1109 = vmatmul.mubr.msk.bf16.gmra.mrb[20].mxu0 %vm269_vm1, %v1220_v15  ;;  %1161 = vmatmul.mubr.msk.bf16.gmra.mrb[20].mxu1 %vm269_vm1, %v1221_v16 }
  0x72   :  { %1112 = vmatprep.mubr.msk.bf16.mxu0 %vm1535_vm0, %v1534_v0  ;;  %1164 = vmatprep.mubr.msk.bf16.mxu1 %vm1535_vm0, %v1534_v0 }
  0x79   :  { %1113 = vmatmul.mubr.msk.bf16.gmra.mrb[24].mxu0 %vm269_vm1, %v1222_v17  ;;  %1165 = vmatmul.mubr.msk.bf16.gmra.mrb[24].mxu1 %vm269_vm1, %v1223_v18 }
  0x7a   :  { %1116 = vmatprep.mubr.msk.bf16.mxu0 %vm1535_vm0, %v1534_v0  ;;  %1168 = vmatprep.mubr.msk.bf16.mxu1 %vm1535_vm0, %v1534_v0 }
  0x81   :  { %1117 = vmatmul.mubr.msk.bf16.gmra.mrb[28].mxu0 %vm269_vm1, %v1224_v19  ;;  %1169 = vmatmul.mubr.msk.bf16.gmra.mrb[28].mxu1 %vm269_vm1, %v1225_v20 }
  0x82   :  { %1120 = vmatprep.mubr.msk.bf16.mxu0 %vm1535_vm0, %v1534_v0  ;;  %1172 = vmatprep.mubr.msk.bf16.mxu1 %vm1535_vm0, %v1534_v0 }
  0x89   :  { %1121 = vmatmul.mubr.msk.bf16.gmra.mrb[32].mxu0 %vm269_vm1, %v1226_v21  ;;  %1173 = vmatmul.mubr.msk.bf16.gmra.mrb[32].mxu1 %vm269_vm1, %v1227_v22 }
  0x8a   :  { %1124 = vmatprep.mubr.msk.bf16.mxu0 %vm1535_vm0, %v1534_v0  ;;  %1176 = vmatprep.mubr.msk.bf16.mxu1 %vm1535_vm0, %v1534_v0 }
  0x91   :  { %1125 = vmatmul.mubr.msk.bf16.gmra.mrb[36].mxu0 %vm269_vm1, %v1228_v23  ;;  %1177 = vmatmul.mubr.msk.bf16.gmra.mrb[36].mxu1 %vm269_vm1, %v1229_v24 }
  0x92   :  { %1128 = vmatprep.mubr.msk.bf16.mxu0 %vm1535_vm0, %v1534_v0  ;;  %1180 = vmatprep.mubr.msk.bf16.mxu1 %vm1535_vm0, %v1534_v0 }
  0x99   :  { %1129 = vmatmul.mubr.msk.bf16.gmra.mrb[40].mxu0 %vm269_vm1, %v1230_v25  ;;  %1181 = vmatmul.mubr.msk.bf16.gmra.mrb[40].mxu1 %vm269_vm1, %v1231_v26 }
  0x9a   :  { %1132 = vmatprep.mubr.msk.bf16.mxu0 %vm1535_vm0, %v1534_v0  ;;  %1184 = vmatprep.mubr.msk.bf16.mxu1 %vm1535_vm0, %v1534_v0 }
  0xa1   :  { %1133 = vmatmul.mubr.msk.bf16.gmra.mrb[44].mxu0 %vm269_vm1, %v1232_v27  ;;  %1185 = vmatmul.mubr.msk.bf16.gmra.mrb[44].mxu1 %vm269_vm1, %v1233_v28 }
  0xa2   :  { %1136 = vmatprep.mubr.msk.bf16.mxu0 %vm1535_vm0, %v1534_v0 }
  0xa9   :  { %1137 = vmatmul.mubr.msk.bf16.gmra.mrb[48].mxu0 %vm269_vm1, %v1234_v29 }
 0x11c   :  { %v379_v31 = vpop.f32.mrb[0].mxu0  ;;  %v483_v32 = vpop.f32.mrb[0].mxu1 }
 0x11d   :  { %v380_v33 = vadd.f32 %v1685_v30, %v379_v31  ;;  %v1090_v34 = vpop.f32.mrb[1].mxu0  ;;  %v484_v35 = vadd.f32 %v1685_v30, %v483_v32  ;;  %v1142_v36 = vpop.f32.mrb[1].mxu1 }
 0x11e   :  { %v382_v37 = vpop.f32.mrb[2].mxu0  ;;  %v486_v38 = vpop.f32.mrb[2].mxu1 }
 0x11f   :  { %v1001_v39 = vmul.f32 -1.442695, %v380_v33  ;;  %v383_v40 = vadd.f32 %v1685_v30, %v382_v37  ;;  %v1091_v41 = vpop.f32.mrb[3].mxu0  ;;  %v1027_v42 = vmul.f32 -1.442695, %v484_v35  ;;  %v487_v43 = vadd.f32 %v1685_v30, %v486_v38  ;;  %v1143_v44 = vpop.f32.mrb[3].mxu1 }
 0x121   :  { %1235 = vpow2.f32 %v1001_v39  ;;  %v1002_v45 = vmul.f32 -1.442695, %v383_v40  ;;  %v1028_v46 = vmul.f32 -1.442695, %v487_v43 }
 0x122   :  { %1237 = vpow2.f32 %v1027_v42 }
 0x123   :  { %1239 = vpow2.f32 %v1002_v45 }
 0x124   :  { %1241 = vpow2.f32 %v1028_v46  ;;  %v387_v47 = vpop.f32.mrb[4].mxu0  ;;  %v491_v48 = vpop.f32.mrb[4].mxu1 }
 0x125   :  { %v388_v49 = vadd.f32 %v1685_v30, %v387_v47  ;;  %v1094_v50 = vpop.f32.mrb[5].mxu0  ;;  %v492_v51 = vadd.f32 %v1685_v30, %v491_v48  ;;  %v1146_v52 = vpop.f32.mrb[5].mxu1 }
 0x126   :  { %v390_v53 = vpop.f32.mrb[6].mxu0  ;;  %v494_v54 = vpop.f32.mrb[6].mxu1 }
 0x127   :  { %v1003_v55 = vmul.f32 -1.442695, %v388_v49  ;;  %v391_v56 = vadd.f32 %v1685_v30, %v390_v53  ;;  %v1095_v57 = vpop.f32.mrb[7].mxu0  ;;  %v1029_v58 = vmul.f32 -1.442695, %v492_v51  ;;  %v495_v59 = vadd.f32 %v1685_v30, %v494_v54  ;;  %v1147_v60 = vpop.f32.mrb[7].mxu1 }
 0x129   :  { %1243 = vpow2.f32 %v1003_v55  ;;  %v1004_v61 = vmul.f32 -1.442695, %v391_v56  ;;  %v1030_v62 = vmul.f32 -1.442695, %v495_v59 }
 0x12a   :  { %1245 = vpow2.f32 %v1029_v58 }
 0x12b   :  { %v1236_v63 = vpop.eup %1235  ;;  %1247 = vpow2.f32 %v1004_v61 }
 0x12c   :  { %v1238_v0 = vpop.eup %1237  ;;  %v728_v1 = vadd.f32 1.0, %v1236_v63  ;;  %1249 = vpow2.f32 %v1030_v62  ;;  %v395_v2 = vpop.f32.mrb[8].mxu0 }
 0x12d   :  { %v499_v3 = vpop.f32.mrb[8].mxu1  ;;  %v1240_v4 = vpop.eup %1239  ;;  %v754_v5 = vadd.f32 1.0, %v1238_v0  ;;  %v396_v6 = vadd.f32 %v1685_v30, %v395_v2 }
 0x12e   :  { %v1098_v7 = vpop.f32.mrb[9].mxu0  ;;  %v500_v8 = vadd.f32 %v1685_v30, %v499_v3  ;;  %v1150_v9 = vpop.f32.mrb[9].mxu1  ;;  %1251 = vrcp.f32 %v728_v1  ;;  %v729_v11 = vadd.f32 1.0, %v1240_v4 }
 0x12f   :  { %v1242_v10 = vpop.eup %1241  ;;  %v398_v12 = vpop.f32.mrb[10].mxu0  ;;  %1253 = vrcp.f32 %v754_v5  ;;  %v1005_v15 = vmul.f32 -1.442695, %v396_v6 }
 0x130   :  { %v502_v13 = vpop.f32.mrb[10].mxu1  ;;  %v755_v14 = vadd.f32 1.0, %v1242_v10  ;;  %v399_v16 = vadd.f32 %v1685_v30, %v398_v12  ;;  %v1099_v17 = vpop.f32.mrb[11].mxu0  ;;  %1255 = vrcp.f32 %v729_v11  ;;  %v1031_v19 = vmul.f32 -1.442695, %v500_v8 }
 0x131   :  { %v1151_v18 = vpop.f32.mrb[11].mxu1  ;;  %v503_v20 = vadd.f32 %v1685_v30, %v502_v13 }
 0x132   :  { %1257 = vrcp.f32 %v755_v14  ;;  %v1006_v21 = vmul.f32 -1.442695, %v399_v16 }
 0x133   :  { %1259 = vpow2.f32 %v1005_v15  ;;  %v1032_v22 = vmul.f32 -1.442695, %v503_v20  ;;  %v1244_v23 = vpop.eup %1243 }
 0x134   :  { %1261 = vpow2.f32 %v1006_v21  ;;  %v1246_v24 = vpop.eup %1245  ;;  %v730_v25 = vadd.f32 1.0, %v1244_v23  ;;  %v403_v26 = vpop.f32.mrb[12].mxu0 }
 0x135   :  { %1263 = vpow2.f32 %v1031_v19  ;;  %v507_v27 = vpop.f32.mrb[12].mxu1  ;;  %v1248_v28 = vpop.eup %1247  ;;  %v756_v29 = vadd.f32 1.0, %v1246_v24  ;;  %v404_v31 = vadd.f32 %v1685_v30, %v403_v26 }
 0x136   :  { %1265 = vpow2.f32 %v1032_v22  ;;  %v1102_v32 = vpop.f32.mrb[13].mxu0  ;;  %v508_v33 = vadd.f32 %v1685_v30, %v507_v27  ;;  %v1154_v34 = vpop.f32.mrb[13].mxu1  ;;  %v731_v36 = vadd.f32 1.0, %v1248_v28 }
 0x137   :  { %v1250_v35 = vpop.eup %1249  ;;  %1267 = vrcp.f32 %v730_v25  ;;  %v406_v37 = vpop.f32.mrb[14].mxu0  ;;  %v1007_v40 = vmul.f32 -1.442695, %v404_v31 }
 0x138   :  { %v510_v38 = vpop.f32.mrb[14].mxu1  ;;  %1269 = vrcp.f32 %v756_v29  ;;  %v757_v39 = vadd.f32 1.0, %v1250_v35  ;;  %v407_v41 = vadd.f32 %v1685_v30, %v406_v37  ;;  %v1103_v42 = vpop.f32.mrb[15].mxu0  ;;  %v1033_v45 = vmul.f32 -1.442695, %v508_v33 }
 0x139   :  { %v1155_v43 = vpop.f32.mrb[15].mxu1  ;;  %v1252_v44 = vpop.eup %1251  ;;  %1271 = vrcp.f32 %v731_v36  ;;  %v511_v46 = vadd.f32 %v1685_v30, %v510_v38 }
 0x13a   :  { %v1254_v47 = vpop.eup %1253  ;;  %878 = vst [vmem:[#allocation8] sm:$0xff] %v1252_v44  ;;  %1273 = vrcp.f32 %v757_v39  ;;  %v1008_v48 = vmul.f32 -1.442695, %v407_v41 }
 0x13b   :  { %v1256_v49 = vpop.eup %1255  ;;  %904 = vst [vmem:[#allocation8 + $0xd0] sm:$0xff] %v1254_v47  ;;  %1275 = vpow2.f32 %v1007_v40  ;;  %v1034_v50 = vmul.f32 -1.442695, %v511_v46 }
 0x13c   :  { %v1258_v51 = vpop.eup %1257  ;;  %879 = vst [vmem:[#allocation8 + $0x8] sm:$0xff] %v1256_v49  ;;  %1277 = vpow2.f32 %v1008_v48  ;;  %v411_v53 = vpop.f32.mrb[16].mxu0 }
 0x13d   :  { %v1260_v52 = vpop.eup %1259  ;;  %905 = vst [vmem:[#allocation8 + $0xd8] sm:$0xff] %v1258_v51  ;;  %1279 = vpow2.f32 %v1033_v45  ;;  %v515_v54 = vpop.f32.mrb[16].mxu1  ;;  %v412_v57 = vadd.f32 %v1685_v30, %v411_v53 }
 0x13e   :  { %v1262_v55 = vpop.eup %1261  ;;  %v732_v56 = vadd.f32 1.0, %v1260_v52  ;;  %1281 = vpow2.f32 %v1034_v50  ;;  %v1106_v58 = vpop.f32.mrb[17].mxu0  ;;  %v516_v59 = vadd.f32 %v1685_v30, %v515_v54 }
 0x13f   :  { %v1158_v60 = vpop.f32.mrb[17].mxu1  ;;  %v1264_v61 = vpop.eup %1263  ;;  %v733_v62 = vadd.f32 1.0, %v1262_v55  ;;  %v1009_v3 = vmul.f32 -1.442695, %v412_v57 }
 0x140   :  { %v414_v63 = vpop.f32.mrb[18].mxu0  ;;  %v518_v0 = vpop.f32.mrb[18].mxu1  ;;  %1283 = vrcp.f32 %v732_v56  ;;  %v758_v2 = vadd.f32 1.0, %v1264_v61  ;;  %v1035_v12 = vmul.f32 -1.442695, %v516_v59 }
 0x141   :  { %v1266_v1 = vpop.eup %1265  ;;  %v415_v4 = vadd.f32 %v1685_v30, %v414_v63  ;;  %v1107_v5 = vpop.f32.mrb[19].mxu0  ;;  %1285 = vrcp.f32 %v733_v62  ;;  %v519_v9 = vadd.f32 %v1685_v30, %v518_v0 }
 0x142   :  { %v1159_v6 = vpop.f32.mrb[19].mxu1  ;;  %v1268_v7 = vpop.eup %1267  ;;  %v759_v8 = vadd.f32 1.0, %v1266_v1  ;;  %1287 = vrcp.f32 %v758_v2 }
 0x143   :  { %v1270_v10 = vpop.eup %1269  ;;  %880 = vst [vmem:[#allocation8 + $0x10] sm:$0xff] %v1268_v7  ;;  %v1010_v11 = vmul.f32 -1.442695, %v415_v4  ;;  %v1036_v14 = vmul.f32 -1.442695, %v519_v9 }
 0x144   :  { %v1272_v13 = vpop.eup %1271  ;;  %906 = vst [vmem:[#allocation8 + $0xe0] sm:$0xff] %v1270_v10  ;;  %1289 = vrcp.f32 %v759_v8  ;;  %v419_v17 = vpop.f32.mrb[20].mxu0 }
 0x145   :  { %v1274_v15 = vpop.eup %1273  ;;  %881 = vst [vmem:[#allocation8 + $0x18] sm:$0xff] %v1272_v13  ;;  %1291 = vpow2.f32 %v1009_v3  ;;  %v523_v18 = vpop.f32.mrb[20].mxu1  ;;  %v420_v21 = vadd.f32 %v1685_v30, %v419_v17 }
 0x146   :  { %v1276_v16 = vpop.eup %1275  ;;  %907 = vst [vmem:[#allocation8 + $0xe8] sm:$0xff] %v1274_v15  ;;  %1293 = vpow2.f32 %v1010_v11  ;;  %v1110_v22 = vpop.f32.mrb[21].mxu0  ;;  %v524_v23 = vadd.f32 %v1685_v30, %v523_v18 }
 0x147   :  { %v1278_v19 = vpop.eup %1277  ;;  %v734_v20 = vadd.f32 1.0, %v1276_v16  ;;  %1295 = vpow2.f32 %v1035_v12  ;;  %v1162_v24 = vpop.f32.mrb[21].mxu1  ;;  %v1011_v32 = vmul.f32 -1.442695, %v420_v21 }
 0x148   :  { %v1280_v25 = vpop.eup %1279  ;;  %v735_v26 = vadd.f32 1.0, %v1278_v19  ;;  %1297 = vpow2.f32 %v1036_v14  ;;  %v422_v27 = vpop.f32.mrb[22].mxu0  ;;  %v1037_v40 = vmul.f32 -1.442695, %v524_v23 }
 0x149   :  { %v526_v28 = vpop.f32.mrb[22].mxu1  ;;  %v1282_v29 = vpop.eup %1281  ;;  %1299 = vrcp.f32 %v734_v20  ;;  %v760_v31 = vadd.f32 1.0, %v1280_v25  ;;  %v423_v33 = vadd.f32 %v1685_v30, %v422_v27 }
 0x14a   :  { %v1111_v34 = vpop.f32.mrb[23].mxu0  ;;  %v1163_v35 = vpop.f32.mrb[23].mxu1  ;;  %1301 = vrcp.f32 %v735_v26  ;;  %v761_v36 = vadd.f32 1.0, %v1282_v29  ;;  %v527_v37 = vadd.f32 %v1685_v30, %v526_v28 }
 0x14b   :  { %v1284_v38 = vpop.eup %1283  ;;  %1303 = vrcp.f32 %v760_v31  ;;  %v1012_v39 = vmul.f32 -1.442695, %v423_v33 }
 0x14c   :  { %v1286_v41 = vpop.eup %1285  ;;  %882 = vst [vmem:[#allocation8 + $0x20] sm:$0xff] %v1284_v38  ;;  %1305 = vrcp.f32 %v761_v36  ;;  %v1038_v42 = vmul.f32 -1.442695, %v527_v37  ;;  %v427_v45 = vpop.f32.mrb[24].mxu0 }
 0x14d   :  { %v1288_v43 = vpop.eup %1287  ;;  %883 = vst [vmem:[#allocation8 + $0x28] sm:$0xff] %v1286_v41  ;;  %1307 = vpow2.f32 %v1011_v32  ;;  %v531_v46 = vpop.f32.mrb[24].mxu1  ;;  %v428_v48 = vadd.f32 %v1685_v30, %v427_v45 }
 0x14e   :  { %v1290_v44 = vpop.eup %1289  ;;  %908 = vst [vmem:[#allocation8 + $0xf0] sm:$0xff] %v1288_v43  ;;  %1309 = vpow2.f32 %v1012_v39  ;;  %v1114_v49 = vpop.f32.mrb[25].mxu0  ;;  %v532_v54 = vadd.f32 %v1685_v30, %v531_v46 }
 0x14f   :  { %v1292_v47 = vpop.eup %1291  ;;  %909 = vst [vmem:[#allocation8 + $0xf8] sm:$0xff] %v1290_v44  ;;  %1311 = vpow2.f32 %v1037_v40  ;;  %v1166_v50 = vpop.f32.mrb[25].mxu1  ;;  %v1013_v62 = vmul.f32 -1.442695, %v428_v48 }
 0x150   :  { %v1294_v51 = vpop.eup %1293  ;;  %v736_v52 = vadd.f32 1.0, %v1292_v47  ;;  %1313 = vpow2.f32 %v1038_v42  ;;  %v430_v53 = vpop.f32.mrb[26].mxu0  ;;  %v1039_v5 = vmul.f32 -1.442695, %v532_v54 }
 0x151   :  { %v534_v55 = vpop.f32.mrb[26].mxu1  ;;  %v1296_v56 = vpop.eup %1295  ;;  %v737_v57 = vadd.f32 1.0, %v1294_v51  ;;  %v431_v58 = vadd.f32 %v1685_v30, %v430_v53 }
 0x152   :  { %v1115_v59 = vpop.f32.mrb[27].mxu0  ;;  %v1298_v60 = vpop.eup %1297  ;;  %1315 = vrcp.f32 %v736_v52  ;;  %v762_v61 = vadd.f32 1.0, %v1296_v56  ;;  %v535_v63 = vadd.f32 %v1685_v30, %v534_v55 }
 0x153   :  { %v1167_v0 = vpop.f32.mrb[27].mxu1  ;;  %v1300_v1 = vpop.eup %1299  ;;  %1317 = vrcp.f32 %v737_v57  ;;  %v763_v2 = vadd.f32 1.0, %v1298_v60  ;;  %v1014_v3 = vmul.f32 -1.442695, %v431_v58 }
 0x154   :  { %v1302_v4 = vpop.eup %1301  ;;  %884 = vst [vmem:[#allocation8 + $0x30] sm:$0xff] %v1300_v1  ;;  %1319 = vrcp.f32 %v762_v61  ;;  %v1040_v7 = vmul.f32 -1.442695, %v535_v63  ;;  %v435_v9 = vpop.f32.mrb[28].mxu0 }
 0x155   :  { %v1304_v6 = vpop.eup %1303  ;;  %885 = vst [vmem:[#allocation8 + $0x38] sm:$0xff] %v1302_v4  ;;  %1321 = vrcp.f32 %v763_v2  ;;  %v539_v10 = vpop.f32.mrb[28].mxu1  ;;  %v436_v12 = vadd.f32 %v1685_v30, %v435_v9 }
 0x156   :  { %v1306_v8 = vpop.eup %1305  ;;  %910 = vst [vmem:[#allocation8 + $0x100] sm:$0xff] %v1304_v6  ;;  %1323 = vpow2.f32 %v1013_v62  ;;  %v1118_v13 = vpop.f32.mrb[29].mxu0  ;;  %v540_v18 = vadd.f32 %v1685_v30, %v539_v10 }
 0x157   :  { %v1308_v11 = vpop.eup %1307  ;;  %911 = vst [vmem:[#allocation8 + $0x108] sm:$0xff] %v1306_v8  ;;  %1325 = vpow2.f32 %v1014_v3  ;;  %v1170_v14 = vpop.f32.mrb[29].mxu1  ;;  %v1015_v27 = vmul.f32 -1.442695, %v436_v12 }
 0x158   :  { %v1310_v15 = vpop.eup %1309  ;;  %v738_v16 = vadd.f32 1.0, %v1308_v11  ;;  %1327 = vpow2.f32 %v1039_v5  ;;  %v438_v17 = vpop.f32.mrb[30].mxu0  ;;  %v1041_v33 = vmul.f32 -1.442695, %v540_v18 }
 0x159   :  { %v542_v19 = vpop.f32.mrb[30].mxu1  ;;  %v1312_v20 = vpop.eup %1311  ;;  %v739_v21 = vadd.f32 1.0, %v1310_v15  ;;  %1329 = vpow2.f32 %v1040_v7  ;;  %v439_v22 = vadd.f32 %v1685_v30, %v438_v17 }
 0x15a   :  { %v1119_v23 = vpop.f32.mrb[31].mxu0  ;;  %v1171_v24 = vpop.f32.mrb[31].mxu1  ;;  %1331 = vrcp.f32 %v738_v16  ;;  %v764_v26 = vadd.f32 1.0, %v1312_v20  ;;  %v543_v28 = vadd.f32 %v1685_v30, %v542_v19 }
 0x15b   :  { %v1314_v25 = vpop.eup %1313  ;;  %1333 = vrcp.f32 %v739_v21  ;;  %v1016_v31 = vmul.f32 -1.442695, %v439_v22 }
 0x15c   :  { %v765_v29 = vadd.f32 1.0, %v1314_v25  ;;  %v1316_v32 = vpop.eup %1315  ;;  %1335 = vrcp.f32 %v764_v26  ;;  %v1042_v35 = vmul.f32 -1.442695, %v543_v28  ;;  %v443_v37 = vpop.f32.mrb[32].mxu0 }
 0x15d   :  { %v1318_v34 = vpop.eup %1317  ;;  %886 = vst [vmem:[#allocation8 + $0x40] sm:$0xff] %v1316_v32  ;;  %v547_v38 = vpop.f32.mrb[32].mxu1  ;;  %v444_v40 = vadd.f32 %v1685_v30, %v443_v37 }
 0x15e   :  { %1337 = vrcp.f32 %v765_v29  ;;  %v1320_v36 = vpop.eup %1319  ;;  %887 = vst [vmem:[#allocation8 + $0x48] sm:$0xff] %v1318_v34  ;;  %v1122_v41 = vpop.f32.mrb[33].mxu0  ;;  %v548_v50 = vadd.f32 %v1685_v30, %v547_v38 }
 0x15f   :  { %1339 = vpow2.f32 %v1015_v27  ;;  %v1322_v39 = vpop.eup %1321  ;;  %912 = vst [vmem:[#allocation8 + $0x110] sm:$0xff] %v1320_v36  ;;  %v1174_v42 = vpop.f32.mrb[33].mxu1  ;;  %v1017_v57 = vmul.f32 -1.442695, %v444_v40 }
 0x160   :  { %1341 = vpow2.f32 %v1016_v31  ;;  %v1324_v43 = vpop.eup %1323  ;;  %913 = vst [vmem:[#allocation8 + $0x118] sm:$0xff] %v1322_v39  ;;  %v446_v44 = vpop.f32.mrb[34].mxu0  ;;  %v1043_v62 = vmul.f32 -1.442695, %v548_v50 }
 0x161   :  { %1343 = vpow2.f32 %v1041_v33  ;;  %v550_v45 = vpop.f32.mrb[34].mxu1  ;;  %v1326_v46 = vpop.eup %1325  ;;  %v740_v47 = vadd.f32 1.0, %v1324_v43  ;;  %v447_v48 = vadd.f32 %v1685_v30, %v446_v44 }
 0x162   :  { %1345 = vpow2.f32 %v1042_v35  ;;  %v1123_v49 = vpop.f32.mrb[35].mxu0  ;;  %v1175_v51 = vpop.f32.mrb[35].mxu1  ;;  %v741_v53 = vadd.f32 1.0, %v1326_v46  ;;  %v551_v54 = vadd.f32 %v1685_v30, %v550_v45 }
 0x163   :  { %v1328_v52 = vpop.eup %1327  ;;  %1347 = vrcp.f32 %v740_v47  ;;  %v1018_v60 = vmul.f32 -1.442695, %v447_v48 }
 0x164   :  { %v1330_v55 = vpop.eup %1329  ;;  %v766_v56 = vadd.f32 1.0, %v1328_v52  ;;  %1349 = vrcp.f32 %v741_v53  ;;  %v1044_v0 = vmul.f32 -1.442695, %v551_v54  ;;  %v451_v1 = vpop.f32.mrb[36].mxu0 }
 0x165   :  { %v1332_v58 = vpop.eup %1331  ;;  %v767_v59 = vadd.f32 1.0, %v1330_v55  ;;  %v555_v2 = vpop.f32.mrb[36].mxu1  ;;  %v452_v4 = vadd.f32 %v1685_v30, %v451_v1 }
 0x166   :  { %v1334_v61 = vpop.eup %1333  ;;  %888 = vst [vmem:[#allocation8 + $0x50] sm:$0xff] %v1332_v58  ;;  %1351 = vrcp.f32 %v766_v56  ;;  %v1126_v5 = vpop.f32.mrb[37].mxu0  ;;  %v556_v14 = vadd.f32 %v1685_v30, %v555_v2 }
 0x167   :  { %v1336_v63 = vpop.eup %1335  ;;  %889 = vst [vmem:[#allocation8 + $0x58] sm:$0xff] %v1334_v61  ;;  %1353 = vrcp.f32 %v767_v59  ;;  %v1178_v6 = vpop.f32.mrb[37].mxu1  ;;  %v1019_v21 = vmul.f32 -1.442695, %v452_v4 }
 0x168   :  { %v1338_v3 = vpop.eup %1337  ;;  %914 = vst [vmem:[#allocation8 + $0x120] sm:$0xff] %v1336_v63  ;;  %1355 = vpow2.f32 %v1017_v57  ;;  %v454_v8 = vpop.f32.mrb[38].mxu0  ;;  %v1045_v25 = vmul.f32 -1.442695, %v556_v14 }
 0x169   :  { %v1340_v7 = vpop.eup %1339  ;;  %915 = vst [vmem:[#allocation8 + $0x128] sm:$0xff] %v1338_v3  ;;  %1357 = vpow2.f32 %v1018_v60  ;;  %v558_v9 = vpop.f32.mrb[38].mxu1  ;;  %v455_v12 = vadd.f32 %v1685_v30, %v454_v8 }
 0x16a   :  { %v1342_v10 = vpop.eup %1341  ;;  %v742_v11 = vadd.f32 1.0, %v1340_v7  ;;  %1359 = vpow2.f32 %v1043_v62  ;;  %v1127_v13 = vpop.f32.mrb[39].mxu0  ;;  %v559_v18 = vadd.f32 %v1685_v30, %v558_v9 }
 0x16b   :  { %v1179_v15 = vpop.f32.mrb[39].mxu1  ;;  %v1344_v16 = vpop.eup %1343  ;;  %v743_v17 = vadd.f32 1.0, %v1342_v10  ;;  %1361 = vpow2.f32 %v1044_v0  ;;  %v1020_v23 = vmul.f32 -1.442695, %v455_v12 }
 0x16c   :  { %v1346_v19 = vpop.eup %1345  ;;  %1363 = vrcp.f32 %v742_v11  ;;  %v768_v20 = vadd.f32 1.0, %v1344_v16  ;;  %v1046_v27 = vmul.f32 -1.442695, %v559_v18  ;;  %v459_v28 = vpop.f32.mrb[40].mxu0 }
 0x16d   :  { %1365 = vrcp.f32 %v743_v17  ;;  %v769_v22 = vadd.f32 1.0, %v1346_v19  ;;  %v1348_v24 = vpop.eup %1347  ;;  %v563_v29 = vpop.f32.mrb[40].mxu1  ;;  %v460_v32 = vadd.f32 %v1685_v30, %v459_v28 }
 0x16e   :  { %1367 = vrcp.f32 %v768_v20  ;;  %v1350_v26 = vpop.eup %1349  ;;  %890 = vst [vmem:[#allocation8 + $0x60] sm:$0xff] %v1348_v24  ;;  %v1130_v33 = vpop.f32.mrb[41].mxu0  ;;  %v564_v42 = vadd.f32 %v1685_v30, %v563_v29 }
 0x16f   :  { %1369 = vrcp.f32 %v769_v22  ;;  %891 = vst [vmem:[#allocation8 + $0x68] sm:$0xff] %v1350_v26  ;;  %v1182_v34 = vpop.f32.mrb[41].mxu1  ;;  %v462_v36 = vpop.f32.mrb[42].mxu0  ;;  %v1021_v39 = vmul.f32 -1.442695, %v460_v32 }
 0x170   :  { %v1352_v31 = vpop.eup %1351  ;;  %1371 = vpow2.f32 %v1019_v21  ;;  %v566_v37 = vpop.f32.mrb[42].mxu1  ;;  %v463_v40 = vadd.f32 %v1685_v30, %v462_v36  ;;  %v1047_v54 = vmul.f32 -1.442695, %v564_v42 }
 0x171   :  { %v1354_v35 = vpop.eup %1353  ;;  %916 = vst [vmem:[#allocation8 + $0x130] sm:$0xff] %v1352_v31  ;;  %1373 = vpow2.f32 %v1020_v23  ;;  %v1131_v41 = vpop.f32.mrb[43].mxu0  ;;  %v567_v46 = vadd.f32 %v1685_v30, %v566_v37 }
 0x172   :  { %v1356_v38 = vpop.eup %1355  ;;  %917 = vst [vmem:[#allocation8 + $0x138] sm:$0xff] %v1354_v35  ;;  %1375 = vpow2.f32 %v1045_v25  ;;  %v1183_v43 = vpop.f32.mrb[43].mxu1  ;;  %v1022_v51 = vmul.f32 -1.442695, %v463_v40 }
 0x173   :  { %v1358_v44 = vpop.eup %1357  ;;  %v744_v45 = vadd.f32 1.0, %v1356_v38  ;;  %1377 = vpow2.f32 %v1046_v27  ;;  %v1048_v56 = vmul.f32 -1.442695, %v567_v46 }
 0x174   :  { %v1360_v47 = vpop.eup %1359  ;;  %v745_v48 = vadd.f32 1.0, %v1358_v44  ;;  %1379 = vpow2.f32 %v1021_v39  ;;  %v467_v57 = vpop.f32.mrb[44].mxu0 }
 0x175   :  { %v1362_v49 = vpop.eup %1361  ;;  %1381 = vrcp.f32 %v744_v45  ;;  %v770_v50 = vadd.f32 1.0, %v1360_v47  ;;  %v571_v58 = vpop.f32.mrb[44].mxu1  ;;  %v468_v60 = vadd.f32 %v1685_v30, %v467_v57 }
 0x176   :  { %v1364_v52 = vpop.eup %1363  ;;  %1383 = vrcp.f32 %v745_v48  ;;  %v771_v53 = vadd.f32 1.0, %v1362_v49  ;;  %v1134_v61 = vpop.f32.mrb[45].mxu0  ;;  %v572_v9 = vadd.f32 %v1685_v30, %v571_v58 }
 0x177   :  { %v1366_v55 = vpop.eup %1365  ;;  %892 = vst [vmem:[#allocation8 + $0x70] sm:$0xff] %v1364_v52  ;;  %1385 = vrcp.f32 %v770_v50  ;;  %v1186_v62 = vpop.f32.mrb[45].mxu1  ;;  %v1023_v3 = vmul.f32 -1.442695, %v468_v60 }
 0x178   :  { %v1368_v59 = vpop.eup %1367  ;;  %893 = vst [vmem:[#allocation8 + $0x78] sm:$0xff] %v1366_v55  ;;  %1387 = vrcp.f32 %v771_v53  ;;  %v470_v0 = vpop.f32.mrb[46].mxu0  ;;  %v1049_v20 = vmul.f32 -1.442695, %v572_v9 }
 0x179   :  { %v1370_v63 = vpop.eup %1369  ;;  %918 = vst [vmem:[#allocation8 + $0x140] sm:$0xff] %v1368_v59  ;;  %1389 = vpow2.f32 %v1022_v51  ;;  %v574_v1 = vpop.f32.mrb[46].mxu1  ;;  %v471_v4 = vadd.f32 %v1685_v30, %v470_v0 }
 0x17a   :  { %v1372_v2 = vpop.eup %1371  ;;  %919 = vst [vmem:[#allocation8 + $0x148] sm:$0xff] %v1370_v63  ;;  %1391 = vpow2.f32 %v1047_v54  ;;  %v1135_v5 = vpop.f32.mrb[47].mxu0  ;;  %v575_v12 = vadd.f32 %v1685_v30, %v574_v1 }
 0x17b   :  { %v1187_v6 = vpop.f32.mrb[47].mxu1  ;;  %v1374_v7 = vpop.eup %1373  ;;  %v746_v8 = vadd.f32 1.0, %v1372_v2  ;;  %1393 = vpow2.f32 %v1048_v56  ;;  %v1024_v17 = vmul.f32 -1.442695, %v471_v4 }
 0x17c   :  { %v1376_v10 = vpop.eup %1375  ;;  %v747_v11 = vadd.f32 1.0, %v1374_v7  ;;  %1395 = vpow2.f32 %v1023_v3  ;;  %v475_v21 = vpop.f32.mrb[48].mxu0  ;;  %v1050_v23 = vmul.f32 -1.442695, %v575_v12 }
 0x17d   :  { %v1378_v13 = vpop.eup %1377  ;;  %1397 = vrcp.f32 %v746_v8  ;;  %v772_v14 = vadd.f32 1.0, %v1376_v10  ;;  %v476_v24 = vadd.f32 %v1685_v30, %v475_v21  ;;  %v1138_v25 = vpop.f32.mrb[49].mxu0 }
 0x17e   :  { %v1380_v15 = vpop.eup %1379  ;;  %1399 = vrcp.f32 %v747_v11  ;;  %v773_v16 = vadd.f32 1.0, %v1378_v13  ;;  %v478_v27 = vpop.f32.mrb[50].mxu0 }
 0x17f   :  { %v1382_v18 = vpop.eup %1381  ;;  %1401 = vrcp.f32 %v772_v14  ;;  %v748_v19 = vadd.f32 1.0, %v1380_v15  ;;  %v1025_v29 = vmul.f32 -1.442695, %v476_v24  ;;  %v479_v31 = vadd.f32 %v1685_v30, %v478_v27  ;;  %v1139_v32 = vpop.f32.mrb[51].mxu0 }
 0x180   :  { %v1384_v22 = vpop.eup %1383  ;;  %894 = vst [vmem:[#allocation8 + $0x80] sm:$0xff] %v1382_v18  ;;  %1403 = vrcp.f32 %v773_v16 }
 0x181   :  { %v1386_v26 = vpop.eup %1385  ;;  %895 = vst [vmem:[#allocation8 + $0x88] sm:$0xff] %v1384_v22  ;;  %1405 = vrcp.f32 %v748_v19  ;;  %v1026_v40 = vmul.f32 -1.442695, %v479_v31 }
 0x182   :  { %v1388_v28 = vpop.eup %1387  ;;  %920 = vst [vmem:[#allocation8 + $0x150] sm:$0xff] %v1386_v26  ;;  %1407 = vpow2.f32 %v1024_v17 }
 0x183   :  { %v1390_v33 = vpop.eup %1389  ;;  %921 = vst [vmem:[#allocation8 + $0x158] sm:$0xff] %v1388_v28  ;;  %1409 = vpow2.f32 %v1049_v20 }
 0x184   :  { %v1392_v34 = vpop.eup %1391  ;;  %v749_v35 = vadd.f32 1.0, %v1390_v33  ;;  %1411 = vpow2.f32 %v1050_v23 }
 0x185   :  { %v1394_v36 = vpop.eup %1393  ;;  %v774_v37 = vadd.f32 1.0, %v1392_v34  ;;  %1413 = vpow2.f32 %v1025_v29 }
 0x186   :  { %v1396_v38 = vpop.eup %1395  ;;  %1415 = vrcp.f32 %v749_v35  ;;  %v775_v39 = vadd.f32 1.0, %v1394_v36 }
 0x187   :  { %v1398_v41 = vpop.eup %1397  ;;  %1417 = vrcp.f32 %v774_v37  ;;  %v750_v42 = vadd.f32 1.0, %v1396_v38 }
 0x188   :  { %v1400_v43 = vpop.eup %1399  ;;  %896 = vst [vmem:[#allocation8 + $0x90] sm:$0xff] %v1398_v41  ;;  %1419 = vrcp.f32 %v775_v39 }
 0x189   :  { %v1402_v30 = vpop.eup %1401  ;;  %897 = vst [vmem:[#allocation8 + $0x98] sm:$0xff] %v1400_v43  ;;  %1421 = vrcp.f32 %v750_v42 }
 0x18a   :  { %v1404_v44 = vpop.eup %1403  ;;  %922 = vst [vmem:[#allocation8 + $0x160] sm:$0xff] %v1402_v30  ;;  %1423 = vpow2.f32 %v1026_v40 }
 0x18b   :  { %v1406_v45 = vpop.eup %1405  ;;  %923 = vst [vmem:[#allocation8 + $0x168] sm:$0xff] %v1404_v44 }
 0x18c   :  { %v1408_v46 = vpop.eup %1407  ;;  %898 = vst [vmem:[#allocation8 + $0xa0] sm:$0xff] %v1406_v45 }
 0x18d   :  { %v1410_v47 = vpop.eup %1409  ;;  %v751_v48 = vadd.f32 1.0, %v1408_v46 }
 0x18e   :  { %v1412_v49 = vpop.eup %1411  ;;  %v776_v50 = vadd.f32 1.0, %v1410_v47 }
 0x18f   :  { %v1414_v51 = vpop.eup %1413  ;;  %1425 = vrcp.f32 %v751_v48  ;;  %v777_v52 = vadd.f32 1.0, %v1412_v49 }
 0x190   :  { %v1416_v53 = vpop.eup %1415  ;;  %1427 = vrcp.f32 %v776_v50  ;;  %v752_v54 = vadd.f32 1.0, %v1414_v51 }
 0x191   :  { %v1418_v55 = vpop.eup %1417  ;;  %899 = vst [vmem:[#allocation8 + $0xa8] sm:$0xff] %v1416_v53  ;;  %1429 = vrcp.f32 %v777_v52 }
 0x192   :  { %v1420_v56 = vpop.eup %1419  ;;  %924 = vst [vmem:[#allocation8 + $0x170] sm:$0xff] %v1418_v55  ;;  %1431 = vrcp.f32 %v752_v54 }
 0x193   :  { %v1422_v57 = vpop.eup %1421  ;;  %925 = vst [vmem:[#allocation8 + $0x178] sm:$0xff] %v1420_v56 }
 0x194   :  { %v1424_v58 = vpop.eup %1423  ;;  %900 = vst [vmem:[#allocation8 + $0xb0] sm:$0xff] %v1422_v57 }
 0x195   :  { %v753_v59 = vadd.f32 1.0, %v1424_v58 }
 0x197   :  { %1433 = vrcp.f32 %v753_v59 }
 0x199   :  { %v1426_v60 = vpop.eup %1425 }
 0x19a   :  { %v1428_v61 = vpop.eup %1427  ;;  %901 = vst [vmem:[#allocation8 + $0xb8] sm:$0xff] %v1426_v60 }
 0x19b   :  { %v1430_v62 = vpop.eup %1429  ;;  %926 = vst [vmem:[#allocation8 + $0x180] sm:$0xff] %v1428_v61 }
 0x19c   :  { %v1432_v63 = vpop.eup %1431  ;;  %927 = vst [vmem:[#allocation8 + $0x188] sm:$0xff] %v1430_v62 }
 0x19d   :  { %902 = vst [vmem:[#allocation8 + $0xc0] sm:$0xff] %v1432_v63 }
 0x1a1   :  { %v1434_v0 = vpop.eup %1433 }
 0x1a2   :  { %903 = vst [vmem:[#allocation8 + $0xc8] sm:$0xff] %v1434_v0 }
 0x1a3   :  { %1512 = shalt.err (!%p1509_p0)
}
 0x1a4   :  { %s1513_s26 = scalar_lea.hbm %s1752_s3, 6400 }
 0x1a5   :  { %p1514_p1 = scmp.ne.s32.totalorder %s1752_s3, %s1513_s26  ;;  %p1517_p2 = scmp.lt.u32.totalorder %s1513_s26, %s1752_s3 }
 0x1a7   :  { %p1519_p3 = pnand %p1517_p2, %p1514_p1 }
 0x1a9   :  { %1522 = shalt.err (!%p1519_p3)
}
 0x1aa   :  { %s1537_s4 = smov 128   ;;  %s1538_s5 = smov 8  }
 0x1ab   :  { %939 = dma.vmem_to_hbm [thread:$0]  %s934_s22, 6400, %s1752_s3, [#allocation4], %s1537_s4, %s1537_s4, %s1538_s5  }
 0x1ac   :  { %1527 = dma.done.wait [#allocation4], 6400  }
 0x1ad   :  { %1528 = vsyncadd [#allocation4], 4294960896 }
 0x1ae   :  { %943 = vsyncpa [#allocation3], 1 }
 0x1af   :  { %944 = vsyncpa [#allocation6], 1 }
 0x1b0   :  { %945 = vsyncpa [#allocation4], 1 }

</bundles_post_ra>
